<compile_context>
chip_gen: v5e
topology: v5e:2x2
jax: 0.10.0
libtpu: 0.0.40
codegen_flags: <defaults>
</compile_context>

<pallas_src>
import numpy as np
import jax
import jax.numpy as jnp
from jax.experimental import pallas as pl
from jax.experimental.pallas import tpu as pltpu

_HIGHEST = jax.lax.Precision.HIGHEST  # used only in the pure-JAX reference


def _make_kernel(num_heads: int, head_dim: int):
    H, D = num_heads, head_dim

    def kernel(x_ref, y_ref, wqkv_ref, bqkv_ref, wp_ref, bp_ref, bias_ref, out_ref):
        Bt, N, C = x_ref.shape

        # Fused q / kv projection: [x | y] @ blockdiag(Wq*scale, Wkv) + [bq*scale | bkv]
        xy = jnp.concatenate([x_ref[...], y_ref[...]], axis=-1).reshape(Bt * N, 2 * C)
        qkv = jnp.dot(xy, wqkv_ref[...],
                      preferred_element_type=jnp.float32) + bqkv_ref[...]

        wp = wp_ref[...]                                   # (C, C) f32, loaded once
        out_acc = jnp.zeros((Bt * N, C), jnp.float32)

        # Small static head loop; each head's attention is batched over the Bt windows.
        for h in range(H):
            lo = h * D
            qh = qkv[:, lo:lo + D].reshape(Bt, N, D)
            kh = qkv[:, C + lo:C + lo + D].reshape(Bt, N, D)
            vh = qkv[:, 2 * C + lo:2 * C + lo + D].reshape(Bt, N, D)

            s = jnp.einsum("bnd,bmd->bnm", qh, kh,
                           preferred_element_type=jnp.float32)
            s = s + bias_ref[h][None, :, :]                # relative position bias (N, N)
            # numerically stable softmax over the key axis; divide on the EUP path
            s = s - jnp.max(s, axis=-1, keepdims=True)
            p = jnp.exp(s)
            l = jnp.sum(p, axis=-1, keepdims=True)
            p = p * pl.reciprocal(l, approx=True)

            oh = jnp.einsum("bnm,bmd->bnd", p, vh,
                            preferred_element_type=jnp.float32)
            # concat-free output projection: out += o_h @ Wproj^T[h*D:(h+1)*D, :]
            out_acc = out_acc + jnp.dot(oh.reshape(Bt * N, D), wp[lo:lo + D, :],
                                        preferred_element_type=jnp.float32)

        out = out_acc + bp_ref[...]
        out_ref[...] = out.reshape(Bt, N, C).astype(out_ref.dtype)

    return kernel


def _choose_block_windows(B_, N, C, H, io_itemsize, vmem_budget_bytes):
    """Pick windows-per-block from an estimate of TOTAL live VMEM bytes."""
    per_window = (
        4 * N * C * io_itemsize          # x, y input blocks, double-buffered
        + 2 * N * C * io_itemsize        # output block, double-buffered
        + 2 * N * (2 * C) * io_itemsize  # in-kernel [x|y] concat
        + N * (2 * C) * 4                # f32 promotion feeding the fused matmul
        + N * (3 * C) * 4                # fused qkv projection result (f32)
        + 2 * N * N * 4                  # one head's scores + probs (f32)
        + 4 * N * C * 4                  # out accumulator + per-head temporaries (f32)
    )
    const_bytes = 2 * (((2 * C) * (3 * C) + 3 * C + C * C + C) * 4 + H * N * N * 4)
    cap = max(1, (vmem_budget_bytes - const_bytes) // per_window)
    # keep >= 4 grid steps where possible: v7x megacore sharding + real pipelining
    cap = min(cap, max(1, B_ // 4))
    return max(1, min(cap, B_))


def cross_window_attention(x, y, wq, bq, wkv, bkv, wproj, bproj,
                           rpb_table, rel_index, num_heads, mask=None, *,
                           io_dtype=jnp.bfloat16,
                           vmem_budget_bytes=28 * 1024 * 1024,
                           vmem_limit_bytes=48 * 1024 * 1024):
    """x, y: (num_windows*B, N, C).  wq: (C, C), wkv: (2C, C), wproj: (C, C).

    Returns (B_, N, C) in io_dtype (bf16 by default; f32 accumulation in-kernel)."""
    if mask is not None:
        raise NotImplementedError("shifted-window mask path not implemented")
    B_, N, C = x.shape
    H = num_heads
    assert C % H == 0, "dim must be divisible by num_heads"
    D = C // H
    scale = float(D) ** -0.5
    f32 = jnp.float32

    # One-time weight prep (tiny): fused block-diagonal projection, scale folded into q.
    wq_t = wq.astype(f32).T * scale                  # (C, C)
    wkv_t = wkv.astype(f32).T                        # (C, 2C)
    wqkv = jnp.zeros((2 * C, 3 * C), f32)
    wqkv = wqkv.at[:C, :C].set(wq_t)
    wqkv = wqkv.at[C:, C:].set(wkv_t)
    bqkv = jnp.concatenate([bq.astype(f32) * scale,
                            bkv.astype(f32)]).reshape(1, 3 * C)
    wp_t = wproj.astype(f32).T                       # (C, C)
    bp = bproj.astype(f32).reshape(1, C)

    # Relative-position-bias gather done once in the wrapper -> dense (H, N, N).
    bias = rpb_table[jnp.asarray(rel_index).reshape(-1)].reshape(N, N, H)
    bias = jnp.transpose(bias, (2, 0, 1)).astype(f32)

    xi = x.astype(io_dtype)
    yi = y.astype(io_dtype)
    itemsize = jnp.dtype(io_dtype).itemsize

    Bt = _choose_block_windows(B_, N, C, H, itemsize, vmem_budget_bytes)
    num_blocks = pl.cdiv(B_, Bt)
    B_pad = num_blocks * Bt
    if B_pad != B_:                                  # pad last block with zero windows
        pad = ((0, B_pad - B_), (0, 0), (0, 0))
        xi = jnp.pad(xi, pad)
        yi = jnp.pad(yi, pad)

    kernel = _make_kernel(H, D)
    out = pl.pallas_call(
        kernel,
        out_shape=jax.ShapeDtypeStruct((B_pad, N, C), io_dtype),
        grid_spec=pltpu.PrefetchScalarGridSpec(
            num_scalar_prefetch=0,
            grid=(num_blocks,),
            in_specs=[
                pl.BlockSpec((Bt, N, C), lambda b: (b, 0, 0)),       # x (query input)
                pl.BlockSpec((Bt, N, C), lambda b: (b, 0, 0)),       # y (key/value input)
                pl.BlockSpec((2 * C, 3 * C), lambda b: (0, 0)),      # blockdiag(Wq*s, Wkv)^T
                pl.BlockSpec((1, 3 * C), lambda b: (0, 0)),          # [bq*s | bkv]
                pl.BlockSpec((C, C), lambda b: (0, 0)),              # Wproj^T
                pl.BlockSpec((1, C), lambda b: (0, 0)),              # bproj
                pl.BlockSpec((H, N, N), lambda b: (0, 0, 0)),        # rel-pos bias
            ],
            out_specs=pl.BlockSpec((Bt, N, C), lambda b: (b, 0, 0)),
        ),
        compiler_params=pltpu.CompilerParams(
            dimension_semantics=("parallel",),       # shard window blocks across v7x TCs
            vmem_limit_bytes=vmem_limit_bytes,
        ),
    )(xi, yi, wqkv, bqkv, wp_t, bp, bias)
    return out[:B_]


def cross_window_attention_ref(x, y, wq, bq, wkv, bkv, wproj, bproj,
                               rpb_table, rel_index, num_heads):
    """Pure-JAX reference mirroring the PyTorch forward (mask=None, eval mode)."""
    B_, N, C = x.shape
    H = num_heads
    D = C // H
    scale = float(D) ** -0.5
    q = jnp.einsum("bnc,dc->bnd", x, wq, precision=_HIGHEST) + bq
    kv = jnp.einsum("bnc,dc->bnd", y, wkv, precision=_HIGHEST) + bkv
    k, v = kv[..., :C], kv[..., C:]
    qh = q.reshape(B_, N, H, D).transpose(0, 2, 1, 3) * scale
    kh = k.reshape(B_, N, H, D).transpose(0, 2, 1, 3)
    vh = v.reshape(B_, N, H, D).transpose(0, 2, 1, 3)
    attn = jnp.einsum("bhnd,bhmd->bhnm", qh, kh, precision=_HIGHEST)
    bias = rpb_table[jnp.asarray(rel_index).reshape(-1)].reshape(N, N, H)
    bias = jnp.transpose(bias, (2, 0, 1))
    attn = attn + bias[None]
    attn = jax.nn.softmax(attn, axis=-1)
    out = jnp.einsum("bhnm,bhmd->bhnd", attn, vh, precision=_HIGHEST)
    out = out.transpose(0, 2, 1, 3).reshape(B_, N, C)
    return jnp.einsum("bnc,dc->bnd", out, wproj, precision=_HIGHEST) + bproj


def make_relative_position_index(window_size):
    """Mirrors the torch buffer construction in Cross_WindowAttention.__init__."""
    Wh, Ww = window_size
    coords_h = np.arange(Wh)
    coords_w = np.arange(Ww)
    coords = np.stack(np.meshgrid(coords_h, coords_w, indexing="ij"))    # (2, Wh, Ww)
    coords_flatten = coords.reshape(2, -1)                               # (2, N)
    relative_coords = coords_flatten[:, :, None] - coords_flatten[:, None, :]
    relative_coords = relative_coords.transpose(1, 2, 0).astype(np.int32)
    relative_coords[:, :, 0] += Wh - 1
    relative_coords[:, :, 1] += Ww - 1
    relative_coords[:, :, 0] *= 2 * Ww - 1
    return relative_coords.sum(-1)                                       # (N, N) int32


if __name__ == "__main__":
    # Small shapes consistent with the module: dim=32, 8x8 window (N=64), 4 heads,
    # batch 2 with 4 windows each -> B_ = num_windows*B = 8 -> Bt=2, grid=(4,).
    B, nW = 2, 4
    window_size = (8, 8)
    Wh, Ww = window_size
    N = Wh * Ww
    C = 32
    num_heads = 4
    B_ = B * nW

    key = jax.random.PRNGKey(0)
    ks = jax.random.split(key, 9)
    x = jax.random.normal(ks[0], (B_, N, C), jnp.float32)
    y = jax.random.normal(ks[1], (B_, N, C), jnp.float32)

    bound = 1.0 / np.sqrt(C)
    wq = jax.random.uniform(ks[2], (C, C), jnp.float32, -bound, bound)
    bq = jax.random.uniform(ks[3], (C,), jnp.float32, -bound, bound)
    wkv = jax.random.uniform(ks[4], (2 * C, C), jnp.float32, -bound, bound)
    bkv = jax.random.uniform(ks[5], (2 * C,), jnp.float32, -bound, bound)
    wproj = jax.random.uniform(ks[6], (C, C), jnp.float32, -bound, bound)
    bproj = jax.random.uniform(ks[7], (C,), jnp.float32, -bound, bound)
    rpb_table = 0.02 * jax.random.normal(
        ks[8], ((2 * Wh - 1) * (2 * Ww - 1), num_heads), jnp.float32)

    rel_index = jnp.asarray(make_relative_position_index(window_size))

    out = cross_window_attention(x, y, wq, bq, wkv, bkv, wproj, bproj,
                                 rpb_table, rel_index, num_heads, mask=None)
    out = jax.block_until_ready(out)

    # Fair reference: same bf16-rounded inputs (the kernel's I/O contract), f32 math.
    xr = x.astype(jnp.bfloat16).astype(jnp.float32)
    yr = y.astype(jnp.bfloat16).astype(jnp.float32)
    ref = cross_window_attention_ref(xr, yr, wq, bq, wkv, bkv, wproj, bproj,
                                     rpb_table, rel_index, num_heads)
    ref = jax.block_until_ready(ref)

    out_f = np.asarray(out.astype(jnp.float32))
    ref_f = np.asarray(ref)
    if not np.allclose(out_f, ref_f, atol=5e-2, rtol=5e-2):
        max_err = float(np.max(np.abs(out_f - ref_f)))
        raise AssertionError(
            f"Pallas Cross_WindowAttention does not match reference (max abs err {max_err})")

    print("KERNEL_OK")
</pallas_src>

<mosaic_0001>
module attributes {stable_mosaic.version = 11 : i64} {
  func.func @kernel(%arg0: i32, %arg1: memref<2x64x32xbf16, #tpu.memory_space<vmem>>, %arg2: memref<2x64x32xbf16, #tpu.memory_space<vmem>>, %arg3: memref<64x96xf32, #tpu.memory_space<vmem>>, %arg4: memref<1x96xf32, #tpu.memory_space<vmem>>, %arg5: memref<32x32xf32, #tpu.memory_space<vmem>>, %arg6: memref<1x32xf32, #tpu.memory_space<vmem>>, %arg7: memref<4x64x64xf32, #tpu.memory_space<vmem>>, %arg8: memref<2x64x32xbf16, #tpu.memory_space<vmem>>) attributes {dimension_semantics = [#tpu.dimension_semantics<parallel>], iteration_bounds = array<i64: 4>, scalar_prefetch = 0 : i64, scratch_operands = 0 : i64, tpu.core_type = #tpu.core_type<tc>, window_params = [{transform_indices = @transform_0, window_bounds = array<i64: 2, 64, 32>}, {transform_indices = @transform_1, window_bounds = array<i64: 2, 64, 32>}, {pipeline_mode = #tpu.pipeline_mode<synchronous>, transform_indices = @transform_2, window_bounds = array<i64: 64, 96>}, {pipeline_mode = #tpu.pipeline_mode<synchronous>, transform_indices = @transform_3, window_bounds = array<i64: 1, 96>}, {pipeline_mode = #tpu.pipeline_mode<synchronous>, transform_indices = @transform_4, window_bounds = array<i64: 32, 32>}, {pipeline_mode = #tpu.pipeline_mode<synchronous>, transform_indices = @transform_5, window_bounds = array<i64: 1, 32>}, {pipeline_mode = #tpu.pipeline_mode<synchronous>, transform_indices = @transform_6, window_bounds = array<i64: 4, 64, 64>}, {transform_indices = @transform_7, window_bounds = array<i64: 2, 64, 32>}]} {
    %c0 = arith.constant 0 : index
    %c0_0 = arith.constant 0 : index
    %c0_1 = arith.constant 0 : index
    %0 = vector.load %arg1[%c0, %c0_0, %c0_1] : memref<2x64x32xbf16, #tpu.memory_space<vmem>>, vector<2x64x32xbf16>
    %c0_2 = arith.constant 0 : index
    %c0_3 = arith.constant 0 : index
    %c0_4 = arith.constant 0 : index
    %1 = vector.load %arg2[%c0_2, %c0_3, %c0_4] : memref<2x64x32xbf16, #tpu.memory_space<vmem>>, vector<2x64x32xbf16>
    %2 = tpu.concatenate %0, %1 in 2 : vector<2x64x32xbf16>, vector<2x64x32xbf16> -> vector<2x64x64xbf16>
    %3 = vector.shape_cast %2 : vector<2x64x64xbf16> to vector<128x64xbf16>
    %c0_5 = arith.constant 0 : index
    %c0_6 = arith.constant 0 : index
    %4 = vector.load %arg3[%c0_5, %c0_6] : memref<64x96xf32, #tpu.memory_space<vmem>>, vector<64x96xf32>
    %cst = arith.constant dense<0.000000e+00> : vector<128x96xf32>
    %5 = tpu.matmul %3, %4, %cst {dimension_numbers = #tpu.dot_dimension_numbers<[1], [0], [0], [1], [0, 0, 1, 1], [], []>} : vector<128x64xbf16>, vector<64x96xf32>, vector<128x96xf32> -> vector<128x96xf32>
    %c0_7 = arith.constant 0 : index
    %c0_8 = arith.constant 0 : index
    %6 = vector.load %arg4[%c0_7, %c0_8] : memref<1x96xf32, #tpu.memory_space<vmem>>, vector<1x96xf32>
    %7 = vector.broadcast %6 : vector<1x96xf32> to vector<128x96xf32>
    %8 = arith.addf %5, %7 : vector<128x96xf32>
    %c0_9 = arith.constant 0 : index
    %c0_10 = arith.constant 0 : index
    %9 = vector.load %arg5[%c0_9, %c0_10] : memref<32x32xf32, #tpu.memory_space<vmem>>, vector<32x32xf32>
    %cst_11 = arith.constant 0.000000e+00 : f32
    %10 = vector.broadcast %cst_11 : f32 to vector<128x32xf32>
    %11 = vector.extract_strided_slice %8 {offsets = [0, 0], sizes = [128, 8], strides = [1, 1]} : vector<128x96xf32> to vector<128x8xf32>
    %12 = vector.shape_cast %11 : vector<128x8xf32> to vector<2x64x8xf32>
    %13 = vector.extract_strided_slice %8 {offsets = [0, 32], sizes = [128, 8], strides = [1, 1]} : vector<128x96xf32> to vector<128x8xf32>
    %14 = vector.shape_cast %13 : vector<128x8xf32> to vector<2x64x8xf32>
    %15 = vector.extract_strided_slice %8 {offsets = [0, 64], sizes = [128, 8], strides = [1, 1]} : vector<128x96xf32> to vector<128x8xf32>
    %16 = vector.shape_cast %15 : vector<128x8xf32> to vector<2x64x8xf32>
    "tpu.trace_start"() <{level = 10 : i32, message = "bnd,bmd->bnm"}> : () -> ()
    %cst_12 = arith.constant dense<0.000000e+00> : vector<2x64x64xf32>
    %17 = tpu.matmul %12, %14, %cst_12 {dimension_numbers = #tpu.dot_dimension_numbers<[2], [2], [1], [1], [0, 0, 0, 1, 1, 1], [0], [0]>} : vector<2x64x8xf32>, vector<2x64x8xf32>, vector<2x64x64xf32> -> vector<2x64x64xf32>
    "tpu.trace_stop"() : () -> ()
    %c0_13 = arith.constant 0 : index
    %c0_14 = arith.constant 0 : index
    %c0_15 = arith.constant 0 : index
    %18 = vector.load %arg7[%c0_13, %c0_14, %c0_15] : memref<4x64x64xf32, #tpu.memory_space<vmem>>, vector<1x64x64xf32>
    %19 = vector.shape_cast %18 : vector<1x64x64xf32> to vector<64x64xf32>
    %20 = vector.shape_cast %19 : vector<64x64xf32> to vector<1x64x64xf32>
    %21 = vector.broadcast %20 : vector<1x64x64xf32> to vector<2x64x64xf32>
    %22 = arith.addf %17, %21 : vector<2x64x64xf32>
    %cst_16 = arith.constant dense<0xFF800000> : vector<2x64xf32>
    %23 = vector.multi_reduction <maximumf>, %22, %cst_16 [2] : vector<2x64x64xf32> to vector<2x64xf32>
    %24 = vector.shape_cast %23 : vector<2x64xf32> to vector<2x64x1xf32>
    %25 = vector.broadcast %24 : vector<2x64x1xf32> to vector<2x64x64xf32>
    %26 = arith.subf %22, %25 : vector<2x64x64xf32>
    %27 = math.exp %26 : vector<2x64x64xf32>
    %cst_17 = arith.constant dense<0.000000e+00> : vector<2x64xf32>
    %28 = vector.multi_reduction <add>, %27, %cst_17 [2] : vector<2x64x64xf32> to vector<2x64xf32>
    %29 = vector.shape_cast %28 : vector<2x64xf32> to vector<2x64x1xf32>
    %30 = tpu.reciprocal %29 {approx = true} : vector<2x64x1xf32> -> vector<2x64x1xf32>
    %31 = vector.broadcast %30 : vector<2x64x1xf32> to vector<2x64x64xf32>
    %32 = arith.mulf %27, %31 : vector<2x64x64xf32>
    "tpu.trace_start"() <{level = 10 : i32, message = "bnm,bmd->bnd"}> : () -> ()
    %cst_18 = arith.constant dense<0.000000e+00> : vector<2x64x8xf32>
    %33 = tpu.matmul %32, %16, %cst_18 {dimension_numbers = #tpu.dot_dimension_numbers<[2], [1], [1], [2], [0, 0, 0, 1, 1, 2], [0], [0]>} : vector<2x64x64xf32>, vector<2x64x8xf32>, vector<2x64x8xf32> -> vector<2x64x8xf32>
    "tpu.trace_stop"() : () -> ()
    %34 = vector.shape_cast %33 : vector<2x64x8xf32> to vector<128x8xf32>
    %35 = vector.extract_strided_slice %9 {offsets = [0, 0], sizes = [8, 32], strides = [1, 1]} : vector<32x32xf32> to vector<8x32xf32>
    %cst_19 = arith.constant dense<0.000000e+00> : vector<128x32xf32>
    %36 = tpu.matmul %34, %35, %cst_19 {dimension_numbers = #tpu.dot_dimension_numbers<[1], [0], [0], [1], [0, 0, 1, 1], [], []>} : vector<128x8xf32>, vector<8x32xf32>, vector<128x32xf32> -> vector<128x32xf32>
    %37 = arith.addf %10, %36 : vector<128x32xf32>
    %38 = vector.extract_strided_slice %8 {offsets = [0, 8], sizes = [128, 8], strides = [1, 1]} : vector<128x96xf32> to vector<128x8xf32>
    %39 = vector.shape_cast %38 : vector<128x8xf32> to vector<2x64x8xf32>
    %40 = vector.extract_strided_slice %8 {offsets = [0, 40], sizes = [128, 8], strides = [1, 1]} : vector<128x96xf32> to vector<128x8xf32>
    %41 = vector.shape_cast %40 : vector<128x8xf32> to vector<2x64x8xf32>
    %42 = vector.extract_strided_slice %8 {offsets = [0, 72], sizes = [128, 8], strides = [1, 1]} : vector<128x96xf32> to vector<128x8xf32>
    %43 = vector.shape_cast %42 : vector<128x8xf32> to vector<2x64x8xf32>
    "tpu.trace_start"() <{level = 10 : i32, message = "bnd,bmd->bnm"}> : () -> ()
    %cst_20 = arith.constant dense<0.000000e+00> : vector<2x64x64xf32>
    %44 = tpu.matmul %39, %41, %cst_20 {dimension_numbers = #tpu.dot_dimension_numbers<[2], [2], [1], [1], [0, 0, 0, 1, 1, 1], [0], [0]>} : vector<2x64x8xf32>, vector<2x64x8xf32>, vector<2x64x64xf32> -> vector<2x64x64xf32>
    "tpu.trace_stop"() : () -> ()
    %c1 = arith.constant 1 : index
    %c0_21 = arith.constant 0 : index
    %c0_22 = arith.constant 0 : index
    %45 = vector.load %arg7[%c1, %c0_21, %c0_22] : memref<4x64x64xf32, #tpu.memory_space<vmem>>, vector<1x64x64xf32>
    %46 = vector.shape_cast %45 : vector<1x64x64xf32> to vector<64x64xf32>
    %47 = vector.shape_cast %46 : vector<64x64xf32> to vector<1x64x64xf32>
    %48 = vector.broadcast %47 : vector<1x64x64xf32> to vector<2x64x64xf32>
    %49 = arith.addf %44, %48 : vector<2x64x64xf32>
    %cst_23 = arith.constant dense<0xFF800000> : vector<2x64xf32>
    %50 = vector.multi_reduction <maximumf>, %49, %cst_23 [2] : vector<2x64x64xf32> to vector<2x64xf32>
    %51 = vector.shape_cast %50 : vector<2x64xf32> to vector<2x64x1xf32>
    %52 = vector.broadcast %51 : vector<2x64x1xf32> to vector<2x64x64xf32>
    %53 = arith.subf %49, %52 : vector<2x64x64xf32>
    %54 = math.exp %53 : vector<2x64x64xf32>
    %cst_24 = arith.constant dense<0.000000e+00> : vector<2x64xf32>
    %55 = vector.multi_reduction <add>, %54, %cst_24 [2] : vector<2x64x64xf32> to vector<2x64xf32>
    %56 = vector.shape_cast %55 : vector<2x64xf32> to vector<2x64x1xf32>
    %57 = tpu.reciprocal %56 {approx = true} : vector<2x64x1xf32> -> vector<2x64x1xf32>
    %58 = vector.broadcast %57 : vector<2x64x1xf32> to vector<2x64x64xf32>
    %59 = arith.mulf %54, %58 : vector<2x64x64xf32>
    "tpu.trace_start"() <{level = 10 : i32, message = "bnm,bmd->bnd"}> : () -> ()
    %cst_25 = arith.constant dense<0.000000e+00> : vector<2x64x8xf32>
    %60 = tpu.matmul %59, %43, %cst_25 {dimension_numbers = #tpu.dot_dimension_numbers<[2], [1], [1], [2], [0, 0, 0, 1, 1, 2], [0], [0]>} : vector<2x64x64xf32>, vector<2x64x8xf32>, vector<2x64x8xf32> -> vector<2x64x8xf32>
    "tpu.trace_stop"() : () -> ()
    %61 = vector.shape_cast %60 : vector<2x64x8xf32> to vector<128x8xf32>
    %62 = vector.extract_strided_slice %9 {offsets = [8, 0], sizes = [8, 32], strides = [1, 1]} : vector<32x32xf32> to vector<8x32xf32>
    %cst_26 = arith.constant dense<0.000000e+00> : vector<128x32xf32>
    %63 = tpu.matmul %61, %62, %cst_26 {dimension_numbers = #tpu.dot_dimension_numbers<[1], [0], [0], [1], [0, 0, 1, 1], [], []>} : vector<128x8xf32>, vector<8x32xf32>, vector<128x32xf32> -> vector<128x32xf32>
    %64 = arith.addf %37, %63 : vector<128x32xf32>
    %65 = vector.extract_strided_slice %8 {offsets = [0, 16], sizes = [128, 8], strides = [1, 1]} : vector<128x96xf32> to vector<128x8xf32>
    %66 = vector.shape_cast %65 : vector<128x8xf32> to vector<2x64x8xf32>
    %67 = vector.extract_strided_slice %8 {offsets = [0, 48], sizes = [128, 8], strides = [1, 1]} : vector<128x96xf32> to vector<128x8xf32>
    %68 = vector.shape_cast %67 : vector<128x8xf32> to vector<2x64x8xf32>
    %69 = vector.extract_strided_slice %8 {offsets = [0, 80], sizes = [128, 8], strides = [1, 1]} : vector<128x96xf32> to vector<128x8xf32>
    %70 = vector.shape_cast %69 : vector<128x8xf32> to vector<2x64x8xf32>
    "tpu.trace_start"() <{level = 10 : i32, message = "bnd,bmd->bnm"}> : () -> ()
    %cst_27 = arith.constant dense<0.000000e+00> : vector<2x64x64xf32>
    %71 = tpu.matmul %66, %68, %cst_27 {dimension_numbers = #tpu.dot_dimension_numbers<[2], [2], [1], [1], [0, 0, 0, 1, 1, 1], [0], [0]>} : vector<2x64x8xf32>, vector<2x64x8xf32>, vector<2x64x64xf32> -> vector<2x64x64xf32>
    "tpu.trace_stop"() : () -> ()
    %c2 = arith.constant 2 : index
    %c0_28 = arith.constant 0 : index
    %c0_29 = arith.constant 0 : index
    %72 = vector.load %arg7[%c2, %c0_28, %c0_29] : memref<4x64x64xf32, #tpu.memory_space<vmem>>, vector<1x64x64xf32>
    %73 = vector.shape_cast %72 : vector<1x64x64xf32> to vector<64x64xf32>
    %74 = vector.shape_cast %73 : vector<64x64xf32> to vector<1x64x64xf32>
    %75 = vector.broadcast %74 : vector<1x64x64xf32> to vector<2x64x64xf32>
    %76 = arith.addf %71, %75 : vector<2x64x64xf32>
    %cst_30 = arith.constant dense<0xFF800000> : vector<2x64xf32>
    %77 = vector.multi_reduction <maximumf>, %76, %cst_30 [2] : vector<2x64x64xf32> to vector<2x64xf32>
    %78 = vector.shape_cast %77 : vector<2x64xf32> to vector<2x64x1xf32>
    %79 = vector.broadcast %78 : vector<2x64x1xf32> to vector<2x64x64xf32>
    %80 = arith.subf %76, %79 : vector<2x64x64xf32>
    %81 = math.exp %80 : vector<2x64x64xf32>
    %cst_31 = arith.constant dense<0.000000e+00> : vector<2x64xf32>
    %82 = vector.multi_reduction <add>, %81, %cst_31 [2] : vector<2x64x64xf32> to vector<2x64xf32>
    %83 = vector.shape_cast %82 : vector<2x64xf32> to vector<2x64x1xf32>
    %84 = tpu.reciprocal %83 {approx = true} : vector<2x64x1xf32> -> vector<2x64x1xf32>
    %85 = vector.broadcast %84 : vector<2x64x1xf32> to vector<2x64x64xf32>
    %86 = arith.mulf %81, %85 : vector<2x64x64xf32>
    "tpu.trace_start"() <{level = 10 : i32, message = "bnm,bmd->bnd"}> : () -> ()
    %cst_32 = arith.constant dense<0.000000e+00> : vector<2x64x8xf32>
    %87 = tpu.matmul %86, %70, %cst_32 {dimension_numbers = #tpu.dot_dimension_numbers<[2], [1], [1], [2], [0, 0, 0, 1, 1, 2], [0], [0]>} : vector<2x64x64xf32>, vector<2x64x8xf32>, vector<2x64x8xf32> -> vector<2x64x8xf32>
    "tpu.trace_stop"() : () -> ()
    %88 = vector.shape_cast %87 : vector<2x64x8xf32> to vector<128x8xf32>
    %89 = vector.extract_strided_slice %9 {offsets = [16, 0], sizes = [8, 32], strides = [1, 1]} : vector<32x32xf32> to vector<8x32xf32>
    %cst_33 = arith.constant dense<0.000000e+00> : vector<128x32xf32>
    %90 = tpu.matmul %88, %89, %cst_33 {dimension_numbers = #tpu.dot_dimension_numbers<[1], [0], [0], [1], [0, 0, 1, 1], [], []>} : vector<128x8xf32>, vector<8x32xf32>, vector<128x32xf32> -> vector<128x32xf32>
    %91 = arith.addf %64, %90 : vector<128x32xf32>
    %92 = vector.extract_strided_slice %8 {offsets = [0, 24], sizes = [128, 8], strides = [1, 1]} : vector<128x96xf32> to vector<128x8xf32>
    %93 = vector.shape_cast %92 : vector<128x8xf32> to vector<2x64x8xf32>
    %94 = vector.extract_strided_slice %8 {offsets = [0, 56], sizes = [128, 8], strides = [1, 1]} : vector<128x96xf32> to vector<128x8xf32>
    %95 = vector.shape_cast %94 : vector<128x8xf32> to vector<2x64x8xf32>
    %96 = vector.extract_strided_slice %8 {offsets = [0, 88], sizes = [128, 8], strides = [1, 1]} : vector<128x96xf32> to vector<128x8xf32>
    %97 = vector.shape_cast %96 : vector<128x8xf32> to vector<2x64x8xf32>
    "tpu.trace_start"() <{level = 10 : i32, message = "bnd,bmd->bnm"}> : () -> ()
    %cst_34 = arith.constant dense<0.000000e+00> : vector<2x64x64xf32>
    %98 = tpu.matmul %93, %95, %cst_34 {dimension_numbers = #tpu.dot_dimension_numbers<[2], [2], [1], [1], [0, 0, 0, 1, 1, 1], [0], [0]>} : vector<2x64x8xf32>, vector<2x64x8xf32>, vector<2x64x64xf32> -> vector<2x64x64xf32>
    "tpu.trace_stop"() : () -> ()
    %c3 = arith.constant 3 : index
    %c0_35 = arith.constant 0 : index
    %c0_36 = arith.constant 0 : index
    %99 = vector.load %arg7[%c3, %c0_35, %c0_36] : memref<4x64x64xf32, #tpu.memory_space<vmem>>, vector<1x64x64xf32>
    %100 = vector.shape_cast %99 : vector<1x64x64xf32> to vector<64x64xf32>
    %101 = vector.shape_cast %100 : vector<64x64xf32> to vector<1x64x64xf32>
    %102 = vector.broadcast %101 : vector<1x64x64xf32> to vector<2x64x64xf32>
    %103 = arith.addf %98, %102 : vector<2x64x64xf32>
    %cst_37 = arith.constant dense<0xFF800000> : vector<2x64xf32>
    %104 = vector.multi_reduction <maximumf>, %103, %cst_37 [2] : vector<2x64x64xf32> to vector<2x64xf32>
    %105 = vector.shape_cast %104 : vector<2x64xf32> to vector<2x64x1xf32>
    %106 = vector.broadcast %105 : vector<2x64x1xf32> to vector<2x64x64xf32>
    %107 = arith.subf %103, %106 : vector<2x64x64xf32>
    %108 = math.exp %107 : vector<2x64x64xf32>
    %cst_38 = arith.constant dense<0.000000e+00> : vector<2x64xf32>
    %109 = vector.multi_reduction <add>, %108, %cst_38 [2] : vector<2x64x64xf32> to vector<2x64xf32>
    %110 = vector.shape_cast %109 : vector<2x64xf32> to vector<2x64x1xf32>
    %111 = tpu.reciprocal %110 {approx = true} : vector<2x64x1xf32> -> vector<2x64x1xf32>
    %112 = vector.broadcast %111 : vector<2x64x1xf32> to vector<2x64x64xf32>
    %113 = arith.mulf %108, %112 : vector<2x64x64xf32>
    "tpu.trace_start"() <{level = 10 : i32, message = "bnm,bmd->bnd"}> : () -> ()
    %cst_39 = arith.constant dense<0.000000e+00> : vector<2x64x8xf32>
    %114 = tpu.matmul %113, %97, %cst_39 {dimension_numbers = #tpu.dot_dimension_numbers<[2], [1], [1], [2], [0, 0, 0, 1, 1, 2], [0], [0]>} : vector<2x64x64xf32>, vector<2x64x8xf32>, vector<2x64x8xf32> -> vector<2x64x8xf32>
    "tpu.trace_stop"() : () -> ()
    %115 = vector.shape_cast %114 : vector<2x64x8xf32> to vector<128x8xf32>
    %116 = vector.extract_strided_slice %9 {offsets = [24, 0], sizes = [8, 32], strides = [1, 1]} : vector<32x32xf32> to vector<8x32xf32>
    %cst_40 = arith.constant dense<0.000000e+00> : vector<128x32xf32>
    %117 = tpu.matmul %115, %116, %cst_40 {dimension_numbers = #tpu.dot_dimension_numbers<[1], [0], [0], [1], [0, 0, 1, 1], [], []>} : vector<128x8xf32>, vector<8x32xf32>, vector<128x32xf32> -> vector<128x32xf32>
    %118 = arith.addf %91, %117 : vector<128x32xf32>
    %c0_41 = arith.constant 0 : index
    %c0_42 = arith.constant 0 : index
    %119 = vector.load %arg6[%c0_41, %c0_42] : memref<1x32xf32, #tpu.memory_space<vmem>>, vector<1x32xf32>
    %120 = vector.broadcast %119 : vector<1x32xf32> to vector<128x32xf32>
    %121 = arith.addf %118, %120 : vector<128x32xf32>
    %122 = vector.shape_cast %121 : vector<128x32xf32> to vector<2x64x32xf32>
    %123 = arith.truncf %122 : vector<2x64x32xf32> to vector<2x64x32xbf16>
    %c0_43 = arith.constant 0 : index
    %c0_44 = arith.constant 0 : index
    %c0_45 = arith.constant 0 : index
    %124 = vector.load %arg8[%c0_43, %c0_44, %c0_45] : memref<2x64x32xbf16, #tpu.memory_space<vmem>>, vector<2x64x32xbf16>
    tpu.vector_store %arg8[%c0_43, %c0_44, %c0_45], %123 {strides = array<i32>} : memref<2x64x32xbf16, #tpu.memory_space<vmem>>, vector<2x64x32xbf16>,
    return
  }
  func.func @transform_0(%arg0: i32) -> (i32, i32, i32) {
    %c0_i32 = arith.constant 0 : i32
    %c0_i32_0 = arith.constant 0 : i32
    %c0_i32_1 = arith.constant 0 : i32
    return %arg0, %c0_i32, %c0_i32_0 : i32, i32, i32
  }
  func.func @transform_1(%arg0: i32) -> (i32, i32, i32) {
    %c0_i32 = arith.constant 0 : i32
    %c0_i32_0 = arith.constant 0 : i32
    %c0_i32_1 = arith.constant 0 : i32
    return %arg0, %c0_i32, %c0_i32_0 : i32, i32, i32
  }
  func.func @transform_2(%arg0: i32) -> (i32, i32) {
    %c0_i32 = arith.constant 0 : i32
    %c0_i32_0 = arith.constant 0 : i32
    %c0_i32_1 = arith.constant 0 : i32
    return %c0_i32, %c0_i32_0 : i32, i32
  }
  func.func @transform_3(%arg0: i32) -> (i32, i32) {
    %c0_i32 = arith.constant 0 : i32
    %c0_i32_0 = arith.constant 0 : i32
    %c0_i32_1 = arith.constant 0 : i32
    return %c0_i32, %c0_i32_0 : i32, i32
  }
  func.func @transform_4(%arg0: i32) -> (i32, i32) {
    %c0_i32 = arith.constant 0 : i32
    %c0_i32_0 = arith.constant 0 : i32
    %c0_i32_1 = arith.constant 0 : i32
    return %c0_i32, %c0_i32_0 : i32, i32
  }
  func.func @transform_5(%arg0: i32) -> (i32, i32) {
    %c0_i32 = arith.constant 0 : i32
    %c0_i32_0 = arith.constant 0 : i32
    %c0_i32_1 = arith.constant 0 : i32
    return %c0_i32, %c0_i32_0 : i32, i32
  }
  func.func @transform_6(%arg0: i32) -> (i32, i32, i32) {
    %c0_i32 = arith.constant 0 : i32
    %c0_i32_0 = arith.constant 0 : i32
    %c0_i32_1 = arith.constant 0 : i32
    %c0_i32_2 = arith.constant 0 : i32
    return %c0_i32, %c0_i32_0, %c0_i32_1 : i32, i32, i32
  }
  func.func @transform_7(%arg0: i32) -> (i32, i32, i32) {
    %c0_i32 = arith.constant 0 : i32
    %c0_i32_0 = arith.constant 0 : i32
    %c0_i32_1 = arith.constant 0 : i32
    return %arg0, %c0_i32, %c0_i32_0 : i32, i32, i32
  }
}

</mosaic_0001>

<bundles_post_ra>
// kernel: tpu_custom_call.1
= control target key start
LH: loop header
LB: loop body
LE: loop exit
PB: predicated region body
PF: predicated region fallthrough
CT: control target
= control target key end

     0   :  { %s4339_s24 = smov 0   ;;  %s6361_s0 = inlined_call_operand.vmem [shape: bf16[8,64,32], index: 0, kind: input, shape index: {}]   ;;  %s6362_s1 = inlined_call_operand.vmem [shape: bf16[8,64,32], index: 1, kind: input, shape index: {}]   ;;  %s6363_s2 = inlined_call_operand.vmem [shape: f32[64,96], index: 2, kind: input, shape index: {}]   ;;  %s6364_s3 = inlined_call_operand.vmem [shape: f32[1,96], index: 3, kind: input, shape index: {}]   ;;  %s6365_s4 = inlined_call_operand.vmem [shape: f32[32,32], index: 4, kind: input, shape index: {}]   ;;  %s6366_s5 = inlined_call_operand.vmem [shape: f32[1,32], index: 5, kind: input, shape index: {}]   ;;  %s6367_s6 = inlined_call_operand.vmem [shape: f32[4,64,64], index: 6, kind: input, shape index: {}]   ;;  %s6368_s7 = inlined_call_operand.vmem [shape: bf16[8,64,32], index: 7, kind: output, shape index: {}]  }
   0x1 LB: > { %s3438_s25 = sadd.s32 4294967295, %s4285_s24   ;;  %p3442_p0 = scmp.ge.s32.totalorder %s4285_s24, 1  ;;  %s4285_s24 = sphi %s4339_s24, %s17_s24  }
   0x2   : > { %p251_p1 = scmp.lt.s32.totalorder %s4285_s24, 5 }
   0x4   : > { %p252_p2 = pnand %p3442_p0, %p251_p1 }
   0x6   : > { %255 = sbr.rel (%p252_p2) target bundleno = 2582 (0xa16), region = 48 }
   0xb   : > { %s3443_s26 = sshll.u32 %s3438_s25, 1  ;;  %v472_v0 = vld [vmem:[%s6363_s2 + $0x38] sm:$0xff]  ;;  %v471_v1 = vld [vmem:[%s6363_s2 + $0x30] sm:$0xff]  ;;  %v470_v2 = vld [vmem:[%s6363_s2 + $0x28] sm:$0xff]  ;;  %s4287_s18 = smov 32   ;;  %vm440_vm0 = vcmask 261120  }
   0xc   : > { %p292_p3 = scmp.lt.s32.totalorder %s3443_s26, 7  ;;  %502 = vmatpush.msra.mxu0 %v472_v0  ;;  %v469_v3 = vld [vmem:[%s6363_s2 + $0x20] sm:$0xff]  ;;  %v468_v6 = vld [vmem:[%s6363_s2 + $0x18] sm:$0xff]  ;;  %v467_v8 = vld [vmem:[%s6363_s2 + $0x10] sm:$0xff]  ;;  %vm477_vm1 = vcmask 523264   ;;  %s4288_s8 = smov 120  }
   0xd   : > { %v466_v9 = vld [vmem:[%s6363_s2 + $0x8] sm:$0xff]  ;;  %v465_v14 = vld [vmem:[%s6363_s2] sm:$0xff]  ;;  %s4289_s9 = smov 88   ;;  %s4290_s10 = smov 96   ;;  %vm587_vm2 = vcmask 64512   ;;  %vm3351_vm3 = vcmask 257024  }
   0xe   : > { %s6518_s26 = smov (!%p292_p3, %s3443_s26), 7  ;;  %503 = vmatpush.msra.mxu0 %v471_v1  ;;  %v4410_v40 = vld [vmem:[%s6364_s3] ss:$0 sm:$0xff]  ;;  %s4291_s11 = smov 56  }
   0xf   : > { %s4359_s12 = sshll.u32 %s6518_s26, 5  ;;  %s4292_s13 = smov 64  }
  0x10   : > { %504 = vmatpush.msra.mxu0 %v470_v2  ;;  %s303_s15 = scalar_lea.vmem %s6362_s1, %s4359_s12  ;;  %s4381_s28 = scalar_lea.vmem %s6361_s0, %s4359_s12 }
  0x11   : > { %v3817_v4 = vld [vmem:[%s303_s15] sm:$0xff]  ;;  %v3819_v5 = vld [vmem:[%s303_s15 + $0x10] sm:$0xff]  ;;  %v3818_v10 = vld [vmem:[%s303_s15 + $0x8] sm:$0xff]  ;;  %s4293_s14 = smov 80   ;;  %s4295_s23 = smov 72  }
  0x12   : > { %505 = vmatpush.msra.mxu0 %v469_v3  ;;  %v3821_v7 = vld [vmem:[%s303_s15 + $0x20] sm:$0xff]  ;;  %424 = vrot.lane.b32.xlu0 %v3817_v4, %s4287_s18  ;;  %v3820_v11 = vld [vmem:[%s303_s15 + $0x18] sm:$0xff]  ;;  %v3822_v12 = vld [vmem:[%s303_s15 + $0x28] sm:$0xff]  ;;  %s4296_s25 = smov 48   ;;  %s4298_s27 = smov 40  }
  0x13   : > { %428 = vrot.lane.b32.xlu1 %v3819_v5, %s4287_s18  ;;  %432 = vrot.lane.b32.xlu2 %v3821_v7, %s4287_s18  ;;  %v3823_v13 = vld [vmem:[%s303_s15 + $0x30] sm:$0xff]  ;;  %v3824_v15 = vld [vmem:[%s303_s15 + $0x38] sm:$0xff]  ;;  %s4294_s15 = smov 112  }
  0x14   : > { %506 = vmatpush.msra.mxu0 %v468_v6  ;;  %v3809_v16 = vld [vmem:[%s4381_s28] sm:$0xff]  ;;  %v3810_v19 = vld [vmem:[%s4381_s28 + $0x8] sm:$0xff]  ;;  %v3811_v22 = vld [vmem:[%s4381_s28 + $0x10] sm:$0xff] }
  0x15   : > { %v3812_v25 = vld [vmem:[%s4381_s28 + $0x18] sm:$0xff]  ;;  %v3813_v28 = vld [vmem:[%s4381_s28 + $0x20] sm:$0xff]  ;;  %v3814_v31 = vld [vmem:[%s4381_s28 + $0x28] sm:$0xff] }
  0x16   : > { %507 = vmatpush.msra.mxu0 %v467_v8  ;;  %v3815_v34 = vld [vmem:[%s4381_s28 + $0x30] sm:$0xff]  ;;  %v3816_v37 = vld [vmem:[%s4381_s28 + $0x38] sm:$0xff] }
  0x18   : > { %508 = vmatpush.msra.mxu0 %v466_v9 }
  0x1a   : > { %426 = vrot.lane.b32.xlu0 %v3818_v10, %s4287_s18  ;;  %509 = vmatpush.msra.mxu0 %v465_v14 }
  0x1b   : > { %430 = vrot.lane.b32.xlu1 %v3820_v11, %s4287_s18  ;;  %434 = vrot.lane.b32.xlu2 %v3822_v12, %s4287_s18 }
  0x22   : > { %436 = vrot.lane.b32.xlu0 %v3823_v13, %s4287_s18 }
  0x23   : > { %438 = vrot.lane.b32.xlu1 %v3824_v15, %s4287_s18 }
  0x6d   : > { %v433_v29 = vpop.permute.xlu2 %432 }
  0x6e   : > { %v455_v30 = vsel %vm440_vm0, %v3813_v28, %v433_v29 }
  0x75   : > { %v435_v32 = vpop.permute.xlu2 %434 }
  0x76   : > { %v458_v33 = vsel %vm440_vm0, %v3814_v31, %v435_v32 }
  0x84   : > { %v425_v17 = vpop.permute.xlu0 %424 }
  0x85   : > { %v443_v18 = vsel %vm440_vm0, %v3809_v16, %v425_v17  ;;  %v429_v23 = vpop.permute.xlu1 %428 }
  0x86   : > { %3516 = vmatmul.msk.bf16.vlgmr.msra.gmra.mxu0 %vm477_vm1, %v443_v18  ;;  %v449_v24 = vsel %vm440_vm0, %v3811_v22, %v429_v23 }
  0x8c   : > { %v427_v20 = vpop.permute.xlu0 %426 }
  0x8d   : > { %v446_v21 = vsel %vm440_vm0, %v3810_v19, %v427_v20  ;;  %v431_v26 = vpop.permute.xlu1 %430 }
  0x8e   : > { %v452_v27 = vsel %vm440_vm0, %v3812_v25, %v431_v26 }
  0x94   : > { %v437_v35 = vpop.permute.xlu0 %436 }
  0x95   : > { %v461_v36 = vsel %vm440_vm0, %v3815_v34, %v437_v35  ;;  %v439_v38 = vpop.permute.xlu1 %438 }
  0x96   : > { %3517 = vmatmul.msk.bf16.gmra.mxu0 %vm477_vm1, %v446_v21  ;;  %v464_v39 = vsel %vm440_vm0, %v3816_v37, %v439_v38 }
  0xa6   : > { %3518 = vmatmul.msk.bf16.gmra.mxu0 %vm477_vm1, %v449_v24 }
  0xb6   : > { %3519 = vmatmul.msk.bf16.gmra.mxu0 %vm477_vm1, %v452_v27 }
  0xc6   : > { %3520 = vmatmul.msk.bf16.gmra.mxu0 %vm477_vm1, %v455_v30 }
  0xd6   : > { %3521 = vmatmul.msk.bf16.gmra.mxu0 %vm477_vm1, %v458_v33 }
  0xe6   : > { %3522 = vmatmul.msk.bf16.gmra.mxu0 %vm477_vm1, %v461_v36 }
  0xf6   : > { %3523 = vmatmul.msk.bf16.gmra.mxu0 %vm477_vm1, %v464_v39 }
 0x103   : > { %v511_v41 = vpop.f32.mrf.mxu0 }
 0x104   : > { %v4413_v42 = vadd.f32 %v4410_v40, %v511_v41 }
 0x106   : > { %6417 = vst [vmem:[#allocation2_spill] sm:$0xff] %v4413_v42  ;;  %1121 = vrot.lane.b32.xlu2 %v4413_v42, %s4288_s8  ;;  %1137 = vrot.lane.b32.xlu1 %v4413_v42, %s4289_s9 }
 0x107   : > { %571 = vrot.lane.b32.xlu0 %v4413_v42, %s4290_s10 }
 0x10b   : > { %v513_v43 = vpop.f32.mrf.mxu0 }
 0x10c   : > { %v4422_v44 = vadd.f32 %v4410_v40, %v513_v43 }
 0x10e   : > { %6418 = vst [vmem:[#allocation3_spill] sm:$0xff] %v4422_v44  ;;  %573 = vrot.lane.b32.xlu2 %v4422_v44, %s4290_s10  ;;  %v4433_v47 = vpack.i.bf16 %v4413_v42, %v4422_v44 }
 0x10f   : > { %1139 = vrot.lane.b32.xlu0 %v4422_v44, %s4289_s9 }
 0x110   : > { %6420 = vst [vmem:[#allocation5_spill] sm:$0xff] %v4433_v47 }
 0x113   : > { %v516_v45 = vpop.f32.mrf.mxu0 }
 0x114   : > { %v4429_v46 = vadd.f32 %v4410_v40, %v516_v45 }
 0x116   : > { %6419 = vst [vmem:[#allocation4_spill] sm:$0xff] %v4429_v46  ;;  %3867 = vrot.lane.b32.xlu2 %v4433_v47, %s4291_s11  ;;  %575 = vrot.lane.b32.xlu1 %v4429_v46, %s4290_s10 }
 0x117   : > { %1123 = vrot.lane.b32.xlu0 %v4422_v44, %s4288_s8 }
 0x11b   : > { %v518_v48 = vpop.f32.mrf.mxu0 }
 0x11c   : > { %v4448_v49 = vadd.f32 %v4410_v40, %v518_v48 }
 0x11e   : > { %1141 = vrot.lane.b32.xlu2 %v4429_v46, %s4289_s9  ;;  %1125 = vrot.lane.b32.xlu1 %v4429_v46, %s4288_s8  ;;  %6421 = vst [vmem:[#allocation6_spill] sm:$0xff] %v4448_v49  ;;  %v4461_v52 = vpack.i.bf16 %v4429_v46, %v4448_v49 }
 0x11f   : > { %3862 = vrot.lane.b32.xlu0 %v4433_v47, %s4292_s13 }
 0x120   : > { %6423 = vst [vmem:[#allocation8_spill] sm:$0xff] %v4461_v52 }
 0x123   : > { %v521_v50 = vpop.f32.mrf.mxu0 }
 0x124   : > { %v4457_v51 = vadd.f32 %v4410_v40, %v521_v50 }
 0x126   : > { %1127 = vrot.lane.b32.xlu2 %v4448_v49, %s4288_s8  ;;  %1143 = vrot.lane.b32.xlu1 %v4448_v49, %s4289_s9  ;;  %6422 = vst [vmem:[#allocation7_spill] sm:$0xff] %v4457_v51 }
 0x127   : > { %577 = vrot.lane.b32.xlu0 %v4448_v49, %s4290_s10 }
 0x12b   : > { %v523_v53 = vpop.f32.mrf.mxu0 }
 0x12c   : > { %v4470_v54 = vadd.f32 %v4410_v40, %v523_v53 }
 0x12e   : > { %579 = vrot.lane.b32.xlu2 %v4457_v51, %s4290_s10  ;;  %3877 = vrot.lane.b32.xlu1 %v4461_v52, %s4291_s11  ;;  %6424 = vst [vmem:[#allocation9_spill] sm:$0xff] %v4470_v54  ;;  %v4483_v57 = vpack.i.bf16 %v4457_v51, %v4470_v54 }
 0x12f   : > { %3872 = vrot.lane.b32.xlu0 %v4461_v52, %s4292_s13 }
 0x130   : > { %6426 = vst [vmem:[#allocation11_spill] sm:$0xff] %v4483_v57 }
 0x133   : > { %v526_v55 = vpop.f32.mrf.mxu0 }
 0x134   : > { %v4479_v56 = vadd.f32 %v4410_v40, %v526_v55 }
 0x136   : > { %1129 = vrot.lane.b32.xlu2 %v4457_v51, %s4288_s8  ;;  %581 = vrot.lane.b32.xlu1 %v4470_v54, %s4290_s10  ;;  %6425 = vst [vmem:[#allocation10_spill] sm:$0xff] %v4479_v56 }
 0x137   : > { %1145 = vrot.lane.b32.xlu0 %v4457_v51, %s4289_s9 }
 0x13b   : > { %v528_v58 = vpop.f32.mrf.mxu0 }
 0x13c   : > { %v4498_v59 = vadd.f32 %v4410_v40, %v528_v58 }
 0x13e   : > { %1147 = vrot.lane.b32.xlu2 %v4470_v54, %s4289_s9  ;;  %1149 = vrot.lane.b32.xlu1 %v4479_v56, %s4289_s9  ;;  %6427 = vst [vmem:[#allocation12_spill] sm:$0xff] %v4498_v59  ;;  %v4502_v61 = vpack.i.bf16 %v4479_v56, %v4498_v59 }
 0x13f   : > { %3882 = vrot.lane.b32.xlu0 %v4483_v57, %s4292_s13 }
 0x140   : > { %6428 = vst [vmem:[#allocation13_spill] sm:$0xff] %v4502_v61 }
 0x143   : > { %v531_v60 = vpop.f32.mrf.mxu0 }
 0x144   : > { %v4511_v62 = vadd.f32 %v4410_v40, %v531_v60 }
 0x146   : > { %1131 = vrot.lane.b32.xlu2 %v4470_v54, %s4288_s8  ;;  %1948 = vrot.lane.b32.xlu1 %v4479_v56, %s4293_s14 }
 0x147   : > { %3887 = vrot.lane.b32.xlu0 %v4483_v57, %s4291_s11 }
 0x14b   : > { %v533_v63 = vpop.f32.mrf.mxu0 }
 0x14c   : > { %v4520_v0 = vadd.f32 %v4410_v40, %v533_v63 }
 0x14e   : > { %1133 = vrot.lane.b32.xlu2 %v4479_v56, %s4288_s8  ;;  %3897 = vrot.lane.b32.xlu1 %v4502_v61, %s4291_s11  ;;  %v4571_v13 = vpack.i.bf16 %v4511_v62, %v4520_v0 }
 0x14f   : > { %1946 = vrot.lane.b32.xlu0 %v4470_v54, %s4293_s14 }
 0x150   : > { %6431 = vst [vmem:[#allocation16_spill] sm:$0xff] %v4571_v13 }
 0x153   : > { %v536_v1 = vpop.f32.mrf.mxu0 }
 0x154   : > { %v4531_v3 = vadd.f32 %v4410_v40, %v536_v1 }
 0x156   : > { %585 = vrot.lane.b32.xlu2 %v4498_v59, %s4290_s10  ;;  %1242 = vrot.lane.b32.xlu1 %v4511_v62, %s4289_s9 }
 0x157   : > { %583 = vrot.lane.b32.xlu0 %v4479_v56, %s4290_s10 }
 0x15b   : > { %v538_v5 = vpop.f32.mrf.mxu0 }
 0x15c   : > { %v4542_v6 = vadd.f32 %v4410_v40, %v538_v5 }
 0x15e   : > { %1135 = vrot.lane.b32.xlu2 %v4498_v59, %s4288_s8  ;;  %671 = vrot.lane.b32.xlu1 %v4520_v0, %s4290_s10  ;;  %6429 = vst [vmem:[#allocation14_spill] sm:$0xff] %v4542_v6  ;;  %v4554_v8 = vpack.i.bf16 %v4531_v3, %v4542_v6 }
 0x15f   : > { %1151 = vrot.lane.b32.xlu0 %v4498_v59, %s4289_s9 }
 0x160   : > { %v4528_v2 = vpop.permute.xlu2 %1121  ;;  %6430 = vst [vmem:[#allocation15_spill] sm:$0xff] %v4554_v8 }
 0x163   : > { %v541_v11 = vpop.f32.mrf.mxu0 }
 0x164   : > { %v4567_v12 = vadd.f32 %v4410_v40, %v541_v11 }
 0x166   : > { %1950 = vrot.lane.b32.xlu2 %v4498_v59, %s4293_s14  ;;  %1246 = vrot.lane.b32.xlu1 %v4531_v3, %s4289_s9 }
 0x167   : > { %3892 = vrot.lane.b32.xlu0 %v4502_v61, %s4292_s13 }
 0x168   : > { %v4539_v4 = vpop.permute.xlu2 %573 }
 0x16b   : > { %v543_v20 = vpop.f32.mrf.mxu0 }
 0x16c   : > { %v4610_v24 = vadd.f32 %v4410_v40, %v543_v20 }
 0x16e   : > { %669 = vrot.lane.b32.xlu2 %v4511_v62, %s4290_s10  ;;  %1232 = vrot.lane.b32.xlu1 %v4542_v6, %s4288_s8  ;;  %6432 = vst [vmem:[#allocation17_spill] sm:$0xff] %v4610_v24  ;;  %v4652_v38 = vpack.i.bf16 %v4567_v12, %v4610_v24 }
 0x16f   : > { %1226 = vrot.lane.b32.xlu0 %v4511_v62, %s4288_s8 }
 0x170   : > { %v4550_v7 = vpop.permute.xlu2 %3867  ;;  %6435 = vst [vmem:[#allocation20_spill] sm:$0xff] %v4652_v38 }
 0x173   : > { %v546_v25 = vpop.f32.mrf.mxu0 }
 0x174   : > { %v4623_v29 = vadd.f32 %v4410_v40, %v546_v25 }
 0x176   : > { %1228 = vrot.lane.b32.xlu2 %v4520_v0, %s4288_s8  ;;  %3917 = vrot.lane.b32.xlu1 %v4554_v8, %s4291_s11  ;;  %6433 = vst [vmem:[#allocation18_spill] sm:$0xff] %v4623_v29 }
 0x177   : > { %1244 = vrot.lane.b32.xlu0 %v4520_v0, %s4289_s9 }
 0x178   : > { %v4562_v9 = vpop.permute.xlu2 %1141  ;;  %v4579_v14 = vpop.permute.xlu1 %1137 }
 0x179   : > { %v4564_v10 = vpop.permute.xlu0 %571 }
 0x17b   : > { %v548_v33 = vpop.f32.mrf.mxu0 }
 0x17c   : > { %v4638_v34 = vadd.f32 %v4410_v40, %v548_v33 }
 0x17e   : > { %3902 = vrot.lane.b32.xlu2 %v4571_v13, %s4292_s13  ;;  %677 = vrot.lane.b32.xlu1 %v4567_v12, %s4290_s10  ;;  %6434 = vst [vmem:[#allocation19_spill] sm:$0xff] %v4638_v34  ;;  %v4691_v58 = vpack.i.bf16 %v4623_v29, %v4638_v34 }
 0x17f   : > { %3907 = vrot.lane.b32.xlu0 %v4571_v13, %s4291_s11 }
 0x180   : > { %v4581_v15 = vpop.permute.xlu2 %1127  ;;  %6436 = vst [vmem:[#allocation21_spill] sm:$0xff] %v4691_v58 }
 0x181   : > { %v4583_v16 = vpop.permute.xlu0 %1139 }
 0x186   : > { %1230 = vrot.lane.b32.xlu2 %v4531_v3, %s4288_s8  ;;  %1250 = vrot.lane.b32.xlu1 %v4567_v12, %s4289_s9 }
 0x187   : > { %673 = vrot.lane.b32.xlu0 %v4531_v3, %s4290_s10 }
 0x188   : > { %v4591_v17 = vpop.permute.xlu2 %579  ;;  %v4593_v18 = vpop.permute.xlu1 %575 }
 0x189   : > { %v4595_v19 = vpop.permute.xlu0 %1123 }
 0x18e   : > { %675 = vrot.lane.b32.xlu2 %v4542_v6, %s4290_s10  ;;  %1940 = vrot.lane.b32.xlu1 %v4429_v46, %s4293_s14 }
 0x18f   : > { %1248 = vrot.lane.b32.xlu0 %v4542_v6, %s4289_s9 }
 0x190   : > { %v4603_v21 = vpop.permute.xlu2 %1129  ;;  %v4605_v22 = vpop.permute.xlu1 %1125 }
 0x191   : > { %v4607_v23 = vpop.permute.xlu0 %3862 }
 0x196   : > { %3912 = vrot.lane.b32.xlu2 %v4554_v8, %s4292_s13  ;;  %1920 = vrot.lane.b32.xlu1 %v4413_v42, %s4294_s15 }
 0x197   : > { %679 = vrot.lane.b32.xlu0 %v4610_v24, %s4290_s10 }
 0x198   : > { %v4618_v26 = vpop.permute.xlu2 %1147  ;;  %v4620_v27 = vpop.permute.xlu1 %1143 }
 0x199   : > { %v578_v28 = vpop.permute.xlu0 %577 }
 0x19e   : > { %1234 = vrot.lane.b32.xlu2 %v4567_v12, %s4288_s8  ;;  %1254 = vrot.lane.b32.xlu1 %v4623_v29, %s4289_s9 }
 0x19f   : > { %1252 = vrot.lane.b32.xlu0 %v4610_v24, %s4289_s9 }
 0x1a0   : > { %v4631_v30 = vpop.permute.xlu2 %1131  ;;  %v4633_v31 = vpop.permute.xlu1 %3877 }
 0x1a1   : > { %v4635_v32 = vpop.permute.xlu0 %3872 }
 0x1a6   : > { %681 = vrot.lane.b32.xlu2 %v4623_v29, %s4290_s10  ;;  %683 = vrot.lane.b32.xlu1 %v4638_v34, %s4290_s10 }
 0x1a7   : > { %1236 = vrot.lane.b32.xlu0 %v4610_v24, %s4288_s8 }
 0x1a8   : > { %v4646_v35 = vpop.permute.xlu2 %1133  ;;  %v582_v36 = vpop.permute.xlu1 %581 }
 0x1a9   : > { %v4648_v37 = vpop.permute.xlu0 %1145 }
 0x1ae   : > { %1944 = vrot.lane.b32.xlu2 %v4457_v51, %s4293_s14  ;;  %1926 = vrot.lane.b32.xlu1 %v4448_v49, %s4294_s15 }
 0x1af   : > { %3922 = vrot.lane.b32.xlu0 %v4652_v38, %s4292_s13 }
 0x1b0   : > { %v586_v39 = vpop.permute.xlu2 %585  ;;  %v4660_v40 = vpop.permute.xlu1 %1149 }
 0x1b1   : > { %v3883_v41 = vpop.permute.xlu0 %3882  ;;  %3524 = vmatpush.xpose.msk.msra.mxu1 %vm587_vm2, %v586_v39 }
 0x1b6   : > { %1938 = vrot.lane.b32.xlu2 %v4422_v44, %s4293_s14  ;;  %1932 = vrot.lane.b32.xlu1 %v4479_v56, %s4294_s15 }
 0x1b7   : > { %3927 = vrot.lane.b32.xlu0 %v4652_v38, %s4291_s11 }
 0x1b8   : > { %v4669_v43 = vpop.permute.xlu2 %1135  ;;  %v4671_v45 = vpop.permute.xlu1 %1948 }
 0x1b9   : > { %v4673_v48 = vpop.permute.xlu0 %3887 }
 0x1be   : > { %1922 = vrot.lane.b32.xlu2 %v4422_v44, %s4294_s15  ;;  %2053 = vrot.lane.b32.xlu1 %v4623_v29, %s4293_s14 }
 0x1bf   : > { %1942 = vrot.lane.b32.xlu0 %v4448_v49, %s4293_s14 }
 0x1c0   : > { %v4681_v50 = vpop.permute.xlu2 %1950  ;;  %v4683_v53 = vpop.permute.xlu1 %3897 }
 0x1c1   : > { %v4685_v55 = vpop.permute.xlu0 %1946  ;;  %3668 = vmatpush.xpose.msk.msrb.mxu0 %vm587_vm2, %v4681_v50 }
 0x1c5   : > { %3669 = vmatpush.xpose.msk.msrb.mxu0 %vm587_vm2, %v4671_v45 }
 0x1c6   : > { %1238 = vrot.lane.b32.xlu2 %v4623_v29, %s4288_s8  ;;  %3932 = vrot.lane.b32.xlu1 %v4691_v58, %s4292_s13  ;;  %s6257_s13 = scalar_lea.vmem %s6368_s7, %s4359_s12 }
 0x1c7   : > { %1936 = vrot.lane.b32.xlu0 %v4413_v42, %s4293_s14 }
 0x1c8   : > { %v4701_v60 = vpop.permute.xlu2 %669  ;;  %v4703_v63 = vpop.permute.xlu1 %1242 }
 0x1c9   : > { %v584_v1 = vpop.permute.xlu0 %583  ;;  %3670 = vmatpush.xpose.msk.msrb.mxu0 %vm587_vm2, %v4685_v55 }
 0x1ca   : > { %3525 = vmatpush.xpose.msk.msra.mxu1 %vm587_vm2, %v584_v1 }
 0x1ce   : > { %3526 = vmatpush.xpose.msk.msra.mxu1 %vm587_vm2, %v582_v36  ;;  %1928 = vrot.lane.b32.xlu2 %v4457_v51, %s4294_s15 }
 0x1cf   : > { %1924 = vrot.lane.b32.xlu0 %v4429_v46, %s4294_s15 }
 0x1d0   : > { %v4713_v5 = vpop.permute.xlu2 %1228  ;;  %v4715_v11 = vpop.permute.xlu1 %671 }
 0x1d1   : > { %v1152_v20 = vpop.permute.xlu0 %1151 }
 0x1d2   : > { %3527 = vmatpush.xpose.msk.msra.mxu1 %vm587_vm2, %v4591_v17  ;;  %v3884_v17 = vunpack.i.l.bf16 %v3883_v41 }
 0x1d6   : > { %3528 = vmatpush.xpose.msk.msra.mxu1 %vm587_vm2, %v578_v28  ;;  %1934 = vrot.lane.b32.xlu2 %v4498_v59, %s4294_s15 }
 0x1d7   : > { %1930 = vrot.lane.b32.xlu0 %v4470_v54, %s4294_s15 }
 0x1d8   : > { %v4724_v25 = vpop.permute.xlu2 %3902  ;;  %v4726_v33 = vpop.permute.xlu1 %1246 }
 0x1d9   : > { %v3893_v36 = vpop.permute.xlu0 %3892 }
 0x1da   : > { %3529 = vmatpush.xpose.msk.msra.mxu1 %vm587_vm2, %v4593_v18  ;;  %v3894_v39 = vunpack.i.l.bf16 %v3893_v36  ;;  %v3895_v1 = vunpack.i.h.bf16 %v3893_v36  ;;  %v3885_v18 = vunpack.i.h.bf16 %v3883_v41  ;;  %v3875_v36 = vunpack.i.h.bf16 %v4635_v32 }
 0x1dc   : > { %990 = vmatpush.msra.mxu3 %v3894_v39  ;;  %v3864_v39 = vunpack.i.l.bf16 %v4607_v23 }
 0x1de   : > { %3530 = vmatpush.xpose.msk.msra.mxu1 %vm587_vm2, %v4539_v4  ;;  %991 = vmatpush.msra.mxu3 %v3895_v1  ;;  %v3874_v4 = vunpack.i.l.bf16 %v4635_v32  ;;  %v3865_v32 = vunpack.i.h.bf16 %v4607_v23 }
 0x1df   : > { %2051 = vrot.lane.b32.xlu2 %v4610_v24, %s4293_s14  ;;  %1256 = vrot.lane.b32.xlu0 %v4638_v34, %s4289_s9 }
 0x1e0   : > { %992 = vmatpush.msra.mxu3 %v3884_v17  ;;  %v4736_v28 = vpop.permute.xlu2 %1230  ;;  %v4738_v13 = vpop.permute.xlu1 %1232 }
 0x1e1   : > { %v4740_v8 = vpop.permute.xlu0 %1226 }
 0x1e2   : > { %3531 = vmatpush.xpose.msk.msra.mxu1 %vm587_vm2, %v4564_v10  ;;  %993 = vmatpush.msra.mxu3 %v3885_v18 }
 0x1e4   : > { %994 = vmatpush.msra.mxu3 %v3874_v4 }
 0x1e5   : > { %3532 = vmatmul.msk.f32.vlgmr.msra.gmra.mxu1 %vm587_vm2, %v4413_v42 }
 0x1e6   : > { %3580 = vmatpush.xpose.msk.msrb.mxu1 %vm587_vm2, %v1152_v20  ;;  %995 = vmatpush.msra.mxu3 %v3875_v36 }
 0x1e7   : > { %3937 = vrot.lane.b32.xlu2 %v4691_v58, %s4291_s11  ;;  %1240 = vrot.lane.b32.xlu0 %v4638_v34, %s4288_s8 }
 0x1e8   : > { %996 = vmatpush.msra.mxu3 %v3864_v39  ;;  %v676_v10 = vpop.permute.xlu2 %675  ;;  %v4756_v41 = vpop.permute.xlu1 %3917 }
 0x1e9   : > { %v4759_v20 = vpop.permute.xlu0 %1244 }
 0x1ea   : > { %3581 = vmatpush.xpose.msk.msrb.mxu1 %vm587_vm2, %v4660_v40  ;;  %997 = vmatpush.msra.mxu3 %v3865_v32 }
 0x1ed   : > { %3533 = vmatmul.msk.f32.gmra.mxu1 %vm587_vm2, %v4422_v44 }
 0x1ee   : > { %3582 = vmatpush.xpose.msk.msrb.mxu1 %vm587_vm2, %v4618_v26 }
 0x1ef   : > { %2055 = vrot.lane.b32.xlu0 %v4638_v34, %s4293_s14 }
 0x1f0   : > { %v4769_v40 = vpop.permute.xlu2 %3912  ;;  %v678_v1 = vpop.permute.xlu1 %677 }
 0x1f1   : > { %v4771_v17 = vpop.permute.xlu0 %3907 }
 0x1f2   : > { %3583 = vmatpush.xpose.msk.msrb.mxu1 %vm587_vm2, %v4648_v37 }
 0x1f5   : > { %3534 = vmatmul.msk.f32.gmra.mxu1 %vm587_vm2, %v4429_v46 }
 0x1f6   : > { %3584 = vmatpush.xpose.msk.msrb.mxu1 %vm587_vm2, %v4620_v27 }
 0x1f8   : > { %v4779_v23 = vpop.permute.xlu2 %1234  ;;  %v4781_v26 = vpop.permute.xlu1 %1250 }
 0x1f9   : > { %v674_v18 = vpop.permute.xlu0 %673 }
 0x1fa   : > { %3585 = vmatpush.xpose.msk.msrb.mxu1 %vm587_vm2, %v4562_v9  ;;  %v552_v9 = vld [vmem:[%s6365_s4 + $0x8] sm:$0xff] }
 0x1fd   : > { %3535 = vmatmul.msk.f32.gmra.mxu1 %vm587_vm2, %v4448_v49 }
 0x1fe   : > { %3586 = vmatpush.xpose.msk.msrb.mxu1 %vm587_vm2, %v4583_v16 }
 0x200   : > { %v682_v27 = vpop.permute.xlu2 %681  ;;  %v1941_v37 = vpop.permute.xlu1 %1940 }
 0x201   : > { %v4789_v4 = vpop.permute.xlu0 %1248 }
 0x202   : > { %3587 = vmatpush.xpose.msk.msrb.mxu1 %vm587_vm2, %v4579_v14 }
 0x205   : > { %3536 = vmatmul.msk.f32.gmra.mxu1 %vm587_vm2, %v4457_v51 }
 0x206   : > { %1748 = vmatpush.msra.mxu1 %v552_v9 }
 0x208   : > { %v1945_v36 = vpop.permute.xlu2 %1944  ;;  %v1921_v16 = vpop.permute.xlu1 %1920 }
 0x209   : > { %v680_v39 = vpop.permute.xlu0 %679  ;;  %3671 = vmatpush.xpose.msk.msrb.mxu0 %vm587_vm2, %v1945_v36 }
 0x20d   : > { %3537 = vmatmul.msk.f32.gmra.mxu1 %vm587_vm2, %v4470_v54 }
 0x210   : > { %v4799_v14 = vpop.permute.xlu1 %1254 }
 0x211   : > { %v4801_v32 = vpop.permute.xlu0 %1252 }
 0x215   : > { %3538 = vmatmul.msk.f32.gmra.mxu1 %vm587_vm2, %v4479_v56 }
 0x218   : > { %v684_v58 = vpop.permute.xlu1 %683 }
 0x219   : > { %v4805_v9 = vpop.permute.xlu0 %1236  ;;  %3540 = vmatpush.xpose.msk.msra.mxu2 %vm587_vm2, %v684_v58 }
 0x21d   : > { %3539 = vmatmul.msk.f32.gmra.mxu1 %vm587_vm2, %v4498_v59  ;;  %3541 = vmatpush.xpose.msk.msra.mxu2 %vm587_vm2, %v682_v27  ;;  %v3905_v27 = vunpack.i.h.bf16 %v4724_v25 }
 0x220   : > { %v4811_v38 = vpop.permute.xlu1 %1926 }
 0x221   : > { %v3923_v47 = vpop.permute.xlu0 %3922  ;;  %3542 = vmatpush.xpose.msk.msra.mxu2 %vm587_vm2, %v680_v39  ;;  %v6388_v39 = vunpack.i.l.bf16 %v4683_v53 }
 0x225   : > { %3588 = vmatmul.msk.f32.vlgmr.msrb.gmra.mxu1 %vm587_vm2, %v4528_v2  ;;  %3543 = vmatpush.xpose.msk.msra.mxu2 %vm587_vm2, %v678_v1 }
 0x226   : > { %3833 = vmatpush.xpose.msk.msrb.mxu1 %vm587_vm2, %v4681_v50 }
 0x228   : > { %v4819_v52 = vpop.permute.xlu1 %1932 }
 0x229   : > { %6437 = vst [vmem:[#allocation22_spill] sm:$0xff] %v4819_v52  ;;  %v4821_v58 = vpop.permute.xlu0 %3927  ;;  %3544 = vmatpush.xpose.msk.msra.mxu2 %vm587_vm2, %v676_v10  ;;  %v3925_v10 = vunpack.i.h.bf16 %v3923_v47 }
 0x22a   : > { %3834 = vmatpush.xpose.msk.msrb.mxu1 %vm587_vm2, %v4671_v45  ;;  %v1939_v45 = vpop.permute.xlu2 %1938 }
 0x22d   : > { %3589 = vmatmul.msk.f32.gmra.mxu1 %vm587_vm2, %v4595_v19  ;;  %3545 = vmatpush.xpose.msk.msra.mxu2 %vm587_vm2, %v674_v18  ;;  %v3914_v18 = vunpack.i.l.bf16 %v4769_v40 }
 0x22e   : > { %3835 = vmatpush.xpose.msk.msrb.mxu1 %vm587_vm2, %v4685_v55 }
 0x230   : > { %v4831_v2 = vpop.permute.xlu1 %2053 }
 0x231   : > { %6438 = vst [vmem:[#allocation23_spill] sm:$0xff] %v4831_v2  ;;  %v1943_v50 = vpop.permute.xlu0 %1942  ;;  %3546 = vmatpush.xpose.msk.msra.mxu2 %vm587_vm2, %v4715_v11 }
 0x232   : > { %3836 = vmatpush.xpose.msk.msrb.mxu1 %vm587_vm2, %v1945_v36  ;;  %3672 = vmatpush.xpose.msk.msrb.mxu0 %vm587_vm2, %v1943_v50 }
 0x235   : > { %3590 = vmatmul.msk.f32.gmra.mxu1 %vm587_vm2, %v4605_v22  ;;  %3547 = vmatpush.xpose.msk.msra.mxu2 %vm587_vm2, %v4701_v60  ;;  %v3924_v60 = vunpack.i.l.bf16 %v3923_v47  ;;  %v3904_v47 = vunpack.i.l.bf16 %v4724_v25 }
 0x236   : > { %3837 = vmatpush.xpose.msk.msrb.mxu1 %vm587_vm2, %v1943_v50  ;;  %3673 = vmatpush.xpose.msk.msrb.mxu0 %vm587_vm2, %v1941_v37 }
 0x238   : > { %v3933_v19 = vpop.permute.xlu1 %3932  ;;  %3548 = vmatmul.msk.f32.vlgmr.msra.gmra.mxu2 %vm587_vm2, %v4511_v62 }
 0x239   : > { %v1937_v55 = vpop.permute.xlu0 %1936  ;;  %v3934_v11 = vunpack.i.l.bf16 %v3933_v19  ;;  %v3935_v22 = vunpack.i.h.bf16 %v3933_v19 }
 0x23a   : > { %3838 = vmatpush.xpose.msk.msrb.mxu1 %vm587_vm2, %v1941_v37  ;;  %3674 = vmatpush.xpose.msk.msrb.mxu0 %vm587_vm2, %v1939_v45  ;;  %v1923_v37 = vpop.permute.xlu2 %1922 }
 0x23b   : > { %1079 = vmatpush.msrb.mxu3 %v3934_v11  ;;  %v6383_v11 = vunpack.i.h.bf16 %v4633_v31 }
 0x23d   : > { %3591 = vmatmul.msk.f32.gmra.mxu1 %vm587_vm2, %v4581_v15  ;;  %1080 = vmatpush.msrb.mxu3 %v3935_v22  ;;  %v3915_v15 = vunpack.i.h.bf16 %v4769_v40  ;;  %v4954_v22 = vld [vmem:[%s6367_s6 + $0x18] sm:$0xff] }
 0x23e   : > { %3839 = vmatpush.xpose.msk.msrb.mxu1 %vm587_vm2, %v1939_v45  ;;  %3675 = vmatpush.xpose.msk.msrb.mxu0 %vm587_vm2, %v1937_v55  ;;  %v6384_v45 = vunpack.i.l.bf16 %v4633_v31 }
 0x23f   : > { %1081 = vmatpush.msrb.mxu3 %v3924_v60  ;;  %v6382_v60 = vunpack.i.l.bf16 %v4550_v7 }
 0x240   : > { %3549 = vmatmul.msk.f32.gmra.mxu2 %vm587_vm2, %v4520_v0 }
 0x241   : > { %3676 = vmatmul.msk.f32.vlgmr.msrb.gmra.mxu0 %vm587_vm2, %v1921_v16  ;;  %v1925_v1 = vpop.permute.xlu0 %1924  ;;  %1082 = vmatpush.msrb.mxu3 %v3925_v10 }
 0x242   : > { %3840 = vmatpush.xpose.msk.msrb.mxu1 %vm587_vm2, %v1937_v55  ;;  %v4874_v25 = vpop.permute.xlu2 %1238 }
 0x243   : > { %1083 = vmatpush.msrb.mxu3 %v3914_v18 }
 0x245   : > { %3592 = vmatmul.msk.f32.gmra.mxu1 %vm587_vm2, %v4603_v21  ;;  %1084 = vmatpush.msrb.mxu3 %v3915_v15  ;;  %v4974_v15 = vld [vmem:[%s6367_s6 + $0x20] sm:$0xff] }
 0x247   : > { %1085 = vmatpush.msrb.mxu3 %v3904_v47 }
 0x248   : > { %3550 = vmatmul.msk.f32.gmra.mxu2 %vm587_vm2, %v4531_v3 }
 0x249   : > { %3677 = vmatmul.msk.f32.gmra.mxu0 %vm587_vm2, %v1923_v37  ;;  %v4864_v36 = vpop.permute.xlu0 %1930  ;;  %1086 = vmatpush.msrb.mxu3 %v3905_v27 }
 0x24a   : > { %6439 = vst [vmem:[#allocation24_spill] sm:$0xff] %v4864_v36 }
 0x24d   : > { %3593 = vmatmul.msk.f32.gmra.mxu1 %vm587_vm2, %v4631_v30  ;;  %v1929_v30 = vpop.permute.xlu2 %1928 }
 0x250   : > { %3551 = vmatmul.msk.f32.gmra.mxu2 %vm587_vm2, %v4542_v6 }
 0x251   : > { %3678 = vmatmul.msk.f32.gmra.mxu0 %vm587_vm2, %v1925_v1  ;;  %v1257_v21 = vpop.permute.xlu0 %1256  ;;  %v6381_v1 = vunpack.i.h.bf16 %v4550_v7 }
 0x252   : > { %3596 = vmatpush.xpose.msk.msrb.mxu2 %vm587_vm2, %v1257_v21 }
 0x255   : > { %3594 = vmatmul.msk.f32.gmra.mxu1 %vm587_vm2, %v4646_v35  ;;  %v4893_v35 = vld [vmem:[%s6367_s6] sm:$0xff]  ;;  %v5102_v52 = vpop.permute.xlu2 %1934 }
 0x256   : > { %3597 = vmatpush.xpose.msk.msrb.mxu2 %vm587_vm2, %v4799_v14  ;;  %v6387_v14 = vunpack.i.h.bf16 %v4683_v53  ;;  %6440 = vst [vmem:[#allocation25_spill] sm:$0xff] %v5102_v52 }
 0x258   : > { %3552 = vmatmul.msk.f32.gmra.mxu2 %vm587_vm2, %v4567_v12 }
 0x259   : > { %3679 = vmatmul.msk.f32.gmra.mxu0 %vm587_vm2, %v4811_v38 }
 0x25a   : > { %3598 = vmatpush.xpose.msk.msrb.mxu2 %vm587_vm2, %v4801_v32  ;;  %v6386_v32 = vunpack.i.l.bf16 %v4673_v48 }
 0x25d   : > { %3595 = vmatmul.msk.f32.gmra.mxu1 %vm587_vm2, %v4669_v43 }
 0x25e   : > { %3599 = vmatpush.xpose.msk.msrb.mxu2 %vm587_vm2, %v4781_v26  ;;  %v4910_v26 = vld [vmem:[%s6367_s6 + $0x8] sm:$0xff] }
 0x260   : > { %3553 = vmatmul.msk.f32.gmra.mxu2 %vm587_vm2, %v4610_v24 }
 0x261   : > { %3680 = vmatmul.msk.f32.gmra.mxu0 %vm587_vm2, %v1929_v30 }
 0x262   : > { %v637_v38 = vpop.f32.mrf.mxu1  ;;  %3600 = vmatpush.xpose.msk.msrb.mxu2 %vm587_vm2, %v4789_v4 }
 0x263   : > { %v4899_v43 = vadd.f32 %v637_v38, %v4893_v35 }
 0x265   : > { %v758_v40 = vsel %vm477_vm1, %v4899_v43, -inf }
 0x266   : > { %759 = vmax.xlane.f32.xlu1 %v758_v40  ;;  %3601 = vmatpush.xpose.msk.msrb.mxu2 %vm587_vm2, %v4726_v33 }
 0x268   : > { %3554 = vmatmul.msk.f32.gmra.mxu2 %vm587_vm2, %v4623_v29 }
 0x26a   : > { %v640_v16 = vpop.f32.mrf.mxu1  ;;  %3602 = vmatpush.xpose.msk.msrb.mxu2 %vm587_vm2, %v4759_v20  ;;  %v4930_v20 = vld [vmem:[%s6367_s6 + $0x10] sm:$0xff] }
 0x26b   : > { %v4915_v4 = vadd.f32 %v640_v16, %v4910_v26 }
 0x26d   : > { %v761_v33 = vsel %vm477_vm1, %v4915_v4, -inf }
 0x26e   : > { %762 = vmax.xlane.f32.xlu0 %v761_v33  ;;  %3603 = vmatpush.xpose.msk.msrb.mxu2 %vm587_vm2, %v4703_v63  ;;  %v6385_v63 = vunpack.i.h.bf16 %v4673_v48 }
 0x270   : > { %3555 = vmatmul.msk.f32.gmra.mxu2 %vm587_vm2, %v4638_v34 }
 0x272   : > { %1563 = vmatpush.msra.mxu2 %v6388_v39  ;;  %v643_v50 = vpop.f32.mrf.mxu1  ;;  %v5097_v39 = vld [vmem:[%s6367_s6 + $0x60] sm:$0xff] }
 0x273   : > { %v4937_v19 = vadd.f32 %v643_v50, %v4930_v20 }
 0x274   : > { %1564 = vmatpush.msra.mxu2 %v6387_v14 }
 0x275   : > { %v764_v55 = vsel %vm477_vm1, %v4937_v19, -inf }
 0x276   : > { %1565 = vmatpush.msra.mxu2 %v6386_v32  ;;  %765 = vmax.xlane.f32.xlu2 %v764_v55 }
 0x278   : > { %1566 = vmatpush.msra.mxu2 %v6385_v63  ;;  %v5057_v63 = vld [vmem:[%s6367_s6 + $0x50] sm:$0xff] }
 0x279   : > { %3604 = vmatmul.msk.f32.vlgmr.msrb.gmra.mxu2 %vm587_vm2, %v4740_v8 }
 0x27a   : > { %1567 = vmatpush.msra.mxu2 %v6384_v45  ;;  %v646_v10 = vpop.f32.mrf.mxu1 }
 0x27b   : > { %v4961_v18 = vadd.f32 %v646_v10, %v4954_v22 }
 0x27c   : > { %1568 = vmatpush.msra.mxu2 %v6383_v11 }
 0x27d   : > { %v767_v8 = vsel %vm477_vm1, %v4961_v18, -inf }
 0x27e   : > { %1569 = vmatpush.msra.mxu2 %v6382_v60  ;;  %768 = vmax.xlane.f32.xlu0 %v767_v8  ;;  %v5026_v8 = vld [vmem:[%s6367_s6 + $0x48] sm:$0xff] }
 0x280   : > { %1570 = vmatpush.msra.mxu2 %v6381_v1 }
 0x281   : > { %3605 = vmatmul.msk.f32.gmra.mxu2 %vm587_vm2, %v4713_v5  ;;  %v4986_v5 = vld [vmem:[%s6367_s6 + $0x28] sm:$0xff] }
 0x282   : > { %v649_v47 = vpop.f32.mrf.mxu1 }
 0x283   : > { %v4977_v27 = vadd.f32 %v649_v47, %v4974_v15 }
 0x285   : > { %v770_v37 = vsel %vm477_vm1, %v4977_v27, -inf }
 0x286   : > { %771 = vmax.xlane.f32.xlu0 %v770_v37 }
 0x289   : > { %3606 = vmatmul.msk.f32.gmra.mxu2 %vm587_vm2, %v4736_v28  ;;  %v4998_v28 = vld [vmem:[%s6367_s6 + $0x30] sm:$0xff] }
 0x28a   : > { %v652_v21 = vpop.f32.mrf.mxu1 }
 0x28b   : > { %v4989_v30 = vadd.f32 %v652_v21, %v4986_v5 }
 0x28d   : > { %v773_v38 = vsel %vm477_vm1, %v4989_v30, -inf }
 0x28e   : > { %774 = vmax.xlane.f32.xlu1 %v773_v38  ;;  %v1241_v38 = vpop.permute.xlu0 %1240 }
 0x291   : > { %3607 = vmatmul.msk.f32.gmra.mxu2 %vm587_vm2, %v4738_v13  ;;  %v5010_v13 = vld [vmem:[%s6367_s6 + $0x38] sm:$0xff] }
 0x292   : > { %v655_v40 = vpop.f32.mrf.mxu1 }
 0x293   : > { %v5001_v16 = vadd.f32 %v655_v40, %v4998_v28 }
 0x295   : > { %v776_v33 = vsel %vm477_vm1, %v5001_v16, -inf }
 0x296   : > { %777 = vmax.xlane.f32.xlu2 %v776_v33  ;;  %v5140_v44 = vpop.permute.xlu0 %2055 }
 0x297   : > { %6442 = vst [vmem:[#allocation27_spill] sm:$0xff] %v5140_v44 }
 0x299   : > { %3608 = vmatmul.msk.f32.gmra.mxu2 %vm587_vm2, %v4779_v23 }
 0x29a   : > { %v658_v50 = vpop.f32.mrf.mxu1  ;;  %2049 = vrot.lane.b32.xlu0 %v4567_v12, %s4293_s14 }
 0x29b   : > { %v5015_v55 = vadd.f32 %v658_v50, %v5010_v13 }
 0x29d   : > { %v779_v10 = vsel %vm477_vm1, %v5015_v55, -inf }
 0x29e   : > { %780 = vmax.xlane.f32.xlu1 %v779_v10 }
 0x2a1   : > { %3609 = vmatmul.msk.f32.gmra.mxu2 %vm587_vm2, %v4805_v9 }
 0x2a2   : > { %v1202_v23 = vpop.f32.mrf.mxu1 }
 0x2a9   : > { %3610 = vmatmul.msk.f32.gmra.mxu2 %vm587_vm2, %v4874_v25  ;;  %v5037_v25 = vld [vmem:[%s6367_s6 + $0x40] sm:$0xff] }
 0x2aa   : > { %v1205_v47 = vpop.f32.mrf.mxu1  ;;  %v5040_v50 = vadd.f32 %v5037_v25, %v1202_v23 }
 0x2ab   : > { %v5029_v37 = vadd.f32 %v5026_v8, %v1205_v47 }
 0x2ac   : > { %v1331_v47 = vsel %vm477_vm1, %v5040_v50, -inf }
 0x2ad   : > { %v1334_v21 = vsel %vm477_vm1, %v5029_v37, -inf }
 0x2ae   : > { %1335 = vmax.xlane.f32.xlu2 %v1334_v21 }
 0x2b1   : > { %3611 = vmatmul.msk.f32.gmra.mxu2 %vm587_vm2, %v1241_v38 }
 0x2b2   : > { %v1208_v9 = vpop.f32.mrf.mxu1 }
 0x2ba   : > { %v1211_v40 = vpop.f32.mrf.mxu1 }
 0x2bb   : > { %v734_v33 = vpop.f32.mrf.mxu2 }
 0x2bc   : > { %v5050_v60 = vadd.f32 %v734_v33, %v4893_v35  ;;  %v5065_v35 = vadd.f32 %v5057_v63, %v1208_v9  ;;  %v5070_v33 = vld [vmem:[%s6367_s6 + $0x58] sm:$0xff] }
 0x2be   : > { %v782_v23 = vsel %vm477_vm1, %v5050_v60, -inf }
 0x2c2   : > { %v1214_v10 = vpop.f32.mrf.mxu1 }
 0x2c3   : > { %v737_v1 = vpop.f32.mrf.mxu2 }
 0x2c4   : > { %1332 = vmax.xlane.f32.xlu0 %v1331_v47  ;;  %v5045_v21 = vadd.f32 %v737_v1, %v4910_v26  ;;  %v5075_v47 = vld [vmem:[%s6367_s6 + $0x70] sm:$0xff] }
 0x2c6   : > { %v785_v38 = vsel %vm477_vm1, %v5045_v21, -inf }
 0x2c7   : > { %786 = vmax.xlane.f32.xlu1 %v785_v38 }
 0x2ca   : > { %v1217_v11 = vpop.f32.mrf.mxu1 }
 0x2cb   : > { %v740_v45 = vpop.f32.mrf.mxu2 }
 0x2cc   : > { %v5060_v26 = vadd.f32 %v740_v45, %v4930_v20  ;;  %783 = vmax.xlane.f32.xlu0 %v782_v23  ;;  %v5078_v20 = vadd.f32 %v5070_v33, %v1211_v40  ;;  %v1337_v23 = vsel %vm477_vm1, %v5065_v35, -inf }
 0x2ce   : > { %v788_v1 = vsel %vm477_vm1, %v5060_v26, -inf  ;;  %v1340_v32 = vsel %vm477_vm1, %v5078_v20, -inf }
 0x2cf   : > { %789 = vmax.xlane.f32.xlu1 %v788_v1 }
 0x2d2   : > { %v1220_v45 = vpop.f32.mrf.mxu1 }
 0x2d3   : > { %v5081_v38 = vadd.f32 %v5075_v47, %v1220_v45  ;;  %v743_v9 = vpop.f32.mrf.mxu2 }
 0x2d4   : > { %1338 = vmax.xlane.f32.xlu0 %v1337_v23  ;;  %v5090_v40 = vadd.f32 %v743_v9, %v4954_v22  ;;  %v5100_v23 = vadd.f32 %v5097_v39, %v1214_v10 }
 0x2d5   : > { %v1349_v1 = vsel %vm477_vm1, %v5081_v38, -inf }
 0x2d6   : > { %1350 = vmax.xlane.f32.xlu2 %v1349_v1  ;;  %v791_v45 = vsel %vm477_vm1, %v5090_v40, -inf }
 0x2d7   : > { %1341 = vmax.xlane.f32.xlu1 %v1340_v32  ;;  %v1343_v32 = vsel %vm477_vm1, %v5100_v23, -inf }
 0x2db   : > { %v746_v14 = vpop.f32.mrf.mxu2 }
 0x2dc   : > { %v5107_v22 = vadd.f32 %v746_v14, %v4974_v15  ;;  %v5126_v14 = vld [vmem:[%s6367_s6 + $0x78] sm:$0xff]  ;;  %v1223_v15 = vpop.f32.mrf.mxu1 }
 0x2dd   : > { %v5134_v52 = vadd.f32 %v5126_v14, %v1223_v15 }
 0x2de   : > { %v794_v10 = vsel %vm477_vm1, %v5107_v22, -inf }
 0x2df   : > { %792 = vmax.xlane.f32.xlu1 %v791_v45  ;;  %v1352_v46 = vsel %vm477_vm1, %v5134_v52, -inf }
 0x2e1   : > { %v763_v57 = vpop.xlane.xlu0 %762 }
 0x2e3   : > { %v749_v1 = vpop.f32.mrf.mxu2 }
 0x2e7   : > { %1344 = vmax.xlane.f32.xlu1 %v1343_v32  ;;  %v5121_v32 = vld [vmem:[%s6367_s6 + $0x68] sm:$0xff] }
 0x2eb   : > { %v752_v9 = vpop.f32.mrf.mxu2 }
 0x2ec   : > { %v5110_v36 = vadd.f32 %v752_v9, %v4998_v28  ;;  %v5128_v28 = vpop.permute.xlu2 %2051  ;;  %v5131_v9 = vadd.f32 %v5121_v32, %v1217_v11  ;;  %v5145_v11 = vadd.f32 %v749_v1, %v4986_v5 }
 0x2ed   : > { %6441 = vst [vmem:[#allocation26_spill] sm:$0xff] %v5128_v28 }
 0x2ee   : > { %2045 = vrot.lane.b32.xlu2 %v4531_v3, %s4293_s14  ;;  %v800_v45 = vsel %vm477_vm1, %v5110_v36, -inf  ;;  %v1346_v42 = vsel %vm477_vm1, %v5131_v9, -inf  ;;  %v797_v29 = vsel %vm477_vm1, %v5145_v11, -inf }
 0x2ef   : > { %795 = vmax.xlane.f32.xlu1 %v794_v10  ;;  %801 = vmax.xlane.f32.xlu0 %v800_v45  ;;  %v760_v45 = vpop.xlane.xlu1 %759 }
 0x2f0   : > { %v806_v51 = vsub.f32 %v4899_v43, %v760_v45 }
 0x2f3   : > { %v755_v61 = vpop.f32.mrf.mxu2 }
 0x2f4   : > { %v5142_v10 = vpop.permute.xlu2 %3937  ;;  %v5156_v5 = vadd.f32 %v755_v61, %v5010_v13 }
 0x2f7   : > { %1347 = vmax.xlane.f32.xlu1 %v1346_v42  ;;  %1353 = vmax.xlane.f32.xlu0 %v1352_v46  ;;  %v822_v46 = vmul.f32 1.442695, %v806_v51 }
 0x2f9   : > { %4023 = vpow2.f32 %v822_v46 }
 0x2fc   : > { %v1307_v49 = vpop.f32.mrf.mxu2  ;;  %v766_v54 = vpop.xlane.xlu2 %765 }
 0x2fd   : > { %v5148_v15 = vadd.f32 %v5037_v25, %v1307_v49  ;;  %v807_v49 = vsub.f32 %v4915_v4, %v763_v57  ;;  %v808_v43 = vsub.f32 %v4937_v19, %v766_v54  ;;  %v803_v25 = vsel %vm477_vm1, %v5156_v5, -inf }
 0x2ff   : > { %v1355_v42 = vsel %vm477_vm1, %v5148_v15, -inf  ;;  %798 = vmax.xlane.f32.xlu1 %v797_v29  ;;  %v824_v45 = vmul.f32 1.442695, %v807_v49  ;;  %v826_v29 = vmul.f32 1.442695, %v808_v43  ;;  %v5164_v51 = vpop.eup %4023 }
 0x300   : > { %1356 = vmax.xlane.f32.xlu0 %v1355_v42  ;;  %v769_v42 = vpop.xlane.xlu0 %768  ;;  %v854_v57 = vsel %vm477_vm1, %v5164_v51, 0.0 }
 0x301   : > { %4025 = vpow2.f32 %v824_v45  ;;  %v809_v61 = vsub.f32 %v4961_v18, %v769_v42 }
 0x302   : > { %4027 = vpow2.f32 %v826_v29 }
 0x303   : > { %v828_v54 = vmul.f32 1.442695, %v809_v61 }
 0x304   : > { %v5158_v1 = vpop.f32.mrf.mxu2 }
 0x305   : > { %4029 = vpow2.f32 %v828_v54  ;;  %v775_v54 = vpop.xlane.xlu1 %774 }
 0x307   : > { %804 = vmax.xlane.f32.xlu1 %v803_v25  ;;  %v5171_v4 = vpop.eup %4025 }
 0x308   : > { %v5173_v19 = vpop.eup %4027  ;;  %v857_v49 = vsel %vm477_vm1, %v5171_v4, 0.0  ;;  %v772_v18 = vpop.xlane.xlu0 %771 }
 0x309   : > { %v860_v46 = vsel %vm477_vm1, %v5173_v19, 0.0  ;;  %v810_v29 = vsub.f32 %v4977_v27, %v772_v18  ;;  %v778_v18 = vpop.xlane.xlu2 %777 }
 0x30b   : > { %v5179_v43 = vpop.eup %4029 }
 0x30c   : > { %v5166_v56 = vpop.f32.mrf.mxu2  ;;  %v863_v42 = vsel %vm477_vm1, %v5179_v43, 0.0 }
 0x30f   : > { %855 = vadd.xlane.f32.xlu1 %v854_v57  ;;  %v830_v57 = vmul.f32 1.442695, %v810_v29 }
 0x311   : > { %4031 = vpow2.f32 %v830_v57 }
 0x314   : > { %v1316_v13 = vpop.f32.mrf.mxu2 }
 0x317   : > { %861 = vadd.xlane.f32.xlu2 %v860_v46  ;;  %858 = vadd.xlane.f32.xlu1 %v857_v49  ;;  %v5190_v46 = vadd.f32 %v5070_v33, %v1316_v13  ;;  %v811_v49 = vsub.f32 %v4989_v30, %v775_v54  ;;  %v781_v33 = vpop.xlane.xlu1 %780 }
 0x318   : > { %v813_v54 = vsub.f32 %v5015_v55, %v781_v33 }
 0x319   : > { %v832_v27 = vmul.f32 1.442695, %v811_v49 }
 0x31b   : > { %4033 = vpow2.f32 %v832_v27 }
 0x31c   : > { %v1319_v25 = vpop.f32.mrf.mxu2 }
 0x31d   : > { %v5182_v45 = vadd.f32 %v5097_v39, %v1319_v25  ;;  %v1364_v39 = vsel %vm477_vm1, %v5190_v46, -inf  ;;  %v5195_v25 = vpop.eup %4031 }
 0x31e   : > { %v866_v29 = vsel %vm477_vm1, %v5195_v25, 0.0 }
 0x31f   : > { %v1367_v61 = vsel %vm477_vm1, %v5182_v45, -inf  ;;  %864 = vadd.xlane.f32.xlu2 %v863_v42  ;;  %v812_v42 = vsub.f32 %v5001_v16, %v778_v18 }
 0x320   : > { %1368 = vmax.xlane.f32.xlu0 %v1367_v61  ;;  %v5200_v61 = vpop.permute.xlu0 %2049 }
 0x321   : > { %6443 = vst [vmem:[#allocation28_spill] sm:$0xff] %v5200_v61  ;;  %v834_v30 = vmul.f32 1.442695, %v812_v42  ;;  %v5204_v13 = vpop.eup %4033 }
 0x322   : > { %v869_v16 = vsel %vm477_vm1, %v5204_v13, 0.0 }
 0x323   : > { %4035 = vpow2.f32 %v834_v30 }
 0x324   : > { %v5206_v57 = vpop.f32.mrf.mxu2 }
 0x327   : > { %1365 = vmax.xlane.f32.xlu2 %v1364_v39  ;;  %v836_v39 = vmul.f32 1.442695, %v813_v54 }
 0x329   : > { %v5211_v18 = vpop.eup %4035  ;;  %4037 = vpow2.f32 %v836_v39 }
 0x32a   : > { %v872_v42 = vsel %vm477_vm1, %v5211_v18, 0.0 }
 0x32f   : > { %867 = vadd.xlane.f32.xlu2 %v866_v29  ;;  %v5213_v29 = vpop.f32.mrf.mxu2  ;;  %v5217_v59 = vpop.eup %4037 }
 0x330   : > { %2047 = vrot.lane.b32.xlu1 %v4542_v6, %s4293_s14  ;;  %v875_v33 = vsel %vm477_vm1, %v5217_v59, 0.0 }
 0x337   : > { %870 = vadd.xlane.f32.xlu2 %v869_v16  ;;  %v1333_v49 = vpop.xlane.xlu0 %1332  ;;  %v1328_v54 = vpop.f32.mrf.mxu2 }
 0x338   : > { %v1379_v55 = vsub.f32 %v5040_v50, %v1333_v49  ;;  %v5224_v28 = vadd.f32 %v5126_v14, %v1328_v54 }
 0x33a   : > { %v787_v27 = vpop.xlane.xlu1 %786  ;;  %v1395_v61 = vmul.f32 1.442695, %v1379_v55  ;;  %v1376_v6 = vsel %vm477_vm1, %v5224_v28, -inf }
 0x33f   : > { %873 = vadd.xlane.f32.xlu2 %v872_v42  ;;  %v784_v34 = vpop.xlane.xlu0 %783 }
 0x340   : > { %v814_v50 = vsub.f32 %v5050_v60, %v784_v34  ;;  %v5239_v34 = vadd.f32 %v5026_v8, %v5158_v1  ;;  %v5255_v1 = vadd.f32 %v5057_v63, %v5166_v56 }
 0x342   : > { %v790_v30 = vpop.xlane.xlu1 %789 }
 0x343   : > { %v816_v42 = vsub.f32 %v5060_v26, %v790_v30  ;;  %v1358_v30 = vsel %vm477_vm1, %v5239_v34, -inf }
 0x345   : > { %v842_v49 = vmul.f32 1.442695, %v816_v42 }
 0x347   : > { %876 = vadd.xlane.f32.xlu2 %v875_v33  ;;  %v1339_v16 = vpop.xlane.xlu0 %1338  ;;  %v838_v33 = vmul.f32 1.442695, %v814_v50 }
 0x348   : > { %v1381_v39 = vsub.f32 %v5065_v35, %v1339_v16  ;;  %v1336_v35 = vpop.xlane.xlu2 %1335 }
 0x34a   : > { %v1399_v2 = vmul.f32 1.442695, %v1381_v39  ;;  %v1342_v44 = vpop.xlane.xlu1 %1341  ;;  %v815_v39 = vsub.f32 %v5045_v21, %v787_v27  ;;  %v5271_v21 = vadd.f32 %v5121_v32, %v5206_v57 }
 0x34b   : > { %v1382_v14 = vsub.f32 %v5078_v20, %v1342_v44 }
 0x34c   : > { %4039 = vpow2.f32 %v1399_v2 }
 0x34d   : > { %4041 = vpow2.f32 %v1395_v61  ;;  %v1401_v60 = vmul.f32 1.442695, %v1382_v14 }
 0x34e   : > { %4043 = vpow2.f32 %v842_v49  ;;  %v840_v49 = vmul.f32 1.442695, %v815_v39 }
 0x34f   : > { %1377 = vmax.xlane.f32.xlu2 %v1376_v6  ;;  %v1380_v6 = vsub.f32 %v5029_v37, %v1336_v35  ;;  %4045 = vpow2.f32 %v838_v33  ;;  %v1361_v33 = vsel %vm477_vm1, %v5255_v1, -inf }
 0x350   : > { %4047 = vpow2.f32 %v1401_v60 }
 0x351   : > { %v1397_v20 = vmul.f32 1.442695, %v1380_v6 }
 0x352   : > { %v5230_v24 = vpop.eup %4039  ;;  %v793_v55 = vpop.xlane.xlu1 %792 }
 0x353   : > { %v5233_v26 = vpop.eup %4041  ;;  %v1433_v2 = vsel %vm477_vm1, %v5230_v24, 0.0  ;;  %v817_v54 = vsub.f32 %v5090_v40, %v793_v55  ;;  %4049 = vpow2.f32 %v1397_v20  ;;  %v5287_v20 = vadd.f32 %v5075_v47, %v5213_v29 }
 0x354   : > { %1434 = vadd.xlane.f32.xlu0 %v1433_v2  ;;  %v1427_v61 = vsel %vm477_vm1, %v5233_v26, 0.0  ;;  %v5244_v44 = vpop.eup %4043 }
 0x355   : > { %v5249_v8 = vpop.eup %4045  ;;  %v884_v37 = vsel %vm477_vm1, %v5244_v44, 0.0  ;;  %v844_v42 = vmul.f32 1.442695, %v817_v54 }
 0x356   : > { %v878_v50 = vsel %vm477_vm1, %v5249_v8, 0.0  ;;  %v5260_v40 = vpop.eup %4047 }
 0x357   : > { %1428 = vadd.xlane.f32.xlu2 %v1427_v61  ;;  %4051 = vpow2.f32 %v844_v42  ;;  %v1436_v63 = vsel %vm477_vm1, %v5260_v40, 0.0  ;;  %v1351_v42 = vpop.xlane.xlu2 %1350 }
 0x358   : > { %4053 = vpow2.f32 %v840_v49 }
 0x359   : > { %v5265_v56 = vpop.eup %4049 }
 0x35a   : > { %v1345_v16 = vpop.xlane.xlu1 %1344  ;;  %1359 = vmax.xlane.f32.xlu1 %v1358_v30  ;;  %v1430_v55 = vsel %vm477_vm1, %v5265_v56, 0.0 }
 0x35b   : > { %v1383_v35 = vsub.f32 %v5100_v23, %v1345_v16  ;;  %v1370_v23 = vsel %vm477_vm1, %v5271_v21, -inf }
 0x35c   : > { %885 = vadd.xlane.f32.xlu0 %v884_v37 }
 0x35d   : > { %v1403_v27 = vmul.f32 1.442695, %v1383_v35  ;;  %v5275_v2 = vpop.eup %4051 }
 0x35e   : > { %v5280_v61 = vpop.eup %4053  ;;  %v887_v57 = vsel %vm477_vm1, %v5275_v2, 0.0 }
 0x35f   : > { %879 = vadd.xlane.f32.xlu2 %v878_v50  ;;  %4055 = vpow2.f32 %v1403_v27 }
 0x362   : > { %v796_v14 = vpop.xlane.xlu1 %795  ;;  %1362 = vmax.xlane.f32.xlu1 %v1361_v33  ;;  %v802_v30 = vpop.xlane.xlu0 %801  ;;  %v1385_v33 = vsub.f32 %v5081_v38, %v1351_v42 }
 0x363   : > { %v818_v6 = vsub.f32 %v5107_v22, %v796_v14  ;;  %v881_v22 = vsel %vm477_vm1, %v5280_v61, 0.0  ;;  %v820_v39 = vsub.f32 %v5110_v36, %v802_v30  ;;  %v5317_v30 = vpop.permute.xlu2 %2045 }
 0x364   : > { %1437 = vadd.xlane.f32.xlu0 %v1436_v63  ;;  %v1407_v63 = vmul.f32 1.442695, %v1385_v33  ;;  %v6446_v33 = vunpack.i.l.bf16 %v4673_v48 }
 0x365   : > { %v846_v16 = vmul.f32 1.442695, %v818_v6  ;;  %v5291_v37 = vpop.eup %4055  ;;  %v850_v49 = vmul.f32 1.442695, %v820_v39 }
 0x366   : > { %v1439_v29 = vsel %vm477_vm1, %v5291_v37, 0.0 }
 0x367   : > { %1431 = vadd.xlane.f32.xlu2 %v1430_v55 }
 0x36a   : > { %v1348_v60 = vpop.xlane.xlu1 %1347  ;;  %1371 = vmax.xlane.f32.xlu1 %v1370_v23 }
 0x36b   : > { %v1384_v32 = vsub.f32 %v5131_v9, %v1348_v60  ;;  %v1373_v9 = vsel %vm477_vm1, %v5287_v20, -inf }
 0x36c   : > { %888 = vadd.xlane.f32.xlu0 %v887_v57 }
 0x36d   : > { %v1405_v54 = vmul.f32 1.442695, %v1384_v32 }
 0x36f   : > { %882 = vadd.xlane.f32.xlu2 %v881_v22  ;;  %4057 = vpow2.f32 %v1405_v54 }
 0x370   : > { %4059 = vpow2.f32 %v846_v16 }
 0x372   : > { %v799_v50 = vpop.xlane.xlu1 %798  ;;  %1374 = vmax.xlane.f32.xlu1 %v1373_v9 }
 0x373   : > { %v819_v47 = vsub.f32 %v5145_v11, %v799_v50 }
 0x374   : > { %1440 = vadd.xlane.f32.xlu0 %v1439_v29  ;;  %v6444_v29 = vunpack.i.l.bf16 %v4683_v53 }
 0x375   : > { %v848_v35 = vmul.f32 1.442695, %v819_v47  ;;  %v5300_v14 = vpop.eup %4057 }
 0x376   : > { %v5302_v36 = vpop.eup %4059  ;;  %v1442_v27 = vsel %vm477_vm1, %v5300_v14, 0.0 }
 0x377   : > { %4061 = vpow2.f32 %v848_v35  ;;  %v890_v23 = vsel %vm477_vm1, %v5302_v36, 0.0 }
 0x378   : > { %4063 = vpow2.f32 %v850_v49  ;;  %v6445_v49 = vunpack.i.h.bf16 %v4683_v53 }
 0x379   : > { %4065 = vpow2.f32 %v1407_v63 }
 0x37a   : > { %v805_v55 = vpop.xlane.xlu1 %804  ;;  %1443 = vadd.xlane.f32.xlu1 %v1442_v27 }
 0x37b   : > { %v821_v11 = vsub.f32 %v5156_v5, %v805_v55  ;;  %v6448_v55 = vunpack.i.l.bf16 %v4633_v31 }
 0x37c   : > { %891 = vadd.xlane.f32.xlu0 %v890_v23  ;;  %v6450_v23 = vunpack.i.l.bf16 %v4550_v7 }
 0x37d   : > { %v5309_v38 = vpop.eup %4061  ;;  %v852_v6 = vmul.f32 1.442695, %v821_v11  ;;  %v6449_v11 = vunpack.i.h.bf16 %v4633_v31 }
 0x37e   : > { %v5311_v60 = vpop.eup %4063  ;;  %v893_v32 = vsel %vm477_vm1, %v5309_v38, 0.0 }
 0x37f   : > { %894 = vadd.xlane.f32.xlu2 %v893_v32  ;;  %4067 = vpow2.f32 %v852_v6  ;;  %v896_v57 = vsel %vm477_vm1, %v5311_v60, 0.0  ;;  %v5319_v54 = vpop.eup %4065 }
 0x380   : > { %v1445_v22 = vsel %vm477_vm1, %v5319_v54, 0.0 }
 0x382   : > { %v856_v5 = vpop.xlane.xlu1 %855  ;;  %897 = vadd.xlane.f32.xlu1 %v896_v57 }
 0x383   : > { %4069 = vrcp.f32 %v856_v5  ;;  %v1354_v5 = vpop.xlane.xlu0 %1353 }
 0x385   : > { %v5321_v16 = vpop.eup %4067 }
 0x386   : > { %v899_v9 = vsel %vm477_vm1, %v5321_v16, 0.0 }
 0x387   : > { %1446 = vadd.xlane.f32.xlu2 %v1445_v22 }
 0x389   : > { %v4070_v39 = vpop.eup %4069 }
 0x38a   : > { %v862_v42 = vpop.xlane.xlu2 %861  ;;  %v859_v50 = vpop.xlane.xlu1 %858  ;;  %900 = vadd.xlane.f32.xlu1 %v899_v9  ;;  %v918_v47 = vmul.f32 %v4070_v39, %v5164_v51  ;;  %v6447_v51 = vunpack.i.h.bf16 %v4673_v48  ;;  %v6451_v48 = vunpack.i.h.bf16 %v4550_v7 }
 0x38b   : > { %4071 = vrcp.f32 %v859_v50 }
 0x38c   : > { %3556 = vmatmul.msk.f32.vlgmr.msra.gmra.mxu3 %vm477_vm1, %v918_v47  ;;  %4073 = vrcp.f32 %v862_v42 }
 0x38d   : > { %3825 = vmatpush.msra.mxu3 %v6444_v29  ;;  %v1357_v29 = vpop.xlane.xlu0 %1356 }
 0x38f   : > { %3826 = vmatpush.msra.mxu3 %v6445_v49 }
 0x390   : > { %2043 = vrot.lane.b32.xlu0 %v4520_v0, %s4293_s14 }
 0x391   : > { %3827 = vmatpush.msra.mxu3 %v6446_v33  ;;  %v4072_v35 = vpop.eup %4071 }
 0x392   : > { %v865_v63 = vpop.xlane.xlu2 %864  ;;  %v919_v27 = vmul.f32 %v4072_v35, %v5171_v4  ;;  %v4074_v53 = vpop.eup %4073 }
 0x393   : > { %3828 = vmatpush.msra.mxu3 %v6447_v51  ;;  %4075 = vrcp.f32 %v865_v63  ;;  %v920_v32 = vmul.f32 %v4074_v53, %v5173_v19  ;;  %v1386_v19 = vsub.f32 %v5134_v52, %v1354_v5  ;;  %v1387_v51 = vsub.f32 %v5148_v15, %v1357_v29 }
 0x394   : > { %3557 = vmatmul.msk.f32.gmra.mxu3 %vm477_vm1, %v919_v27 }
 0x395   : > { %3829 = vmatpush.msra.mxu3 %v6448_v55  ;;  %v1409_v9 = vmul.f32 1.442695, %v1386_v19  ;;  %v1411_v55 = vmul.f32 1.442695, %v1387_v51  ;;  %v3929_v51 = vunpack.i.l.bf16 %v4821_v58 }
 0x397   : > { %3830 = vmatpush.msra.mxu3 %v6449_v11 }
 0x399   : > { %3831 = vmatpush.msra.mxu3 %v6450_v23  ;;  %v4076_v4 = vpop.eup %4075 }
 0x39a   : > { %v1366_v6 = vpop.xlane.xlu2 %1365  ;;  %v921_v31 = vmul.f32 %v4076_v4, %v5179_v43 }
 0x39b   : > { %3832 = vmatpush.msra.mxu3 %v6451_v48  ;;  %v1390_v52 = vsub.f32 %v5190_v46, %v1366_v6 }
 0x39c   : > { %3558 = vmatmul.msk.f32.gmra.mxu3 %vm477_vm1, %v920_v32 }
 0x39d   : > { %v1417_v33 = vmul.f32 1.442695, %v1390_v52 }
 0x39f   : > { %2025 = vrot.lane.b32.xlu2 %v4511_v62, %s4294_s15 }
 0x3a2   : > { %v868_v57 = vpop.xlane.xlu2 %867 }
 0x3a3   : > { %4077 = vrcp.f32 %v868_v57  ;;  %2041 = vrot.lane.b32.xlu1 %v4511_v62, %s4293_s14 }
 0x3a4   : > { %3559 = vmatmul.msk.f32.gmra.mxu3 %vm477_vm1, %v921_v31 }
 0x3a9   : > { %v4078_v7 = vpop.eup %4077 }
 0x3aa   : > { %v871_v22 = vpop.xlane.xlu2 %870  ;;  %v922_v39 = vmul.f32 %v4078_v7, %v5195_v25 }
 0x3ab   : > { %4079 = vrcp.f32 %v871_v22 }
 0x3ac   : > { %3560 = vmatmul.msk.f32.gmra.mxu3 %vm477_vm1, %v922_v39  ;;  %4081 = vpow2.f32 %v1409_v9 }
 0x3b1   : > { %v4080_v42 = vpop.eup %4079 }
 0x3b2   : > { %v874_v50 = vpop.xlane.xlu2 %873  ;;  %v923_v47 = vmul.f32 %v4080_v42, %v5204_v13  ;;  %v5362_v43 = vpop.eup %4081 }
 0x3b3   : > { %4083 = vrcp.f32 %v874_v50  ;;  %v1448_v25 = vsel %vm477_vm1, %v5362_v43, 0.0  ;;  %v1369_v13 = vpop.xlane.xlu0 %1368 }
 0x3b4   : > { %3561 = vmatmul.msk.f32.gmra.mxu3 %vm477_vm1, %v923_v47  ;;  %v1391_v27 = vsub.f32 %v5182_v45, %v1369_v13 }
 0x3b6   : > { %v1419_v53 = vmul.f32 1.442695, %v1391_v27 }
 0x3b9   : > { %v4084_v49 = vpop.eup %4083 }
 0x3ba   : > { %v877_v35 = vpop.xlane.xlu2 %876  ;;  %1449 = vadd.xlane.f32.xlu0 %v1448_v25  ;;  %v924_v63 = vmul.f32 %v4084_v49, %v5211_v18  ;;  %v5376_v18 = vpop.permute.xlu1 %2047 }
 0x3bb   : > { %4085 = vrcp.f32 %v877_v35 }
 0x3bc   : > { %3562 = vmatmul.msk.f32.gmra.mxu3 %vm477_vm1, %v924_v63  ;;  %4087 = vpow2.f32 %v1417_v33  ;;  %v3939_v33 = vunpack.i.l.bf16 %v5142_v10 }
 0x3bd   : > { %4089 = vpow2.f32 %v1411_v55 }
 0x3be   : > { %4091 = vpow2.f32 %v1419_v53  ;;  %v2001_v53 = vpop.f32.mrf.mxu0 }
 0x3c1   : > { %v4086_v46 = vpop.eup %4085 }
 0x3c2   : > { %v5371_v11 = vpop.xlane.xlu2 %1377  ;;  %v925_v23 = vmul.f32 %v4086_v46, %v5217_v59  ;;  %v5374_v6 = vpop.eup %4087  ;;  %v3930_v46 = vunpack.i.h.bf16 %v4821_v58 }
 0x3c3   : > { %v1460_v45 = vsel %vm477_vm1, %v5374_v6, 0.0  ;;  %v5381_v32 = vpop.eup %4089  ;;  %v1394_v27 = vsub.f32 %v5224_v28, %v5371_v11  ;;  %v3919_v11 = vunpack.i.l.bf16 %v4756_v41 }
 0x3c4   : > { %3563 = vmatmul.msk.f32.gmra.mxu3 %vm477_vm1, %v925_v23  ;;  %v5383_v4 = vpop.eup %4091  ;;  %v1451_v59 = vsel %vm477_vm1, %v5381_v32, 0.0 }
 0x3c5   : > { %v1463_v19 = vsel %vm477_vm1, %v5383_v4, 0.0  ;;  %v1425_v58 = vmul.f32 1.442695, %v1394_v27 }
 0x3c7   : > { %v1435_v15 = vpop.xlane.xlu0 %1434 }
 0x3c8   : > { %1461 = vadd.xlane.f32.xlu2 %v1460_v45 }
 0x3ca   : > { %v1429_v48 = vpop.xlane.xlu2 %1428 }
 0x3cb   : > { %4093 = vrcp.f32 %v1429_v48 }
 0x3cd   : > { %v1360_v57 = vpop.xlane.xlu1 %1359  ;;  %1452 = vadd.xlane.f32.xlu1 %v1451_v59 }
 0x3ce   : > { %v1388_v31 = vsub.f32 %v5239_v34, %v1360_v57 }
 0x3cf   : > { %v886_v5 = vpop.xlane.xlu0 %885 }
 0x3d0   : > { %v1413_v7 = vmul.f32 1.442695, %v1388_v31  ;;  %1464 = vadd.xlane.f32.xlu2 %v1463_v19  ;;  %v3909_v19 = vunpack.i.l.bf16 %v4771_v17 }
 0x3d1   : > { %v4094_v22 = vpop.eup %4093 }
 0x3d2   : > { %v1491_v39 = vmul.f32 %v4094_v22, %v5233_v26  ;;  %4095 = vpow2.f32 %v1413_v7  ;;  %v880_v9 = vpop.xlane.xlu2 %879 }
 0x3d3   : > { %4097 = vrcp.f32 %v880_v9 }
 0x3d4   : > { %3612 = vmatmul.msk.f32.vlgmr.msra.gmra.mxu2 %vm477_vm1, %v1491_v39  ;;  %v3910_v39 = vunpack.i.h.bf16 %v4771_v17 }
 0x3d5   : > { %v1363_v42 = vpop.xlane.xlu1 %1362 }
 0x3d6   : > { %v1389_v50 = vsub.f32 %v5255_v1, %v1363_v42  ;;  %v3940_v1 = vunpack.i.h.bf16 %v5142_v10 }
 0x3d7   : > { %v5395_v29 = vpop.xlane.xlu0 %1437 }
 0x3d8   : > { %v5393_v47 = vpop.eup %4095  ;;  %v1415_v34 = vmul.f32 1.442695, %v1389_v50 }
 0x3d9   : > { %v4098_v52 = vpop.eup %4097  ;;  %v1454_v49 = vsel %vm477_vm1, %v5393_v47, 0.0 }
 0x3da   : > { %4099 = vpow2.f32 %v1415_v34  ;;  %v1432_v25 = vpop.xlane.xlu2 %1431  ;;  %1455 = vadd.xlane.f32.xlu0 %v1454_v49  ;;  %v926_v26 = vmul.f32 %v4098_v52, %v5249_v8  ;;  %v551_v34 = vld [vmem:[%s6365_s4] sm:$0xff] }
 0x3db   : > { %4101 = vrcp.f32 %v1432_v25  ;;  %1861 = vmatpush.msrb.mxu2 %v551_v34 }
 0x3dc   : > { %3564 = vmatmul.msk.f32.vlgmr.msrb.gmra.mxu3 %vm477_vm1, %v926_v26  ;;  %4103 = vrcp.f32 %v1435_v15  ;;  %v3920_v15 = vunpack.i.h.bf16 %v4756_v41 }
 0x3dd   : > { %1652 = vmatpush.msrb.mxu3 %v3939_v33  ;;  %v1372_v35 = vpop.xlane.xlu1 %1371 }
 0x3de   : > { %v1392_v63 = vsub.f32 %v5271_v21, %v1372_v35  ;;  %v5415_v21 = vld [vmem:[%s6367_s6 + $0x80] sm:$0xff] }
 0x3df   : > { %1653 = vmatpush.msrb.mxu3 %v3940_v1  ;;  %v889_v23 = vpop.xlane.xlu0 %888  ;;  %v5422_v48 = vadd.f32 %v5415_v21, %v2001_v53 }
 0x3e0   : > { %v5405_v13 = vpop.eup %4099  ;;  %v1421_v8 = vmul.f32 1.442695, %v1392_v63 }
 0x3e1   : > { %v4102_v55 = vpop.eup %4101  ;;  %1654 = vmatpush.msrb.mxu3 %v3929_v51  ;;  %v1457_v10 = vsel %vm477_vm1, %v5405_v13, 0.0  ;;  %v2130_v9 = vsel %vm477_vm1, %v5422_v48, -inf }
 0x3e2   : > { %4105 = vpow2.f32 %v1421_v8  ;;  %v883_v45 = vpop.xlane.xlu2 %882  ;;  %1458 = vadd.xlane.f32.xlu1 %v1457_v10  ;;  %v1492_v28 = vmul.f32 %v4102_v55, %v5265_v56  ;;  %v4104_v31 = vpop.eup %4103  ;;  %v6452_v8 = vld [vmem:[#allocation17_spill] sm:$0xff]  ;;  %v6453_v10 = vld [vmem:[#allocation14_spill] sm:$0xff] }
 0x3e3   : > { %4107 = vrcp.f32 %v883_v45  ;;  %1655 = vmatpush.msrb.mxu3 %v3930_v46  ;;  %v1493_v42 = vmul.f32 %v4104_v31, %v5230_v24  ;;  %v2004_v46 = vpop.f32.mrf.mxu0 }
 0x3e4   : > { %3613 = vmatmul.msk.f32.gmra.mxu2 %vm477_vm1, %v1492_v28  ;;  %4109 = vpow2.f32 %v1425_v58 }
 0x3e5   : > { %1656 = vmatpush.msrb.mxu3 %v3919_v11  ;;  %v1375_v59 = vpop.xlane.xlu1 %1374  ;;  %4111 = vrcp.f32 %v886_v5 }
 0x3e6   : > { %v1393_v57 = vsub.f32 %v5287_v20, %v1375_v59 }
 0x3e7   : > { %1657 = vmatpush.msrb.mxu3 %v3920_v15  ;;  %v1441_v50 = vpop.xlane.xlu0 %1440 }
 0x3e8   : > { %v5426_v56 = vpop.eup %4105  ;;  %v1423_v7 = vmul.f32 1.442695, %v1393_v57  ;;  %v6454_v57 = vld [vmem:[#allocation27_spill] sm:$0xff] }
 0x3e9   : > { %v4108_v22 = vpop.eup %4107  ;;  %1658 = vmatpush.msrb.mxu3 %v3909_v19  ;;  %v1466_v41 = vsel %vm477_vm1, %v5426_v56, 0.0  ;;  %v6455_v19 = vld [vmem:[#allocation23_spill] sm:$0xff] }
 0x3ea   : > { %4113 = vpow2.f32 %v1423_v7  ;;  %1467 = vadd.xlane.f32.xlu0 %v1466_v41  ;;  %2131 = vmax.xlane.f32.xlu1 %v2130_v9  ;;  %v927_v20 = vmul.f32 %v4108_v22, %v5280_v61  ;;  %v5437_v17 = vpop.eup %4109  ;;  %v5494_v22 = vld [vmem:[%s6367_s6 + $0xa0] sm:$0xff] }
 0x3eb   : > { %1659 = vmatpush.msrb.mxu3 %v3910_v39  ;;  %v4112_v5 = vpop.eup %4111  ;;  %4115 = vrcp.f32 %v889_v23  ;;  %v1472_v24 = vsel %vm477_vm1, %v5437_v17, 0.0  ;;  %v2007_v28 = vpop.f32.mrf.mxu0  ;;  %v6456_v41 = vld [vmem:[#allocation26_spill] sm:$0xff] }
 0x3ec   : > { %3565 = vmatmul.msk.f32.gmra.mxu3 %vm477_vm1, %v927_v20  ;;  %3614 = vmatmul.msk.f32.gmra.mxu2 %vm477_vm1, %v1493_v42  ;;  %v928_v49 = vmul.f32 %v4112_v5, %v5244_v44 }
 0x3ed   : > { %v1444_v33 = vpop.xlane.xlu1 %1443 }
 0x3ef   : > { %v892_v25 = vpop.xlane.xlu0 %891 }
 0x3f0   : > { %v5442_v52 = vpop.eup %4113  ;;  %4117 = vrcp.f32 %v892_v25 }
 0x3f1   : > { %v1469_v61 = vsel %vm477_vm1, %v5442_v52, 0.0  ;;  %v4116_v26 = vpop.eup %4115 }
 0x3f2   : > { %1473 = vadd.xlane.f32.xlu0 %v1472_v24  ;;  %1470 = vadd.xlane.f32.xlu2 %v1469_v61  ;;  %v929_v1 = vmul.f32 %v4116_v26, %v5275_v2  ;;  %v895_v35 = vpop.xlane.xlu2 %894  ;;  %v6457_v24 = vld [vmem:[#allocation28_spill] sm:$0xff] }
 0x3f3   : > { %4119 = vrcp.f32 %v895_v35  ;;  %v2010_v59 = vpop.f32.mrf.mxu0 }
 0x3f4   : > { %3566 = vmatmul.msk.f32.gmra.mxu3 %vm477_vm1, %v928_v49  ;;  %v5515_v49 = vld [vmem:[%s6367_s6 + $0x90] sm:$0xff] }
 0x3f5   : > { %v898_v27 = vpop.xlane.xlu1 %897 }
 0x3f6   : > { %v4118_v63 = vpop.eup %4117  ;;  %4121 = vrcp.f32 %v898_v27 }
 0x3f7   : > { %v930_v51 = vmul.f32 %v4118_v63, %v5302_v36 }
 0x3f9   : > { %v4120_v44 = vpop.eup %4119 }
 0x3fa   : > { %v931_v2 = vmul.f32 %v4120_v44, %v5309_v38  ;;  %v1447_v9 = vpop.xlane.xlu2 %1446 }
 0x3fb   : > { %v2013_v39 = vpop.f32.mrf.mxu0 }
 0x3fc   : > { %3567 = vmatmul.msk.f32.gmra.mxu3 %vm477_vm1, %v929_v1  ;;  %v4122_v55 = vpop.eup %4121  ;;  %v5506_v5 = vadd.f32 %v5494_v22, %v2013_v39 }
 0x3fd   : > { %v901_v36 = vpop.xlane.xlu1 %900  ;;  %v932_v23 = vmul.f32 %v4122_v55, %v5311_v60 }
 0x3fe   : > { %4123 = vrcp.f32 %v901_v36  ;;  %v2142_v26 = vsel %vm477_vm1, %v5506_v5, -inf }
 0x3ff   : > { %4125 = vrcp.f32 %v5395_v29 }
 0x400   : > { %4127 = vrcp.f32 %v1441_v50  ;;  %v5503_v50 = vld [vmem:[%s6367_s6 + $0x98] sm:$0xff] }
 0x401   : > { %4129 = vrcp.f32 %v1444_v33  ;;  %v5518_v25 = vadd.f32 %v5503_v50, %v2010_v59  ;;  %v5526_v33 = vadd.f32 %v5515_v49, %v2007_v28  ;;  %v6461_v28 = vld [vmem:[#allocation9_spill] sm:$0xff] }
 0x402   : > { %v2044_v20 = vpop.permute.xlu0 %2043  ;;  %4131 = vrcp.f32 %v1447_v9  ;;  %v6466_v9 = vld [vmem:[#allocation3_spill] sm:$0xff] }
 0x403   : > { %2033 = vrot.lane.b32.xlu1 %v4567_v12, %s4294_s15  ;;  %v2139_v35 = vsel %vm477_vm1, %v5518_v25, -inf }
 0x404   : > { %3568 = vmatmul.msk.f32.gmra.mxu3 %vm477_vm1, %v930_v51  ;;  %v4124_v38 = vpop.eup %4123 }
 0x405   : > { %v933_v11 = vmul.f32 %v4124_v38, %v5321_v16  ;;  %v4126_v58 = vpop.eup %4125  ;;  %v5481_v16 = vld [vmem:[%s6367_s6 + $0x88] sm:$0xff] }
 0x406   : > { %2027 = vrot.lane.b32.xlu0 %v4520_v0, %s4294_s15  ;;  %v1494_v60 = vmul.f32 %v4126_v58, %v5260_v40  ;;  %v4128_v29 = vpop.eup %4127  ;;  %v5488_v7 = vadd.f32 %v5481_v16, %v2004_v46  ;;  %v6459_v38 = vld [vmem:[#allocation19_spill] sm:$0xff] }
 0x407   : > { %v1495_v40 = vmul.f32 %v4128_v29, %v5291_v37  ;;  %v4130_v42 = vpop.eup %4129 }
 0x408   : > { %v2133_v37 = vsel %vm477_vm1, %v5488_v7, -inf  ;;  %v1496_v61 = vmul.f32 %v4130_v42, %v5300_v14  ;;  %v4132_v1 = vpop.eup %4131 }
 0x409   : > { %v1497_v27 = vmul.f32 %v4132_v1, %v5319_v54 }
 0x40a   : > { %2029 = vrot.lane.b32.xlu2 %v4531_v3, %s4294_s15 }
 0x40b   : > { %2035 = vrot.lane.b32.xlu1 %v6452_v8, %s4294_s15 }
 0x40c   : > { %3569 = vmatmul.msk.f32.gmra.mxu3 %vm477_vm1, %v931_v2 }
 0x40f   : > { %v999_v53 = vpop.f32.mrf.mxu3 }
 0x410   : > { %3644 = vmatmul.msk.f32.vlgmr.msrb.gmra.mxu2 %vm587_vm2, %v999_v53  ;;  %v6458_v53 = vld [vmem:[#allocation12_spill] sm:$0xff] }
 0x412   : > { %2031 = vrot.lane.b32.xlu2 %v6453_v10, %s4294_s15 }
 0x414   : > { %3570 = vmatmul.msk.f32.gmra.mxu3 %vm477_vm1, %v932_v23 }
 0x415   : > { %v2042_v63 = vpop.permute.xlu1 %2041 }
 0x417   : > { %v1002_v45 = vpop.f32.mrf.mxu3 }
 0x418   : > { %3645 = vmatmul.msk.f32.gmra.mxu2 %vm587_vm2, %v1002_v45  ;;  %v6460_v45 = vld [vmem:[#allocation10_spill] sm:$0xff] }
 0x41c   : > { %3571 = vmatmul.msk.f32.gmra.mxu3 %vm477_vm1, %v933_v11 }
 0x41f   : > { %v1005_v15 = vpop.f32.mrf.mxu3 }
 0x420   : > { %3646 = vmatmul.msk.f32.gmra.mxu2 %vm587_vm2, %v1005_v15  ;;  %v6462_v15 = vld [vmem:[#allocation11_spill] sm:$0xff] }
 0x424   : > { %3615 = vmatmul.msk.f32.vlgmr.msra.gmra.mxu3 %vm477_vm1, %v1494_v60 }
 0x425   : > { %3684 = vmatpush.xpose.msk.msra.mxu3 %vm587_vm2, %v6454_v57  ;;  %v6463_v57 = vld [vmem:[#allocation18_spill] sm:$0xff] }
 0x427   : > { %v1008_v31 = vpop.f32.mrf.mxu3 }
 0x428   : > { %3647 = vmatmul.msk.f32.gmra.mxu2 %vm587_vm2, %v1008_v31  ;;  %v6464_v31 = vld [vmem:[#allocation7_spill] sm:$0xff] }
 0x429   : > { %3685 = vmatpush.xpose.msk.msra.mxu3 %vm587_vm2, %v6455_v19 }
 0x42c   : > { %3616 = vmatmul.msk.f32.gmra.mxu3 %vm477_vm1, %v1495_v40 }
 0x42d   : > { %3686 = vmatpush.xpose.msk.msra.mxu3 %vm587_vm2, %v6456_v41  ;;  %v1450_v14 = vpop.xlane.xlu0 %1449  ;;  %v6465_v41 = vld [vmem:[#allocation6_spill] sm:$0xff] }
 0x42e   : > { %4133 = vrcp.f32 %v1450_v14 }
 0x42f   : > { %v1011_v34 = vpop.f32.mrf.mxu3 }
 0x430   : > { %2134 = vmax.xlane.f32.xlu0 %v2133_v37  ;;  %3648 = vmatmul.msk.f32.gmra.mxu2 %vm587_vm2, %v1011_v34 }
 0x431   : > { %3687 = vmatpush.xpose.msk.msra.mxu3 %vm587_vm2, %v6457_v24  ;;  %v6467_v24 = vld [vmem:[#allocation4_spill] sm:$0xff] }
 0x434   : > { %3617 = vmatmul.msk.f32.gmra.mxu3 %vm477_vm1, %v1496_v61  ;;  %v4134_v44 = vpop.eup %4133  ;;  %v6468_v61 = vld [vmem:[#allocation2_spill] sm:$0xff] }
 0x435   : > { %3688 = vmatpush.xpose.msk.msra.mxu3 %vm587_vm2, %v5376_v18  ;;  %2143 = vmax.xlane.f32.xlu1 %v2142_v26  ;;  %v2136_v18 = vsel %vm477_vm1, %v5526_v33, -inf }
 0x437   : > { %v1014_v51 = vpop.f32.mrf.mxu3 }
 0x438   : > { %2140 = vmax.xlane.f32.xlu0 %v2139_v35  ;;  %3649 = vmatmul.msk.f32.gmra.mxu2 %vm587_vm2, %v1014_v51 }
 0x439   : > { %3689 = vmatpush.xpose.msk.msra.mxu3 %vm587_vm2, %v5317_v30  ;;  %v1498_v30 = vmul.f32 %v4134_v44, %v5362_v43  ;;  %v5549_v43 = vpop.permute.xlu2 %2025 }
 0x43b   : > { %2137 = vmax.xlane.f32.xlu2 %v2136_v18  ;;  %v6469_v18 = vld [vmem:[#allocation13_spill] sm:$0xff] }
 0x43c   : > { %3618 = vmatmul.msk.f32.gmra.mxu3 %vm477_vm1, %v1497_v27 }
 0x43d   : > { %3690 = vmatpush.xpose.msk.msra.mxu3 %vm587_vm2, %v2044_v20 }
 0x43f   : > { %v1017_v2 = vpop.f32.mrf.mxu3 }
 0x440   : > { %v1453_v36 = vpop.xlane.xlu1 %1452  ;;  %3650 = vmatmul.msk.f32.gmra.mxu2 %vm587_vm2, %v1017_v2  ;;  %v6470_v2 = vld [vmem:[#allocation8_spill] sm:$0xff] }
 0x441   : > { %3691 = vmatpush.xpose.msk.msra.mxu3 %vm587_vm2, %v2042_v63  ;;  %4135 = vrcp.f32 %v1453_v36  ;;  %v1462_v60 = vpop.xlane.xlu2 %1461 }
 0x444   : > { %3619 = vmatmul.msk.f32.gmra.mxu3 %vm477_vm1, %v1498_v30 }
 0x447   : > { %v4136_v55 = vpop.eup %4135  ;;  %v1020_v46 = vpop.f32.mrf.mxu3 }
 0x448   : > { %v1499_v54 = vmul.f32 %v4136_v55, %v5381_v32  ;;  %3651 = vmatmul.msk.f32.gmra.mxu2 %vm587_vm2, %v1020_v46 }
 0x449   : > { %v1465_v40 = vpop.xlane.xlu2 %1464 }
 0x44c   : > { %3620 = vmatmul.msk.f32.vlgmr.msrb.gmra.mxu3 %vm477_vm1, %v1499_v54  ;;  %2652 = vrot.lane.b32.xlu0 %v6458_v53, %s4295_s23 }
 0x44d   : > { %v1456_v23 = vpop.xlane.xlu0 %1455 }
 0x44e   : > { %4137 = vrcp.f32 %v1456_v23  ;;  %2039 = vrot.lane.b32.xlu1 %v6459_v38, %s4294_s15 }
 0x453   : > { %2650 = vrot.lane.b32.xlu2 %v6460_v45, %s4295_s23 }
 0x454   : > { %v4138_v32 = vpop.eup %4137  ;;  %2648 = vrot.lane.b32.xlu0 %v6461_v28, %s4295_s23 }
 0x455   : > { %v1459_v11 = vpop.xlane.xlu1 %1458  ;;  %v1500_v58 = vmul.f32 %v4138_v32, %v5393_v47 }
 0x456   : > { %4139 = vrcp.f32 %v1459_v11  ;;  %3947 = vrot.lane.b32.xlu1 %v6462_v15, %s4296_s25 }
 0x457   : > { %v1572_v59 = vpop.f32.mrf.mxu2  ;;  %3621 = vmatmul.msk.f32.gmra.mxu3 %vm477_vm1, %v1500_v58  ;;  %4141 = vrcp.f32 %v1462_v60  ;;  %v6471_v58 = vld [vmem:[#allocation5_spill] sm:$0xff] }
 0x458   : > { %3628 = vmatmul.msk.f32.vlgmr.msra.gmra.mxu1 %vm587_vm2, %v1572_v59  ;;  %4143 = vrcp.f32 %v1465_v40 }
 0x45b   : > { %2037 = vrot.lane.b32.xlu2 %v6463_v57, %s4294_s15  ;;  %s4297_s15 = smov 104  }
 0x45c   : > { %v4140_v29 = vpop.eup %4139  ;;  %2646 = vrot.lane.b32.xlu0 %v6464_v31, %s4295_s23 }
 0x45d   : > { %v1501_v47 = vmul.f32 %v4140_v29, %v5405_v13  ;;  %v4142_v39 = vpop.eup %4141  ;;  %v1468_v13 = vpop.xlane.xlu0 %1467 }
 0x45e   : > { %v1502_v20 = vmul.f32 %v4142_v39, %v5374_v6  ;;  %v4144_v37 = vpop.eup %4143  ;;  %v2132_v34 = vpop.xlane.xlu1 %2131  ;;  %4145 = vrcp.f32 %v1468_v13 }
 0x45f   : > { %v1088_v19 = vpop.f32.mrf.mxu3  ;;  %3622 = vmatmul.msk.f32.gmra.mxu3 %vm477_vm1, %v1501_v47  ;;  %v1503_v26 = vmul.f32 %v4144_v37, %v5383_v4  ;;  %v2178_v14 = vsub.f32 %v5422_v48, %v2132_v34 }
 0x460   : > { %3652 = vmatmul.msk.f32.gmra.mxu2 %vm587_vm2, %v1088_v19 }
 0x461   : > { %v2194_v51 = vmul.f32 1.442695, %v2178_v14 }
 0x463   : > { %2644 = vrot.lane.b32.xlu2 %v6465_v41, %s4295_s23 }
 0x464   : > { %2640 = vrot.lane.b32.xlu0 %v6466_v9, %s4295_s23  ;;  %v4146_v63 = vpop.eup %4145 }
 0x465   : > { %v1471_v35 = vpop.xlane.xlu2 %1470  ;;  %v1504_v4 = vmul.f32 %v4146_v63, %v5426_v56  ;;  %v1474_v27 = vpop.xlane.xlu0 %1473 }
 0x466   : > { %4147 = vrcp.f32 %v1471_v35 }
 0x467   : > { %v1575_v42 = vpop.f32.mrf.mxu2  ;;  %3623 = vmatmul.msk.f32.gmra.mxu3 %vm477_vm1, %v1502_v20  ;;  %4149 = vpow2.f32 %v2194_v51 }
 0x468   : > { %3629 = vmatmul.msk.f32.gmra.mxu1 %vm587_vm2, %v1575_v42  ;;  %4151 = vrcp.f32 %v1474_v27 }
 0x46b   : > { %2642 = vrot.lane.b32.xlu2 %v6467_v24, %s4295_s23 }
 0x46c   : > { %2638 = vrot.lane.b32.xlu0 %v6468_v61, %s4295_s23  ;;  %v4148_v44 = vpop.eup %4147 }
 0x46d   : > { %v5592_v36 = vpop.eup %4149  ;;  %v1505_v30 = vmul.f32 %v4148_v44, %v5442_v52 }
 0x46e   : > { %v2226_v55 = vsel %vm477_vm1, %v5592_v36, 0.0  ;;  %v4152_v54 = vpop.eup %4151 }
 0x46f   : > { %v1091_v6 = vpop.f32.mrf.mxu3  ;;  %v1578_v1 = vpop.f32.mrf.mxu2  ;;  %3624 = vmatmul.msk.f32.gmra.mxu3 %vm477_vm1, %v1503_v26  ;;  %v1506_v46 = vmul.f32 %v4152_v54, %v5437_v17 }
 0x470   : > { %3630 = vmatmul.msk.f32.gmra.mxu1 %vm587_vm2, %v1578_v1  ;;  %3653 = vmatmul.msk.f32.gmra.mxu2 %vm587_vm2, %v1091_v6  ;;  %v2030_v17 = vpop.permute.xlu2 %2029 }
 0x473   : > { %3942 = vrot.lane.b32.xlu2 %v6469_v18, %s4296_s25 }
 0x474   : > { %2624 = vrot.lane.b32.xlu0 %v6466_v9, %s4297_s15 }
 0x475   : > { %v2034_v40 = vpop.permute.xlu1 %2033 }
 0x477   : > { %v1094_v48 = vpop.f32.mrf.mxu3  ;;  %3625 = vmatmul.msk.f32.gmra.mxu3 %vm477_vm1, %v1504_v4 }
 0x478   : > { %3654 = vmatmul.msk.f32.gmra.mxu2 %vm587_vm2, %v1094_v48  ;;  %v2028_v32 = vpop.permute.xlu0 %2027  ;;  %v2032_v29 = vpop.permute.xlu2 %2031 }
 0x47b   : > { %3952 = vrot.lane.b32.xlu2 %v6470_v2, %s4296_s25 }
 0x47c   : > { %2626 = vrot.lane.b32.xlu0 %v6467_v24, %s4297_s15 }
 0x47d   : > { %v2036_v24 = vpop.permute.xlu1 %2035 }
 0x47f   : > { %v1097_v56 = vpop.f32.mrf.mxu3  ;;  %3626 = vmatmul.msk.f32.gmra.mxu3 %vm477_vm1, %v1505_v30 }
 0x480   : > { %3655 = vmatmul.msk.f32.gmra.mxu2 %vm587_vm2, %v1097_v56  ;;  %2227 = vadd.xlane.f32.xlu1 %v2226_v55 }
 0x483   : > { %2622 = vrot.lane.b32.xlu2 %v6468_v61, %s4297_s15 }
 0x487   : > { %v1100_v23 = vpop.f32.mrf.mxu3  ;;  %3627 = vmatmul.msk.f32.gmra.mxu3 %vm477_vm1, %v1506_v46 }
 0x488   : > { %3656 = vmatmul.msk.f32.gmra.mxu2 %vm587_vm2, %v1100_v23 }
 0x48f   : > { %v1103_v52 = vpop.f32.mrf.mxu3  ;;  %3692 = vmatmul.msk.f32.vlgmr.msra.gmra.mxu3 %vm587_vm2, %v5549_v43 }
 0x490   : > { %3657 = vmatmul.msk.f32.gmra.mxu2 %vm587_vm2, %v1103_v52 }
 0x497   : > { %v1106_v11 = vpop.f32.mrf.mxu3  ;;  %3693 = vmatmul.msk.f32.gmra.mxu3 %vm587_vm2, %v2028_v32 }
 0x498   : > { %3658 = vmatmul.msk.f32.gmra.mxu2 %vm587_vm2, %v1106_v11 }
 0x499   : > { %3957 = vrot.lane.b32.xlu1 %v6471_v58, %s4296_s25 }
 0x49f   : > { %v1109_v60 = vpop.f32.mrf.mxu3  ;;  %3694 = vmatmul.msk.f32.gmra.mxu3 %vm587_vm2, %v2030_v17 }
 0x4a0   : > { %3659 = vmatmul.msk.f32.gmra.mxu2 %vm587_vm2, %v1109_v60 }
 0x4a3   : > { %v2135_v59 = vpop.xlane.xlu0 %2134 }
 0x4a4   : > { %v2179_v43 = vsub.f32 %v5488_v7, %v2135_v59 }
 0x4a6   : > { %v2196_v47 = vmul.f32 1.442695, %v2179_v43 }
 0x4a7   : > { %v1581_v19 = vpop.f32.mrf.mxu3  ;;  %3695 = vmatmul.msk.f32.gmra.mxu3 %vm587_vm2, %v2032_v29 }
 0x4a8   : > { %4153 = vpow2.f32 %v2196_v47  ;;  %3631 = vmatmul.msk.f32.gmra.mxu1 %vm587_vm2, %v1581_v19  ;;  %v2144_v1 = vpop.xlane.xlu1 %2143 }
 0x4a9   : > { %v2182_v43 = vsub.f32 %v5506_v5, %v2144_v1 }
 0x4ab   : > { %v2141_v39 = vpop.xlane.xlu0 %2140 }
 0x4ac   : > { %v2181_v9 = vsub.f32 %v5518_v25, %v2141_v39 }
 0x4ae   : > { %v5619_v20 = vpop.eup %4153  ;;  %v2200_v42 = vmul.f32 1.442695, %v2181_v9  ;;  %v2138_v13 = vpop.xlane.xlu2 %2137 }
 0x4af   : > { %v1584_v37 = vpop.f32.mrf.mxu3  ;;  %3696 = vmatmul.msk.f32.gmra.mxu3 %vm587_vm2, %v2034_v40  ;;  %v2229_v7 = vsel %vm477_vm1, %v5619_v20, 0.0  ;;  %v2180_v34 = vsub.f32 %v5526_v33, %v2138_v13  ;;  %v2202_v40 = vmul.f32 1.442695, %v2182_v43 }
 0x4b0   : > { %4155 = vpow2.f32 %v2200_v42  ;;  %3632 = vmatmul.msk.f32.gmra.mxu1 %vm587_vm2, %v1584_v37  ;;  %2230 = vadd.xlane.f32.xlu2 %v2229_v7  ;;  %v5682_v42 = vpop.f32.mrf.mxu2 }
 0x4b1   : > { %v2198_v61 = vmul.f32 1.442695, %v2180_v34 }
 0x4b3   : > { %4157 = vpow2.f32 %v2198_v61 }
 0x4b4   : > { %4159 = vpow2.f32 %v2202_v40 }
 0x4b6   : > { %v5626_v26 = vpop.eup %4155  ;;  %v2651_v25 = vpop.permute.xlu2 %2650 }
 0x4b7   : > { %v1587_v14 = vpop.f32.mrf.mxu3  ;;  %3697 = vmatmul.msk.f32.gmra.mxu3 %vm587_vm2, %v2036_v24  ;;  %v2235_v6 = vsel %vm477_vm1, %v5626_v26, 0.0 }
 0x4b8   : > { %3633 = vmatmul.msk.f32.gmra.mxu1 %vm587_vm2, %v1587_v14  ;;  %2236 = vadd.xlane.f32.xlu0 %v2235_v6  ;;  %v5690_v7 = vpop.f32.mrf.mxu2 }
 0x4b9   : > { %v5632_v51 = vpop.eup %4157 }
 0x4ba   : > { %v2232_v4 = vsel %vm477_vm1, %v5632_v51, 0.0  ;;  %v5670_v9 = vpop.eup %4159 }
 0x4be   : > { %v2038_v35 = vpop.permute.xlu2 %2037  ;;  %v2653_v63 = vpop.permute.xlu0 %2652 }
 0x4bf   : > { %v1590_v33 = vpop.f32.mrf.mxu3  ;;  %3698 = vmatmul.msk.f32.gmra.mxu3 %vm587_vm2, %v2038_v35  ;;  %3740 = vmatpush.xpose.msk.msra.mxu2 %vm587_vm2, %v2653_v63 }
 0x4c0   : > { %3634 = vmatmul.msk.f32.gmra.mxu1 %vm587_vm2, %v1590_v33  ;;  %v2040_v48 = vpop.permute.xlu1 %2039  ;;  %v5697_v61 = vpop.f32.mrf.mxu2 }
 0x4c3   : > { %2233 = vadd.xlane.f32.xlu1 %v2232_v4  ;;  %3741 = vmatpush.xpose.msk.msra.mxu2 %vm587_vm2, %v2651_v25  ;;  %v6472_v4 = vld [vmem:[#allocation24_spill] sm:$0xff] }
 0x4c6   : > { %v2645_v27 = vpop.permute.xlu2 %2644  ;;  %v2649_v44 = vpop.permute.xlu0 %2648 }
 0x4c7   : > { %v1593_v30 = vpop.f32.mrf.mxu3  ;;  %3699 = vmatmul.msk.f32.gmra.mxu3 %vm587_vm2, %v2040_v48  ;;  %3742 = vmatpush.xpose.msk.msra.mxu2 %vm587_vm2, %v2649_v44 }
 0x4c8   : > { %3635 = vmatmul.msk.f32.gmra.mxu1 %vm587_vm2, %v1593_v30  ;;  %2628 = vrot.lane.b32.xlu2 %v6465_v41, %s4297_s15  ;;  %v3948_v41 = vpop.permute.xlu1 %3947  ;;  %v5712_v48 = vpop.f32.mrf.mxu2 }
 0x4c9   : > { %v3949_v17 = vunpack.i.l.bf16 %v3948_v41  ;;  %v3950_v60 = vunpack.i.h.bf16 %v3948_v41 }
 0x4cc   : > { %2757 = vrot.lane.b32.xlu0 %v6459_v38, %s4295_s23 }
 0x4ce   : > { %v2643_v56 = vpop.permute.xlu2 %2642  ;;  %v2647_v55 = vpop.permute.xlu0 %2646 }
 0x4cf   : > { %v1661_v54 = vpop.f32.mrf.mxu3  ;;  %3743 = vmatpush.xpose.msk.msra.mxu2 %vm587_vm2, %v2647_v55  ;;  %v6474_v55 = vld [vmem:[#allocation25_spill] sm:$0xff] }
 0x4d0   : > { %3636 = vmatmul.msk.f32.gmra.mxu1 %vm587_vm2, %v1661_v54 }
 0x4d3   : > { %3744 = vmatpush.xpose.msk.msra.mxu2 %vm587_vm2, %v2645_v27 }
 0x4d4   : > { %2634 = vrot.lane.b32.xlu0 %v6460_v45, %s4297_s15 }
 0x4d6   : > { %v3943_v46 = vpop.permute.xlu2 %3942  ;;  %v2641_v23 = vpop.permute.xlu0 %2640 }
 0x4d7   : > { %v3944_v52 = vunpack.i.l.bf16 %v3943_v46  ;;  %3745 = vmatpush.xpose.msk.msra.mxu2 %vm587_vm2, %v2643_v56  ;;  %v3945_v32 = vunpack.i.h.bf16 %v3943_v46 }
 0x4d9   : > { %2362 = vmatpush.msra.mxu0 %v3944_v52 }
 0x4da   : > { %v1664_v11 = vpop.f32.mrf.mxu3 }
 0x4db   : > { %3637 = vmatmul.msk.f32.gmra.mxu1 %vm587_vm2, %v1664_v11  ;;  %2363 = vmatpush.msra.mxu0 %v3945_v32 }
 0x4dc   : > { %3746 = vmatpush.xpose.msk.msra.mxu2 %vm587_vm2, %v2641_v23  ;;  %2630 = vrot.lane.b32.xlu1 %v6464_v31, %s4297_s15 }
 0x4dd   : > { %2749 = vrot.lane.b32.xlu0 %v6453_v10, %s4295_s23  ;;  %2364 = vmatpush.msra.mxu0 %v3949_v17 }
 0x4de   : > { %v3953_v45 = vpop.permute.xlu2 %3952  ;;  %v2639_v59 = vpop.permute.xlu0 %2638 }
 0x4df   : > { %v3954_v29 = vunpack.i.l.bf16 %v3953_v45  ;;  %2365 = vmatpush.msra.mxu0 %v3950_v60  ;;  %v3955_v47 = vunpack.i.h.bf16 %v3953_v45 }
 0x4e0   : > { %3747 = vmatpush.xpose.msk.msra.mxu2 %vm587_vm2, %v2639_v59 }
 0x4e1   : > { %2366 = vmatpush.msra.mxu0 %v3954_v29 }
 0x4e2   : > { %v1667_v19 = vpop.f32.mrf.mxu3 }
 0x4e3   : > { %3638 = vmatmul.msk.f32.gmra.mxu1 %vm587_vm2, %v1667_v19  ;;  %2367 = vmatpush.msra.mxu0 %v3955_v47 }
 0x4e4   : > { %2632 = vrot.lane.b32.xlu1 %v6461_v28, %s4297_s15 }
 0x4e5   : > { %2636 = vrot.lane.b32.xlu0 %v6458_v53, %s4297_s15  ;;  %v2238_v53 = vsel %vm477_vm1, %v5670_v9, 0.0 }
 0x4e6   : > { %v2623_v31 = vpop.permute.xlu2 %2622  ;;  %v2625_v39 = vpop.permute.xlu0 %2624 }
 0x4e7   : > { %3748 = vmatmul.msk.f32.vlgmr.msra.gmra.mxu2 %vm587_vm2, %v2623_v31 }
 0x4ea   : > { %v1670_v5 = vpop.f32.mrf.mxu3 }
 0x4eb   : > { %3639 = vmatmul.msk.f32.gmra.mxu1 %vm587_vm2, %v1670_v5  ;;  %v5760_v5 = vld [vmem:[%s6367_s6 + $0xb0] sm:$0xff] }
 0x4ec   : > { %2755 = vrot.lane.b32.xlu1 %v6463_v57, %s4295_s23 }
 0x4ed   : > { %2747 = vrot.lane.b32.xlu0 %v4531_v3, %s4295_s23 }
 0x4ee   : > { %v2627_v13 = vpop.permute.xlu0 %2626 }
 0x4ef   : > { %3749 = vmatmul.msk.f32.gmra.mxu2 %vm587_vm2, %v2625_v39 }
 0x4f1   : > { %2239 = vadd.xlane.f32.xlu2 %v2238_v53 }
 0x4f2   : > { %v1673_v28 = vpop.f32.mrf.mxu3 }
 0x4f3   : > { %3640 = vmatmul.msk.f32.gmra.mxu1 %vm587_vm2, %v1673_v28  ;;  %v2228_v24 = vpop.xlane.xlu1 %2227 }
 0x4f4   : > { %2753 = vrot.lane.b32.xlu1 %v6452_v8, %s4295_s23  ;;  %4161 = vrcp.f32 %v2228_v24 }
 0x4f5   : > { %2743 = vrot.lane.b32.xlu0 %v4511_v62, %s4295_s23 }
 0x4f7   : > { %3750 = vmatmul.msk.f32.gmra.mxu2 %vm587_vm2, %v2627_v13 }
 0x4fa   : > { %v1676_v37 = vpop.f32.mrf.mxu3  ;;  %v4162_v6 = vpop.eup %4161 }
 0x4fb   : > { %3641 = vmatmul.msk.f32.gmra.mxu1 %vm587_vm2, %v1676_v37  ;;  %v2290_v63 = vmul.f32 %v4162_v6, %v5592_v36  ;;  %v6473_v36 = vld [vmem:[#allocation22_spill] sm:$0xff] }
 0x4fc   : > { %2733 = vrot.lane.b32.xlu1 %v6453_v10, %s4297_s15  ;;  %v5699_v10 = vpop.f32.mrf.mxu1 }
 0x4fd   : > { %2729 = vrot.lane.b32.xlu0 %v4520_v0, %s4297_s15 }
 0x502   : > { %v1679_v34 = vpop.f32.mrf.mxu3 }
 0x503   : > { %3642 = vmatmul.msk.f32.gmra.mxu1 %vm587_vm2, %v1679_v34 }
 0x504   : > { %2739 = vrot.lane.b32.xlu1 %v6463_v57, %s4297_s15  ;;  %v5708_v33 = vpop.f32.mrf.mxu1 }
 0x509   : > { %2751 = vrot.lane.b32.xlu2 %v4567_v12, %s4295_s23 }
 0x50a   : > { %v1682_v25 = vpop.f32.mrf.mxu3 }
 0x50b   : > { %v3958_v14 = vpop.permute.xlu1 %3957  ;;  %3643 = vmatmul.msk.f32.gmra.mxu1 %vm587_vm2, %v1682_v25 }
 0x50c   : > { %v3959_v1 = vunpack.i.l.bf16 %v3958_v14  ;;  %v3960_v35 = vunpack.i.h.bf16 %v3958_v14  ;;  %v5720_v44 = vpop.f32.mrf.mxu1 }
 0x50e   : > { %2368 = vmatpush.msra.mxu0 %v3959_v1 }
 0x510   : > { %2369 = vmatpush.msra.mxu0 %v3960_v35 }
 0x511   : > { %3700 = vmatmul.msk.f32.vlgmr.msra.gmra.mxu0 %vm477_vm1, %v2290_v63  ;;  %2745 = vrot.lane.b32.xlu2 %v4520_v0, %s4295_s23  ;;  %v5722_v0 = vpop.f32.mrf.mxu2 }
 0x512   : > { %v5706_v57 = vpop.f32.mrf.mxu3 }
 0x513   : > { %3681 = vmatmul.msk.f32.vlgmr.msrb.gmra.mxu1 %vm587_vm2, %v6472_v4 }
 0x519   : > { %2727 = vrot.lane.b32.xlu2 %v4511_v62, %s4297_s15  ;;  %v5728_v46 = vpop.f32.mrf.mxu2 }
 0x51a   : > { %v5716_v27 = vpop.f32.mrf.mxu3 }
 0x51b   : > { %3682 = vmatmul.msk.f32.gmra.mxu1 %vm587_vm2, %v6473_v36 }
 0x521   : > { %v5742_v60 = vpop.f32.mrf.mxu2 }
 0x522   : > { %v2112_v30 = vpop.f32.mrf.mxu3  ;;  %6475 = vst [vmem:[#allocation17_spill] sm:$0xff] %v5742_v60 }
 0x523   : > { %v2231_v56 = vpop.xlane.xlu2 %2230  ;;  %3683 = vmatmul.msk.f32.gmra.mxu1 %vm587_vm2, %v6474_v55  ;;  %v5731_v62 = vadd.f32 %v5515_v49, %v2112_v30  ;;  %v6485_v30 = vld [vmem:[#allocation20_spill] sm:$0xff] }
 0x524   : > { %4163 = vrcp.f32 %v2231_v56 }
 0x525   : > { %v5726_v54 = vpop.f32.mrf.mxu1  ;;  %v2160_v17 = vsel %vm477_vm1, %v5731_v62, -inf }
 0x529   : > { %v5750_v29 = vpop.f32.mrf.mxu2 }
 0x52a   : > { %v4164_v23 = vpop.eup %4163  ;;  %v5733_v52 = vpop.f32.mrf.mxu3  ;;  %6476 = vst [vmem:[#allocation14_spill] sm:$0xff] %v5750_v29 }
 0x52b   : > { %v2629_v41 = vpop.permute.xlu2 %2628  ;;  %v2291_v32 = vmul.f32 %v4164_v23, %v5619_v20  ;;  %v2237_v59 = vpop.xlane.xlu0 %2236 }
 0x52c   : > { %3751 = vmatmul.msk.f32.gmra.mxu2 %vm587_vm2, %v2629_v41 }
 0x52d   : > { %v5737_v11 = vpop.f32.mrf.mxu1  ;;  %3701 = vmatmul.msk.f32.gmra.mxu0 %vm477_vm1, %v2291_v32  ;;  %v6487_v32 = vld [vmem:[#allocation15_spill] sm:$0xff] }
 0x52e   : > { %2161 = vmax.xlane.f32.xlu1 %v2160_v17 }
 0x531   : > { %v5765_v13 = vpop.f32.mrf.mxu2 }
 0x532   : > { %v5744_v49 = vpop.f32.mrf.mxu3  ;;  %6478 = vst [vmem:[#allocation23_spill] sm:$0xff] %v5765_v13 }
 0x535   : > { %v5746_v45 = vpop.f32.mrf.mxu1 }
 0x536   : > { %v2234_v43 = vpop.xlane.xlu1 %2233 }
 0x537   : > { %4165 = vrcp.f32 %v2234_v43 }
 0x538   : > { %4167 = vrcp.f32 %v2237_v59 }
 0x539   : > { %v5773_v24 = vpop.f32.mrf.mxu2 }
 0x53a   : > { %v5748_v20 = vpop.f32.mrf.mxu3  ;;  %6480 = vst [vmem:[#allocation28_spill] sm:$0xff] %v5773_v24 }
 0x53d   : > { %v4166_v47 = vpop.eup %4165  ;;  %v5752_v19 = vpop.f32.mrf.mxu1 }
 0x53e   : > { %6477 = vst [vmem:[#allocation27_spill] sm:$0xff] %v5752_v19  ;;  %v2758_v40 = vpop.permute.xlu0 %2757  ;;  %v2292_v31 = vmul.f32 %v4166_v47, %v5632_v51  ;;  %v4168_v53 = vpop.eup %4167 }
 0x53f   : > { %3756 = vmatpush.xpose.msk.msrb.mxu0 %vm587_vm2, %v2758_v40  ;;  %v2293_v34 = vmul.f32 %v4168_v53, %v5626_v26 }
 0x540   : > { %3702 = vmatmul.msk.f32.gmra.mxu0 %vm477_vm1, %v2292_v31  ;;  %v553_v31 = vld [vmem:[%s6365_s4 + $0x10] sm:$0xff] }
 0x541   : > { %v5778_v1 = vpop.f32.mrf.mxu2  ;;  %2547 = vmatpush.msra.mxu1 %v553_v31 }
 0x542   : > { %v2124_v39 = vpop.f32.mrf.mxu3  ;;  %6482 = vst [vmem:[#allocation19_spill] sm:$0xff] %v5778_v1  ;;  %v5958_v1 = vld [vmem:[%s6367_s6 + $0xf0] sm:$0xff] }
 0x543   : > { %v5763_v28 = vadd.f32 %v5760_v5, %v2124_v39 }
 0x545   : > { %v2172_v37 = vsel %vm477_vm1, %v5763_v28, -inf  ;;  %v5769_v51 = vpop.f32.mrf.mxu1 }
 0x546   : > { %6479 = vst [vmem:[#allocation26_spill] sm:$0xff] %v5769_v51  ;;  %2173 = vmax.xlane.f32.xlu1 %v2172_v37  ;;  %v2635_v6 = vpop.permute.xlu0 %2634 }
 0x548   : > { %3703 = vmatmul.msk.f32.gmra.mxu0 %vm477_vm1, %v2293_v34 }
 0x549   : > { %v5785_v26 = vpop.f32.mrf.mxu2 }
 0x54a   : > { %6484 = vst [vmem:[#allocation9_spill] sm:$0xff] %v5785_v26 }
 0x54d   : > { %v5776_v14 = vpop.f32.mrf.mxu1 }
 0x54e   : > { %v2631_v25 = vpop.permute.xlu1 %2630  ;;  %6481 = vst [vmem:[#allocation12_spill] sm:$0xff] %v5776_v14 }
 0x54f   : > { %3752 = vmatmul.msk.f32.gmra.mxu2 %vm587_vm2, %v2631_v25  ;;  %v2750_v4 = vpop.permute.xlu0 %2749 }
 0x551   : > { %v5797_v59 = vpop.f32.mrf.mxu2 }
 0x552   : > { %6489 = vst [vmem:[#allocation7_spill] sm:$0xff] %v5797_v59  ;;  %v5917_v59 = vld [vmem:[%s6367_s6 + $0xc0] sm:$0xff] }
 0x556   : > { %v2633_v35 = vpop.permute.xlu1 %2632 }
 0x557   : > { %3753 = vmatmul.msk.f32.gmra.mxu2 %vm587_vm2, %v2633_v35  ;;  %v2637_v23 = vpop.permute.xlu0 %2636 }
 0x558   : > { %v5781_v63 = vpop.f32.mrf.mxu1 }
 0x559   : > { %6483 = vst [vmem:[#allocation10_spill] sm:$0xff] %v5781_v63  ;;  %v5808_v37 = vpop.f32.mrf.mxu2  ;;  %v6000_v63 = vld [vmem:[%s6367_s6 + $0xe0] sm:$0xff] }
 0x55a   : > { %6491 = vst [vmem:[#allocation3_spill] sm:$0xff] %v5808_v37 }
 0x55e   : > { %v2756_v36 = vpop.permute.xlu1 %2755 }
 0x55f   : > { %3754 = vmatmul.msk.f32.gmra.mxu2 %vm587_vm2, %v2635_v6  ;;  %3757 = vmatpush.xpose.msk.msrb.mxu0 %vm587_vm2, %v2756_v36  ;;  %v2748_v53 = vpop.permute.xlu0 %2747 }
 0x560   : > { %3967 = vrot.lane.b32.xlu1 %v6485_v30, %s4296_s25  ;;  %v5789_v56 = vpop.f32.mrf.mxu1 }
 0x561   : > { %6486 = vst [vmem:[#allocation11_spill] sm:$0xff] %v5789_v56  ;;  %v5815_v6 = vpop.f32.mrf.mxu2 }
 0x562   : > { %6493 = vst [vmem:[#allocation2_spill] sm:$0xff] %v5815_v6 }
 0x564   : > { %v2240_v55 = vpop.xlane.xlu2 %2239 }
 0x565   : > { %4169 = vrcp.f32 %v2240_v55 }
 0x566   : > { %v2754_v41 = vpop.permute.xlu1 %2753 }
 0x567   : > { %3755 = vmatmul.msk.f32.gmra.mxu2 %vm587_vm2, %v2637_v23  ;;  %3758 = vmatpush.xpose.msk.msrb.mxu0 %vm587_vm2, %v2754_v41  ;;  %v2744_v25 = vpop.permute.xlu0 %2743  ;;  %v5825_v41 = vld [vmem:[%s6367_s6 + $0xa8] sm:$0xff] }
 0x568   : > { %3972 = vrot.lane.b32.xlu1 %v6487_v32, %s4296_s25  ;;  %v5795_v17 = vpop.f32.mrf.mxu1 }
 0x569   : > { %6488 = vst [vmem:[#allocation18_spill] sm:$0xff] %v5795_v17  ;;  %v1908_v36 = vpop.f32.mrf.mxu2  ;;  %v5935_v17 = vld [vmem:[%s6367_s6 + $0xe8] sm:$0xff] }
 0x56b   : > { %v4170_v43 = vpop.eup %4169 }
 0x56c   : > { %v2752_v47 = vpop.permute.xlu2 %2751  ;;  %v2294_v40 = vmul.f32 %v4170_v43, %v5670_v9 }
 0x56d   : > { %3759 = vmatpush.xpose.msk.msrb.mxu0 %vm587_vm2, %v2752_v47 }
 0x56e   : > { %3704 = vmatmul.msk.f32.gmra.mxu0 %vm477_vm1, %v2294_v40 }
 0x570   : > { %v5805_v39 = vpop.f32.mrf.mxu1 }
 0x571   : > { %6490 = vst [vmem:[#allocation6_spill] sm:$0xff] %v5805_v39  ;;  %3760 = vmatpush.xpose.msk.msrb.mxu0 %vm587_vm2, %v2750_v4 }
 0x574   : > { %v2746_v34 = vpop.permute.xlu2 %2745 }
 0x575   : > { %3761 = vmatpush.xpose.msk.msrb.mxu0 %vm587_vm2, %v2748_v53 }
 0x578   : > { %v5811_v9 = vpop.f32.mrf.mxu1 }
 0x579   : > { %6492 = vst [vmem:[#allocation4_spill] sm:$0xff] %v5811_v9  ;;  %3762 = vmatpush.xpose.msk.msrb.mxu0 %vm587_vm2, %v2746_v34 }
 0x57d   : > { %3763 = vmatpush.xpose.msk.msrb.mxu0 %vm587_vm2, %v2744_v25 }
 0x580   : > { %v5817_v35 = vpop.f32.mrf.mxu1 }
 0x581   : > { %6494 = vst [vmem:[#allocation13_spill] sm:$0xff] %v5817_v35 }
 0x588   : > { %v1795_v55 = vpop.f32.mrf.mxu1 }
 0x589   : > { %v5819_v4 = vadd.f32 %v1908_v36, %v1795_v55 }
 0x58b   : > { %6495 = vst [vmem:[#allocation8_spill] sm:$0xff] %v5819_v4 }
 0x58e   : > { %v2371_v23 = vpop.f32.mrf.mxu0 }
 0x58f   : > { %3716 = vmatmul.msk.f32.vlgmr.msra.gmra.mxu1 %vm587_vm2, %v2371_v23 }
 0x590   : > { %v2016_v43 = vpop.f32.mrf.mxu1 }
 0x591   : > { %v2017_v47 = vadd.f32 %v5825_v41, %v2016_v43 }
 0x593   : > { %v2145_v40 = vsel %vm477_vm1, %v2017_v47, -inf }
 0x594   : > { %2146 = vmax.xlane.f32.xlu0 %v2145_v40  ;;  %v2107_v40 = vadd.f32 %v5415_v21, %v5706_v57 }
 0x598   : > { %v2019_v31 = vpop.f32.mrf.mxu1 }
 0x599   : > { %v2020_v53 = vadd.f32 %v5760_v5, %v2019_v31  ;;  %v3667_v5 = vld [vmem:[%s6367_s6 + $0xb8] sm:$0xff] }
 0x59b   : > { %v2148_v34 = vsel %vm477_vm1, %v2020_v53, -inf }
 0x59c   : > { %2149 = vmax.xlane.f32.xlu2 %v2148_v34  ;;  %v5848_v34 = vpop.permute.xlu0 %2729 }
 0x5a0   : > { %v2022_v23 = vpop.f32.mrf.mxu1 }
 0x5a1   : > { %v2023_v43 = vadd.f32 %v3667_v5, %v2022_v23 }
 0x5a8   : > { %2735 = vrot.lane.b32.xlu0 %v4567_v12, %s4297_s15  ;;  %v2151_v12 = vsel %vm477_vm1, %v2023_v43, -inf }
 0x5aa   : > { %v2374_v25 = vpop.f32.mrf.mxu0 }
 0x5ab   : > { %3717 = vmatmul.msk.f32.gmra.mxu1 %vm587_vm2, %v2374_v25  ;;  %v5850_v25 = vpop.permute.xlu2 %2727 }
 0x5b4   : > { %2731 = vrot.lane.b32.xlu2 %v4531_v3, %s4297_s15  ;;  %v2154_v3 = vsel %vm477_vm1, %v2107_v40, -inf }
 0x5bd   : > { %v2377_v36 = vpop.f32.mrf.mxu0 }
 0x5be   : > { %3718 = vmatmul.msk.f32.gmra.mxu1 %vm587_vm2, %v2377_v36 }
 0x5c5   : > { %v2380_v55 = vpop.f32.mrf.mxu0 }
 0x5c6   : > { %3719 = vmatmul.msk.f32.gmra.mxu1 %vm587_vm2, %v2380_v55 }
 0x5d2   : > { %2152 = vmax.xlane.f32.xlu0 %v2151_v12  ;;  %v2110_v12 = vadd.f32 %v5481_v16, %v5716_v27 }
 0x5d4   : > { %v2157_v57 = vsel %vm477_vm1, %v2110_v12, -inf }
 0x5dd   : > { %2155 = vmax.xlane.f32.xlu2 %v2154_v3 }
 0x5e6   : > { %2737 = vrot.lane.b32.xlu0 %v6452_v8, %s4297_s15 }
 0x5eb   : > { %v2383_v31 = vpop.f32.mrf.mxu0 }
 0x5ec   : > { %3720 = vmatmul.msk.f32.gmra.mxu1 %vm587_vm2, %v2383_v31 }
 0x607   : > { %v2147_v36 = vpop.xlane.xlu0 %2146 }
 0x608   : > { %v2183_v55 = vsub.f32 %v2017_v47, %v2147_v36  ;;  %v5863_v47 = vadd.f32 %v5503_v50, %v5733_v52  ;;  %v6496_v50 = vld [vmem:[#allocation21_spill] sm:$0xff] }
 0x60a   : > { %v2204_v23 = vmul.f32 1.442695, %v2183_v55  ;;  %v2163_v27 = vsel %vm477_vm1, %v5863_v47, -inf }
 0x60c   : > { %4171 = vpow2.f32 %v2204_v23 }
 0x60f   : > { %v2150_v21 = vpop.xlane.xlu2 %2149 }
 0x610   : > { %v2184_v3 = vsub.f32 %v2020_v53, %v2150_v21  ;;  %2158 = vmax.xlane.f32.xlu0 %v2157_v57  ;;  %v5871_v53 = vadd.f32 %v5494_v22, %v5744_v49 }
 0x612   : > { %v2206_v8 = vmul.f32 1.442695, %v2184_v3  ;;  %v5855_v4 = vpop.eup %4171  ;;  %v2166_v36 = vsel %vm477_vm1, %v5871_v53, -inf }
 0x613   : > { %v2241_v31 = vsel %vm477_vm1, %v5855_v4, 0.0 }
 0x614   : > { %4173 = vpow2.f32 %v2206_v8 }
 0x617   : > { %v5881_v57 = vpop.permute.xlu2 %2731 }
 0x618   : > { %2242 = vadd.xlane.f32.xlu0 %v2241_v31 }
 0x61a   : > { %v5859_v6 = vpop.eup %4173  ;;  %v5879_v52 = vpop.permute.xlu0 %2735 }
 0x61b   : > { %v2244_v16 = vsel %vm477_vm1, %v5859_v6, 0.0 }
 0x61c   : > { %2245 = vadd.xlane.f32.xlu2 %v2244_v16  ;;  %v2127_v16 = vpop.f32.mrf.mxu3 }
 0x620   : > { %2164 = vmax.xlane.f32.xlu0 %v2163_v27  ;;  %v5893_v27 = vadd.f32 %v3667_v5, %v2127_v16 }
 0x628   : > { %2167 = vmax.xlane.f32.xlu0 %v2166_v36 }
 0x634   : > { %2741 = vrot.lane.b32.xlu2 %v6459_v38, %s4297_s15  ;;  %v5889_v38 = vadd.f32 %v5825_v41, %v5748_v20  ;;  %v6497_v41 = vld [vmem:[#allocation16_spill] sm:$0xff] }
 0x63c   : > { %3962 = vrot.lane.b32.xlu0 %v6496_v50, %s4296_s25 }
 0x645   : > { %v2153_v55 = vpop.xlane.xlu0 %2152 }
 0x646   : > { %v2185_v23 = vsub.f32 %v2023_v43, %v2153_v55  ;;  %v2169_v43 = vsel %vm477_vm1, %v5889_v38, -inf  ;;  %v2175_v55 = vsel %vm477_vm1, %v5893_v27, -inf }
 0x648   : > { %v2208_v21 = vmul.f32 1.442695, %v2185_v23  ;;  %v2703_v23 = vpop.f32.mrf.mxu2 }
 0x64a   : > { %4175 = vpow2.f32 %v2208_v21  ;;  %v5903_v21 = vpop.permute.xlu1 %2733 }
 0x650   : > { %v5883_v22 = vpop.eup %4175  ;;  %v2156_v49 = vpop.xlane.xlu2 %2155 }
 0x651   : > { %v2247_v3 = vsel %vm477_vm1, %v5883_v22, 0.0  ;;  %v2186_v8 = vsub.f32 %v2107_v40, %v2156_v49  ;;  %v2706_v40 = vpop.f32.mrf.mxu2 }
 0x652   : > { %2248 = vadd.xlane.f32.xlu1 %v2247_v3  ;;  %v5905_v5 = vpop.permute.xlu1 %2739 }
 0x653   : > { %v2210_v31 = vmul.f32 1.442695, %v2186_v8 }
 0x655   : > { %4177 = vpow2.f32 %v2210_v31 }
 0x658   : > { %v5907_v3 = vpop.permute.xlu0 %2737 }
 0x659   : > { %v2709_v49 = vpop.f32.mrf.mxu2 }
 0x65a   : > { %v2162_v31 = vpop.xlane.xlu1 %2161 }
 0x65b   : > { %v5895_v36 = vpop.eup %4177 }
 0x65c   : > { %v2250_v20 = vsel %vm477_vm1, %v5895_v36, 0.0 }
 0x65d   : > { %2170 = vmax.xlane.f32.xlu2 %v2169_v43 }
 0x661   : > { %v5909_v8 = vpop.f32.mrf.mxu2 }
 0x665   : > { %2176 = vmax.xlane.f32.xlu2 %v2175_v55  ;;  %v2188_v55 = vsub.f32 %v5731_v62, %v2162_v31  ;;  %v5924_v62 = vadd.f32 %v5917_v59, %v2703_v23 }
 0x666   : > { %2251 = vadd.xlane.f32.xlu0 %v2250_v20 }
 0x667   : > { %v2214_v37 = vmul.f32 1.442695, %v2188_v55 }
 0x669   : > { %v5912_v20 = vpop.f32.mrf.mxu2 }
 0x66b   : > { %3977 = vrot.lane.b32.xlu1 %v6497_v41, %s4296_s25 }
 0x671   : > { %v2718_v31 = vpop.f32.mrf.mxu2 }
 0x683   : > { %v2159_v43 = vpop.xlane.xlu0 %2158 }
 0x684   : > { %v2187_v16 = vsub.f32 %v2110_v12, %v2159_v43 }
 0x686   : > { %v2212_v35 = vmul.f32 1.442695, %v2187_v16 }
 0x688   : > { %4179 = vpow2.f32 %v2212_v35 }
 0x68b   : > { %v2243_v9 = vpop.xlane.xlu0 %2242 }
 0x68c   : > { %4181 = vrcp.f32 %v2243_v9 }
 0x68d   : > { %4183 = vpow2.f32 %v2214_v37  ;;  %v2832_v37 = vsel %vm477_vm1, %v5924_v62, -inf }
 0x68e   : > { %v5919_v39 = vpop.eup %4179 }
 0x68f   : > { %v2246_v26 = vpop.xlane.xlu2 %2245  ;;  %v2253_v12 = vsel %vm477_vm1, %v5919_v39, 0.0 }
 0x690   : > { %2254 = vadd.xlane.f32.xlu2 %v2253_v12  ;;  %4185 = vrcp.f32 %v2246_v26  ;;  %v5946_v12 = vadd.f32 %v5935_v17, %v2718_v31  ;;  %v2721_v31 = vpop.f32.mrf.mxu2 }
 0x692   : > { %v4182_v35 = vpop.eup %4181 }
 0x693   : > { %v2165_v9 = vpop.xlane.xlu0 %2164  ;;  %v2295_v43 = vmul.f32 %v4182_v35, %v5855_v4  ;;  %v5927_v16 = vpop.eup %4183 }
 0x694   : > { %v2189_v55 = vsub.f32 %v5863_v47, %v2165_v9  ;;  %v2256_v23 = vsel %vm477_vm1, %v5927_v16, 0.0  ;;  %v5943_v47 = vld [vmem:[%s6367_s6 + $0xc8] sm:$0xff] }
 0x695   : > { %2833 = vmax.xlane.f32.xlu1 %v2832_v37  ;;  %3705 = vmatmul.msk.f32.gmra.mxu0 %vm477_vm1, %v2295_v43  ;;  %v5949_v35 = vadd.f32 %v5943_v47, %v2706_v40  ;;  %v2847_v37 = vsel %vm477_vm1, %v5946_v12, -inf }
 0x696   : > { %v2216_v26 = vmul.f32 1.442695, %v2189_v55  ;;  %v4186_v4 = vpop.eup %4185 }
 0x697   : > { %v2296_v43 = vmul.f32 %v4186_v4, %v5859_v6  ;;  %v2835_v6 = vsel %vm477_vm1, %v5949_v35, -inf  ;;  %v5973_v4 = vadd.f32 %v5958_v1, %v2721_v31 }
 0x698   : > { %4187 = vpow2.f32 %v2216_v26  ;;  %2257 = vadd.xlane.f32.xlu2 %v2256_v23  ;;  %v5970_v23 = vld [vmem:[%s6367_s6 + $0xd0] sm:$0xff] }
 0x69b   : > { %v2168_v9 = vpop.xlane.xlu0 %2167 }
 0x69c   : > { %v2190_v55 = vsub.f32 %v5871_v53, %v2168_v9  ;;  %v2174_v9 = vpop.xlane.xlu1 %2173 }
 0x69d   : > { %2848 = vmax.xlane.f32.xlu1 %v2847_v37  ;;  %3706 = vmatmul.msk.f32.gmra.mxu0 %vm477_vm1, %v2296_v43  ;;  %v5976_v43 = vadd.f32 %v5970_v23, %v2709_v49 }
 0x69e   : > { %v5961_v26 = vpop.eup %4187  ;;  %v2218_v40 = vmul.f32 1.442695, %v2190_v55  ;;  %v2850_v55 = vsel %vm477_vm1, %v5973_v4, -inf }
 0x69f   : > { %v2259_v53 = vsel %vm477_vm1, %v5961_v26, 0.0  ;;  %v2838_v56 = vsel %vm477_vm1, %v5976_v43, -inf }
 0x6a0   : > { %4189 = vpow2.f32 %v2218_v40  ;;  %2836 = vmax.xlane.f32.xlu2 %v2835_v6  ;;  %2260 = vadd.xlane.f32.xlu0 %v2259_v53  ;;  %v5989_v40 = vld [vmem:[%s6367_s6 + $0xd8] sm:$0xff] }
 0x6a1   : > { %v5993_v6 = vadd.f32 %v5989_v40, %v5909_v8 }
 0x6a3   : > { %v2841_v24 = vsel %vm477_vm1, %v5993_v6, -inf }
 0x6a4   : > { %v3968_v49 = vpop.permute.xlu1 %3967 }
 0x6a5   : > { %2851 = vmax.xlane.f32.xlu1 %v2850_v55  ;;  %v3970_v14 = vunpack.i.h.bf16 %v3968_v49 }
 0x6a6   : > { %v5980_v37 = vpop.eup %4189 }
 0x6a7   : > { %v2262_v31 = vsel %vm477_vm1, %v5980_v37, 0.0 }
 0x6a8   : > { %2839 = vmax.xlane.f32.xlu2 %v2838_v56  ;;  %2263 = vadd.xlane.f32.xlu0 %v2262_v31  ;;  %v3969_v56 = vunpack.i.l.bf16 %v3968_v49  ;;  %v6004_v31 = vadd.f32 %v6000_v63, %v5912_v20 }
 0x6aa   : > { %v2844_v51 = vsel %vm477_vm1, %v6004_v31, -inf }
 0x6ac   : > { %v3973_v8 = vpop.permute.xlu1 %3972 }
 0x6ad   : > { %v3974_v29 = vunpack.i.l.bf16 %v3973_v8  ;;  %v3975_v60 = vunpack.i.h.bf16 %v3973_v8 }
 0x6ae   : > { %v3963_v53 = vpop.permute.xlu0 %3962 }
 0x6af   : > { %v3964_v55 = vunpack.i.l.bf16 %v3963_v53  ;;  %v3965_v13 = vunpack.i.h.bf16 %v3963_v53  ;;  %v2742_v53 = vpop.permute.xlu2 %2741 }
 0x6b0   : > { %2842 = vmax.xlane.f32.xlu2 %v2841_v24 }
 0x6b1   : > { %2451 = vmatpush.msrb.mxu3 %v3964_v55 }
 0x6b3   : > { %2452 = vmatpush.msrb.mxu3 %v3965_v13 }
 0x6b5   : > { %2453 = vmatpush.msrb.mxu3 %v3969_v56 }
 0x6b7   : > { %2454 = vmatpush.msrb.mxu3 %v3970_v14  ;;  %v2192_v14 = vsub.f32 %v5763_v28, %v2174_v9 }
 0x6b8   : > { %2845 = vmax.xlane.f32.xlu2 %v2844_v51 }
 0x6b9   : > { %2455 = vmatpush.msrb.mxu3 %v3974_v29  ;;  %v2222_v19 = vmul.f32 1.442695, %v2192_v14 }
 0x6bb   : > { %2456 = vmatpush.msrb.mxu3 %v3975_v60 }
 0x6c5   : > { %v2249_v24 = vpop.xlane.xlu1 %2248 }
 0x6c6   : > { %4191 = vrcp.f32 %v2249_v24 }
 0x6cc   : > { %v4192_v55 = vpop.eup %4191 }
 0x6cd   : > { %v2297_v20 = vmul.f32 %v4192_v55, %v5883_v22 }
 0x6cf   : > { %3707 = vmatmul.msk.f32.gmra.mxu0 %vm477_vm1, %v2297_v20 }
 0x6d0   : > { %v2171_v13 = vpop.xlane.xlu2 %2170 }
 0x6d1   : > { %v2191_v49 = vsub.f32 %v5889_v38, %v2171_v13 }
 0x6d3   : > { %v2220_v56 = vmul.f32 1.442695, %v2191_v49 }
 0x6d5   : > { %4193 = vpow2.f32 %v2220_v56 }
 0x6d7   : > { %3764 = vmatmul.msk.f32.vlgmr.msrb.gmra.mxu0 %vm587_vm2, %v5850_v25 }
 0x6d8   : > { %v2177_v60 = vpop.xlane.xlu2 %2176 }
 0x6d9   : > { %v2193_v29 = vsub.f32 %v5893_v27, %v2177_v60  ;;  %v2252_v51 = vpop.xlane.xlu0 %2251 }
 0x6da   : > { %4195 = vrcp.f32 %v2252_v51 }
 0x6db   : > { %v6015_v8 = vpop.eup %4193  ;;  %4197 = vpow2.f32 %v2222_v19  ;;  %v2224_v22 = vmul.f32 1.442695, %v2193_v29 }
 0x6dc   : > { %v2265_v38 = vsel %vm477_vm1, %v6015_v8, 0.0 }
 0x6dd   : > { %4199 = vpow2.f32 %v2224_v22  ;;  %v3978_v28 = vpop.permute.xlu1 %3977  ;;  %2266 = vadd.xlane.f32.xlu0 %v2265_v38 }
 0x6de   : > { %v3979_v9 = vunpack.i.l.bf16 %v3978_v28  ;;  %v3980_v24 = vunpack.i.h.bf16 %v3978_v28 }
 0x6df   : > { %3765 = vmatmul.msk.f32.gmra.mxu0 %vm587_vm2, %v5848_v34 }
 0x6e0   : > { %v4196_v25 = vpop.eup %4195  ;;  %2457 = vmatpush.msrb.mxu3 %v3979_v9 }
 0x6e1   : > { %v6021_v27 = vpop.eup %4197  ;;  %v2298_v55 = vmul.f32 %v4196_v25, %v5895_v36 }
 0x6e2   : > { %2458 = vmatpush.msrb.mxu3 %v3980_v24  ;;  %v2268_v13 = vsel %vm477_vm1, %v6021_v27, 0.0 }
 0x6e3   : > { %v6024_v19 = vpop.eup %4199  ;;  %3708 = vmatmul.msk.f32.vlgmr.msrb.gmra.mxu3 %vm477_vm1, %v2298_v55 }
 0x6e4   : > { %v2271_v20 = vsel %vm477_vm1, %v6024_v19, 0.0 }
 0x6e5   : > { %2272 = vadd.xlane.f32.xlu2 %v2271_v20  ;;  %2269 = vadd.xlane.f32.xlu0 %v2268_v13 }
 0x6e7   : > { %3766 = vmatmul.msk.f32.gmra.mxu0 %vm587_vm2, %v5881_v57 }
 0x6ef   : > { %3767 = vmatmul.msk.f32.gmra.mxu0 %vm587_vm2, %v5903_v21 }
 0x6f7   : > { %3768 = vmatmul.msk.f32.gmra.mxu0 %vm587_vm2, %v5879_v52 }
 0x6f9   : > { %3982 = vrot.lane.b32.xlu0 %v6469_v18, %s4298_s27 }
 0x6fd   : > { %3987 = vrot.lane.b32.xlu2 %v6462_v15, %s4298_s27 }
 0x6ff   : > { %3769 = vmatmul.msk.f32.gmra.mxu0 %vm587_vm2, %v5907_v3 }
 0x701   : > { %3992 = vrot.lane.b32.xlu0 %v6470_v2, %s4298_s27 }
 0x703   : > { %v2255_v34 = vpop.xlane.xlu2 %2254 }
 0x704   : > { %4201 = vrcp.f32 %v2255_v34 }
 0x707   : > { %3770 = vmatmul.msk.f32.gmra.mxu0 %vm587_vm2, %v5905_v5 }
 0x708   : > { %v2834_v57 = vpop.xlane.xlu1 %2833 }
 0x709   : > { %v2880_v52 = vsub.f32 %v5924_v62, %v2834_v57  ;;  %3997 = vrot.lane.b32.xlu0 %v6471_v58, %s4298_s27 }
 0x70a   : > { %v4202_v18 = vpop.eup %4201 }
 0x70b   : > { %v2896_v36 = vmul.f32 1.442695, %v2880_v52  ;;  %v2258_v15 = vpop.xlane.xlu2 %2257  ;;  %v2299_v21 = vmul.f32 %v4202_v18, %v5919_v39 }
 0x70c   : > { %4203 = vrcp.f32 %v2258_v15 }
 0x70d   : > { %4205 = vpow2.f32 %v2896_v36  ;;  %3709 = vmatmul.msk.f32.gmra.mxu3 %vm477_vm1, %v2299_v21 }
 0x70f   : > { %3771 = vmatmul.msk.f32.gmra.mxu0 %vm587_vm2, %v2742_v53  ;;  %v6064_v53 = vld [vmem:[%s6367_s6 + $0xf8] sm:$0xff] }
 0x710   : > { %v2849_v2 = vpop.xlane.xlu1 %2848 }
 0x711   : > { %v2885_v5 = vsub.f32 %v5946_v12, %v2849_v2  ;;  %v2724_v12 = vpop.f32.mrf.mxu2 }
 0x712   : > { %v4204_v3 = vpop.eup %4203  ;;  %v2386_v49 = vpop.f32.mrf.mxu0  ;;  %v6068_v22 = vadd.f32 %v6064_v53, %v2724_v12 }
 0x713   : > { %v6054_v62 = vpop.eup %4205  ;;  %v2837_v14 = vpop.xlane.xlu2 %2836  ;;  %3721 = vmatmul.msk.f32.gmra.mxu1 %vm587_vm2, %v2386_v49  ;;  %v2300_v56 = vmul.f32 %v4204_v3, %v5927_v16  ;;  %v2906_v29 = vmul.f32 1.442695, %v2885_v5 }
 0x714   : > { %v2261_v58 = vpop.xlane.xlu0 %2260  ;;  %v2881_v39 = vsub.f32 %v5949_v35, %v2837_v14  ;;  %v2928_v60 = vsel %vm477_vm1, %v6054_v62, 0.0  ;;  %v2853_v25 = vsel %vm477_vm1, %v6068_v22, -inf }
 0x715   : > { %4207 = vrcp.f32 %v2261_v58  ;;  %2929 = vadd.xlane.f32.xlu1 %v2928_v60  ;;  %3710 = vmatmul.msk.f32.gmra.mxu3 %vm477_vm1, %v2300_v56 }
 0x716   : > { %v2898_v51 = vmul.f32 1.442695, %v2881_v39  ;;  %4209 = vpow2.f32 %v2906_v29 }
 0x718   : > { %4211 = vpow2.f32 %v2898_v51  ;;  %v2852_v15 = vpop.xlane.xlu1 %2851 }
 0x71a   : > { %v2389_v35 = vpop.f32.mrf.mxu0 }
 0x71b   : > { %v4208_v16 = vpop.eup %4207  ;;  %v2840_v38 = vpop.xlane.xlu2 %2839  ;;  %3722 = vmatmul.msk.f32.gmra.mxu1 %vm587_vm2, %v2389_v35 }
 0x71c   : > { %v2264_v28 = vpop.xlane.xlu0 %2263  ;;  %v2301_v9 = vmul.f32 %v4208_v16, %v5961_v26  ;;  %v6075_v24 = vpop.eup %4209  ;;  %v2882_v20 = vsub.f32 %v5976_v43, %v2840_v38  ;;  %v2886_v43 = vsub.f32 %v5973_v4, %v2852_v15 }
 0x71d   : > { %4213 = vrcp.f32 %v2264_v28  ;;  %2854 = vmax.xlane.f32.xlu1 %v2853_v25  ;;  %v2943_v36 = vsel %vm477_vm1, %v6075_v24, 0.0 }
 0x71e   : > { %3711 = vmatmul.msk.f32.gmra.mxu3 %vm477_vm1, %v2301_v9  ;;  %v6077_v55 = vpop.eup %4211  ;;  %v2900_v18 = vmul.f32 1.442695, %v2882_v20  ;;  %v2908_v2 = vmul.f32 1.442695, %v2886_v43 }
 0x71f   : > { %v2931_v26 = vsel %vm477_vm1, %v6077_v55, 0.0 }
 0x723   : > { %v4214_v13 = vpop.eup %4213  ;;  %v2843_v34 = vpop.xlane.xlu2 %2842 }
 0x724   : > { %v2302_v57 = vmul.f32 %v4214_v13, %v5980_v37  ;;  %v2883_v52 = vsub.f32 %v5993_v6, %v2843_v34 }
 0x725   : > { %2932 = vadd.xlane.f32.xlu1 %v2931_v26 }
 0x726   : > { %3712 = vmatmul.msk.f32.gmra.mxu3 %vm477_vm1, %v2302_v57  ;;  %v2902_v21 = vmul.f32 1.442695, %v2883_v52  ;;  %2944 = vadd.xlane.f32.xlu2 %v2943_v36 }
 0x728   : > { %4215 = vpow2.f32 %v2902_v21 }
 0x729   : > { %4217 = vpow2.f32 %v2900_v18 }
 0x72b   : > { %v2846_v37 = vpop.xlane.xlu2 %2845 }
 0x72c   : > { %v2884_v6 = vsub.f32 %v6004_v31, %v2846_v37 }
 0x72e   : > { %v6089_v3 = vpop.eup %4215  ;;  %v2904_v5 = vmul.f32 1.442695, %v2884_v6 }
 0x72f   : > { %v6091_v49 = vpop.eup %4217  ;;  %v2937_v14 = vsel %vm477_vm1, %v6089_v3, 0.0 }
 0x730   : > { %4219 = vpow2.f32 %v2904_v5  ;;  %2938 = vadd.xlane.f32.xlu1 %v2937_v14  ;;  %v2934_v58 = vsel %vm477_vm1, %v6091_v49, 0.0 }
 0x731   : > { %4221 = vpow2.f32 %v2908_v2 }
 0x733   : > { %2935 = vadd.xlane.f32.xlu0 %v2934_v58 }
 0x736   : > { %v6097_v4 = vpop.eup %4219 }
 0x737   : > { %v6099_v56 = vpop.eup %4221  ;;  %v2940_v31 = vsel %vm477_vm1, %v6097_v4, 0.0 }
 0x738   : > { %2941 = vadd.xlane.f32.xlu1 %v2940_v31  ;;  %v2946_v39 = vsel %vm477_vm1, %v6099_v56, 0.0 }
 0x73b   : > { %2947 = vadd.xlane.f32.xlu0 %v2946_v39 }
 0x74c   : > { %v2392_v60 = vpop.f32.mrf.mxu0 }
 0x74d   : > { %3723 = vmatmul.msk.f32.gmra.mxu1 %vm587_vm2, %v2392_v60 }
 0x74f   : > { %4002 = vrot.lane.b32.xlu0 %v6496_v50, %s4298_s27 }
 0x750   : > { %v2267_v12 = vpop.xlane.xlu0 %2266 }
 0x751   : > { %4223 = vrcp.f32 %v2267_v12 }
 0x754   : > { %v2808_v29 = vpop.f32.mrf.mxu0 }
 0x755   : > { %v6109_v51 = vadd.f32 %v5917_v59, %v2808_v29 }
 0x757   : > { %v4224_v16 = vpop.eup %4223  ;;  %v2856_v35 = vsel %vm477_vm1, %v6109_v51, -inf }
 0x758   : > { %2857 = vmax.xlane.f32.xlu2 %v2856_v35  ;;  %v2270_v38 = vpop.xlane.xlu0 %2269  ;;  %v2303_v28 = vmul.f32 %v4224_v16, %v6015_v8  ;;  %v2273_v50 = vpop.xlane.xlu2 %2272 }
 0x759   : > { %4225 = vrcp.f32 %v2270_v38 }
 0x75a   : > { %3713 = vmatmul.msk.f32.gmra.mxu3 %vm477_vm1, %v2303_v28  ;;  %4227 = vrcp.f32 %v2273_v50 }
 0x75c   : > { %v6115_v9 = vpop.f32.mrf.mxu0 }
 0x75f   : > { %v4226_v25 = vpop.eup %4225 }
 0x760   : > { %v2304_v20 = vmul.f32 %v4226_v25, %v6021_v27  ;;  %v4228_v13 = vpop.eup %4227  ;;  %v3988_v18 = vpop.permute.xlu2 %3987 }
 0x761   : > { %v2305_v8 = vmul.f32 %v4228_v13, %v6024_v19  ;;  %v3989_v27 = vunpack.i.l.bf16 %v3988_v18  ;;  %v3990_v15 = vunpack.i.h.bf16 %v3988_v18 }
 0x762   : > { %3714 = vmatmul.msk.f32.gmra.mxu3 %vm477_vm1, %v2304_v20 }
 0x764   : > { %v6119_v59 = vpop.f32.mrf.mxu0 }
 0x766   : > { %v2460_v34 = vpop.f32.mrf.mxu3 }
 0x767   : > { %3724 = vmatmul.msk.f32.gmra.mxu1 %vm587_vm2, %v2460_v34 }
 0x76a   : > { %3715 = vmatmul.msk.f32.gmra.mxu3 %vm477_vm1, %v2305_v8 }
 0x76b   : > { %v3983_v57 = vpop.permute.xlu0 %3982 }
 0x76c   : > { %v3984_v52 = vunpack.i.l.bf16 %v3983_v57  ;;  %v6124_v26 = vpop.f32.mrf.mxu0  ;;  %v3985_v36 = vunpack.i.h.bf16 %v3983_v57 }
 0x76e   : > { %3064 = vmatpush.msra.mxu3 %v3984_v52 }
 0x770   : > { %3065 = vmatpush.msra.mxu3 %v3985_v36 }
 0x772   : > { %3066 = vmatpush.msra.mxu3 %v3989_v27 }
 0x773   : > { %v3993_v21 = vpop.permute.xlu0 %3992 }
 0x774   : > { %v3994_v43 = vunpack.i.l.bf16 %v3993_v21  ;;  %v6126_v37 = vpop.f32.mrf.mxu0  ;;  %3067 = vmatpush.msra.mxu3 %v3990_v15  ;;  %v3995_v6 = vunpack.i.h.bf16 %v3993_v21 }
 0x776   : > { %3068 = vmatpush.msra.mxu3 %v3994_v43 }
 0x778   : > { %3069 = vmatpush.msra.mxu3 %v3995_v6 }
 0x77b   : > { %v3998_v19 = vpop.permute.xlu0 %3997 }
 0x77c   : > { %v3999_v2 = vunpack.i.l.bf16 %v3998_v19  ;;  %v2823_v5 = vpop.f32.mrf.mxu0  ;;  %v4000_v58 = vunpack.i.h.bf16 %v3998_v19 }
 0x77d   : > { %v6129_v14 = vadd.f32 %v5935_v17, %v2823_v5 }
 0x77e   : > { %3070 = vmatpush.msra.mxu3 %v3999_v2 }
 0x77f   : > { %v2871_v31 = vsel %vm477_vm1, %v6129_v14, -inf }
 0x780   : > { %2872 = vmax.xlane.f32.xlu2 %v2871_v31  ;;  %3071 = vmatpush.msra.mxu3 %v4000_v58 }
 0x784   : > { %v2826_v39 = vpop.f32.mrf.mxu0 }
 0x785   : > { %v6134_v60 = vadd.f32 %v5958_v1, %v2826_v39 }
 0x787   : > { %v2874_v12 = vsel %vm477_vm1, %v6134_v60, -inf }
 0x788   : > { %v2930_v29 = vpop.xlane.xlu1 %2929  ;;  %2875 = vmax.xlane.f32.xlu2 %v2874_v12 }
 0x789   : > { %4229 = vrcp.f32 %v2930_v29 }
 0x78c   : > { %v2829_v16 = vpop.f32.mrf.mxu0 }
 0x78d   : > { %v6139_v17 = vadd.f32 %v6064_v53, %v2829_v16 }
 0x78f   : > { %v4230_v35 = vpop.eup %4229  ;;  %v2877_v38 = vsel %vm477_vm1, %v6139_v17, -inf }
 0x790   : > { %v2992_v28 = vmul.f32 %v4230_v35, %v6054_v62  ;;  %v2855_v50 = vpop.xlane.xlu1 %2854  ;;  %2878 = vmax.xlane.f32.xlu0 %v2877_v38  ;;  %v2463_v25 = vpop.f32.mrf.mxu3 }
 0x791   : > { %v2887_v1 = vsub.f32 %v6068_v22, %v2855_v50  ;;  %3725 = vmatmul.msk.f32.gmra.mxu1 %vm587_vm2, %v2463_v25  ;;  %v6183_v25 = vadd.f32 %v5989_v40, %v6124_v26 }
 0x792   : > { %3772 = vmatmul.msk.f32.vlgmr.msra.gmra.mxu3 %vm477_vm1, %v2992_v28 }
 0x793   : > { %v2910_v20 = vmul.f32 1.442695, %v2887_v1 }
 0x795   : > { %4231 = vpow2.f32 %v2910_v20 }
 0x798   : > { %v2933_v13 = vpop.xlane.xlu1 %2932  ;;  %v2466_v53 = vpop.f32.mrf.mxu3 }
 0x799   : > { %4233 = vrcp.f32 %v2933_v13  ;;  %3726 = vmatmul.msk.f32.gmra.mxu1 %vm587_vm2, %v2466_v53  ;;  %v2945_v19 = vpop.xlane.xlu2 %2944 }
 0x79b   : > { %v6148_v34 = vpop.eup %4231 }
 0x79c   : > { %v2949_v62 = vsel %vm477_vm1, %v6148_v34, 0.0 }
 0x79d   : > { %2950 = vadd.xlane.f32.xlu1 %v2949_v62 }
 0x79f   : > { %v4234_v8 = vpop.eup %4233 }
 0x7a0   : > { %v2993_v22 = vmul.f32 %v4234_v8, %v6077_v55 }
 0x7a1   : > { %v2469_v57 = vpop.f32.mrf.mxu3 }
 0x7a2   : > { %3727 = vmatmul.msk.f32.gmra.mxu1 %vm587_vm2, %v2469_v57  ;;  %3773 = vmatmul.msk.f32.gmra.mxu3 %vm477_vm1, %v2993_v22 }
 0x7a3   : > { %v2939_v18 = vpop.xlane.xlu1 %2938 }
 0x7a6   : > { %v2936_v52 = vpop.xlane.xlu0 %2935 }
 0x7a7   : > { %4235 = vrcp.f32 %v2936_v52 }
 0x7a8   : > { %4237 = vrcp.f32 %v2939_v18 }
 0x7a9   : > { %v2472_v36 = vpop.f32.mrf.mxu3 }
 0x7aa   : > { %3728 = vmatmul.msk.f32.gmra.mxu1 %vm587_vm2, %v2472_v36 }
 0x7ab   : > { %v2942_v21 = vpop.xlane.xlu1 %2941 }
 0x7ac   : > { %4239 = vrcp.f32 %v2942_v21 }
 0x7ad   : > { %v4236_v27 = vpop.eup %4235  ;;  %4241 = vrcp.f32 %v2945_v19 }
 0x7ae   : > { %v2994_v15 = vmul.f32 %v4236_v27, %v6091_v49  ;;  %v4238_v43 = vpop.eup %4237  ;;  %v2948_v6 = vpop.xlane.xlu0 %2947 }
 0x7af   : > { %v2995_v55 = vmul.f32 %v4238_v43, %v6089_v3  ;;  %4243 = vrcp.f32 %v2948_v6 }
 0x7b0   : > { %3774 = vmatmul.msk.f32.gmra.mxu3 %vm477_vm1, %v2994_v15 }
 0x7b2   : > { %v4240_v2 = vpop.eup %4239 }
 0x7b3   : > { %v2996_v5 = vmul.f32 %v4240_v2, %v6097_v4  ;;  %v4242_v31 = vpop.eup %4241 }
 0x7b5   : > { %v4244_v3 = vpop.eup %4243 }
 0x7b6   : > { %4007 = vrot.lane.b32.xlu1 %v6485_v30, %s4298_s27  ;;  %v2997_v30 = vmul.f32 %v4242_v31, %v6075_v24  ;;  %v2998_v4 = vmul.f32 %v4244_v3, %v6099_v56  ;;  %v2812_v24 = vadd.f32 %v5943_v47, %v6115_v9  ;;  %v2815_v56 = vadd.f32 %v5970_v23, %v6119_v59  ;;  %v554_v59 = vld [vmem:[%s6365_s4 + $0x18] sm:$0xff] }
 0x7b7   : > { %v2865_v9 = vsel %vm477_vm1, %v6183_v25, -inf  ;;  %v6192_v23 = vadd.f32 %v6000_v63, %v6126_v37  ;;  %3249 = vmatpush.msra.mxu0 %v554_v59 }
 0x7b8   : > { %3775 = vmatmul.msk.f32.gmra.mxu3 %vm477_vm1, %v2995_v55  ;;  %v2862_v1 = vsel %vm477_vm1, %v2815_v56, -inf }
 0x7b9   : > { %v2868_v40 = vsel %vm477_vm1, %v6192_v23, -inf }
 0x7c0   : > { %3776 = vmatmul.msk.f32.gmra.mxu3 %vm477_vm1, %v2996_v5 }
 0x7c1   : > { %v4003_v49 = vpop.permute.xlu0 %4002 }
 0x7c2   : > { %v4004_v58 = vunpack.i.l.bf16 %v4003_v49  ;;  %v4005_v39 = vunpack.i.h.bf16 %v4003_v49 }
 0x7c4   : > { %3153 = vmatpush.msrb.mxu2 %v4004_v58 }
 0x7c6   : > { %3154 = vmatpush.msrb.mxu2 %v4005_v39 }
 0x7c8   : > { %3777 = vmatmul.msk.f32.gmra.mxu3 %vm477_vm1, %v2997_v30 }
 0x7cb   : > { %v2858_v12 = vpop.xlane.xlu2 %2857 }
 0x7cc   : > { %v2888_v29 = vsub.f32 %v6109_v51, %v2858_v12  ;;  %v2859_v51 = vsel %vm477_vm1, %v2812_v24, -inf }
 0x7ce   : > { %v2912_v16 = vmul.f32 1.442695, %v2888_v29 }
 0x7d0   : > { %4245 = vpow2.f32 %v2912_v16  ;;  %3778 = vmatmul.msk.f32.gmra.mxu3 %vm477_vm1, %v2998_v4 }
 0x7d6   : > { %v6169_v35 = vpop.eup %4245 }
 0x7d7   : > { %v2952_v38 = vsel %vm477_vm1, %v6169_v35, 0.0 }
 0x7d8   : > { %2953 = vadd.xlane.f32.xlu2 %v2952_v38 }
 0x7dd   : > { %v2475_v28 = vpop.f32.mrf.mxu3 }
 0x7de   : > { %3729 = vmatmul.msk.f32.gmra.mxu1 %vm587_vm2, %v2475_v28 }
 0x7e0   : > { %2860 = vmax.xlane.f32.xlu1 %v2859_v51 }
 0x7e5   : > { %v2478_v50 = vpop.f32.mrf.mxu3 }
 0x7e6   : > { %3730 = vmatmul.msk.f32.gmra.mxu1 %vm587_vm2, %v2478_v50 }
 0x7e8   : > { %2863 = vmax.xlane.f32.xlu1 %v2862_v1 }
 0x7ed   : > { %v2481_v47 = vpop.f32.mrf.mxu3 }
 0x7ee   : > { %3731 = vmatmul.msk.f32.gmra.mxu1 %vm587_vm2, %v2481_v47 }
 0x7f0   : > { %2866 = vmax.xlane.f32.xlu1 %v2865_v9  ;;  %4012 = vrot.lane.b32.xlu2 %v6487_v32, %s4298_s27 }
 0x7f8   : > { %2869 = vmax.xlane.f32.xlu1 %v2868_v40 }
 0x803   : > { %v2879_v36 = vpop.xlane.xlu0 %2878 }
 0x804   : > { %v2895_v6 = vsub.f32 %v6139_v17, %v2879_v36 }
 0x806   : > { %v2926_v5 = vmul.f32 1.442695, %v2895_v6 }
 0x810   : > { %v2951_v26 = vpop.xlane.xlu1 %2950 }
 0x811   : > { %4247 = vrcp.f32 %v2951_v26  ;;  %4017 = vrot.lane.b32.xlu1 %v6497_v41, %s4298_s27  ;;  %v2873_v41 = vpop.xlane.xlu2 %2872 }
 0x812   : > { %v2893_v1 = vsub.f32 %v6129_v14, %v2873_v41  ;;  %v6250_v41 = vld [vmem:[%s6366_s5] ss:$0 sm:$0xff] }
 0x814   : > { %v2922_v59 = vmul.f32 1.442695, %v2893_v1 }
 0x815   : > { %v3073_v20 = vpop.f32.mrf.mxu3 }
 0x816   : > { %3788 = vmatmul.msk.f32.vlgmr.msra.gmra.mxu0 %vm587_vm2, %v3073_v20 }
 0x817   : > { %v4248_v32 = vpop.eup %4247 }
 0x818   : > { %v2999_v63 = vmul.f32 %v4248_v32, %v6148_v34 }
 0x819   : > { %v2876_v57 = vpop.xlane.xlu2 %2875 }
 0x81a   : > { %3779 = vmatmul.msk.f32.gmra.mxu3 %vm477_vm1, %v2999_v63  ;;  %v2894_v39 = vsub.f32 %v6134_v60, %v2876_v57 }
 0x81c   : > { %v2924_v17 = vmul.f32 1.442695, %v2894_v39 }
 0x825   : > { %v3076_v37 = vpop.f32.mrf.mxu3 }
 0x826   : > { %3789 = vmatmul.msk.f32.gmra.mxu0 %vm587_vm2, %v3076_v37 }
 0x828   : > { %v4008_v13 = vpop.permute.xlu1 %4007 }
 0x829   : > { %v4009_v53 = vunpack.i.l.bf16 %v4008_v13  ;;  %v4010_v62 = vunpack.i.h.bf16 %v4008_v13 }
 0x82b   : > { %3155 = vmatpush.msrb.mxu2 %v4009_v53  ;;  %v2549_v53 = vpop.f32.mrf.mxu1 }
 0x82d   : > { %3156 = vmatpush.msrb.mxu2 %v4010_v62  ;;  %v1864_v62 = vadd.f32 %v5682_v42, %v5699_v10 }
 0x833   : > { %v3079_v8 = vpop.f32.mrf.mxu3  ;;  %v2552_v10 = vpop.f32.mrf.mxu1 }
 0x834   : > { %3790 = vmatmul.msk.f32.gmra.mxu0 %vm587_vm2, %v3079_v8  ;;  %v2597_v8 = vadd.f32 %v2549_v53, %v1864_v62 }
 0x83b   : > { %v3082_v22 = vpop.f32.mrf.mxu3 }
 0x83c   : > { %3791 = vmatmul.msk.f32.gmra.mxu0 %vm587_vm2, %v3082_v22 }
 0x843   : > { %v3085_v52 = vpop.f32.mrf.mxu3 }
 0x844   : > { %3792 = vmatmul.msk.f32.gmra.mxu0 %vm587_vm2, %v3085_v52 }
 0x84b   : > { %v2954_v34 = vpop.xlane.xlu2 %2953  ;;  %v3088_v18 = vpop.f32.mrf.mxu3 }
 0x84c   : > { %3793 = vmatmul.msk.f32.gmra.mxu0 %vm587_vm2, %v3088_v18 }
 0x853   : > { %v2861_v27 = vpop.xlane.xlu1 %2860  ;;  %v4013_v15 = vpop.permute.xlu2 %4012 }
 0x854   : > { %v2889_v21 = vsub.f32 %v2812_v24, %v2861_v27  ;;  %v4014_v43 = vunpack.i.l.bf16 %v4013_v15  ;;  %v3091_v55 = vpop.f32.mrf.mxu3  ;;  %v4015_v2 = vunpack.i.h.bf16 %v4013_v15 }
 0x855   : > { %3794 = vmatmul.msk.f32.gmra.mxu0 %vm587_vm2, %v3091_v55  ;;  %v1870_v55 = vadd.f32 %v5697_v61, %v5720_v44  ;;  %v1876_v44 = vadd.f32 %v5722_v0, %v5737_v11 }
 0x856   : > { %v2914_v19 = vmul.f32 1.442695, %v2889_v21  ;;  %3157 = vmatpush.msrb.mxu2 %v4014_v43  ;;  %v2555_v43 = vpop.f32.mrf.mxu1 }
 0x857   : > { %v2599_v6 = vadd.f32 %v2555_v43, %v1870_v55  ;;  %v6501_v43 = vld [vmem:[#allocation14_spill] sm:$0xff] }
 0x858   : > { %4249 = vpow2.f32 %v2914_v19  ;;  %3158 = vmatpush.msrb.mxu2 %v4015_v2 }
 0x859   : > { %4251 = vpow2.f32 %v2926_v5 }
 0x85b   : > { %v2864_v49 = vpop.xlane.xlu1 %2863 }
 0x85c   : > { %v2890_v58 = vsub.f32 %v2815_v56, %v2864_v49 }
 0x85e   : > { %v6211_v31 = vpop.eup %4249  ;;  %v2916_v30 = vmul.f32 1.442695, %v2890_v58  ;;  %v2558_v5 = vpop.f32.mrf.mxu1 }
 0x85f   : > { %v2955_v3 = vsel %vm477_vm1, %v6211_v31, 0.0  ;;  %v6216_v29 = vpop.eup %4251 }
 0x860   : > { %4253 = vpow2.f32 %v2916_v30  ;;  %2956 = vadd.xlane.f32.xlu1 %v2955_v3  ;;  %v2973_v24 = vsel %vm477_vm1, %v6216_v29, 0.0 }
 0x861   : > { %4255 = vpow2.f32 %v2924_v17 }
 0x863   : > { %v2867_v12 = vpop.xlane.xlu1 %2866 }
 0x864   : > { %v2891_v16 = vsub.f32 %v6183_v25, %v2867_v12 }
 0x866   : > { %v6219_v4 = vpop.eup %4253  ;;  %v2918_v38 = vmul.f32 1.442695, %v2891_v16  ;;  %v2561_v3 = vpop.f32.mrf.mxu1 }
 0x867   : > { %v2958_v60 = vsel %vm477_vm1, %v6219_v4, 0.0  ;;  %v6225_v51 = vpop.eup %4255  ;;  %v2601_v12 = vadd.f32 %v2561_v3, %v1876_v44  ;;  %v6503_v3 = vld [vmem:[#allocation23_spill] sm:$0xff] }
 0x868   : > { %4257 = vpow2.f32 %v2918_v38  ;;  %2959 = vadd.xlane.f32.xlu2 %v2958_v60  ;;  %2974 = vadd.xlane.f32.xlu1 %v2973_v24  ;;  %v2970_v47 = vsel %vm477_vm1, %v6225_v51, 0.0  ;;  %v1879_v60 = vadd.f32 %v5728_v46, %v5746_v45 }
 0x86b   : > { %v2870_v28 = vpop.xlane.xlu1 %2869 }
 0x86c   : > { %v2892_v56 = vsub.f32 %v6192_v23, %v2870_v28 }
 0x86e   : > { %v6228_v50 = vpop.eup %4257  ;;  %v2920_v25 = vmul.f32 1.442695, %v2892_v56 }
 0x86f   : > { %v2961_v9 = vsel %vm477_vm1, %v6228_v50, 0.0 }
 0x870   : > { %4259 = vpow2.f32 %v2920_v25  ;;  %2971 = vadd.xlane.f32.xlu2 %v2970_v47  ;;  %2962 = vadd.xlane.f32.xlu0 %v2961_v9  ;;  %v6498_v47 = vld [vmem:[#allocation27_spill] sm:$0xff]  ;;  %v6499_v9 = vld [vmem:[#allocation17_spill] sm:$0xff] }
 0x871   : > { %4261 = vpow2.f32 %v2922_v59  ;;  %v1882_v59 = vadd.f32 %v6499_v9, %v6498_v47  ;;  %v6506_v9 = vld [vmem:[#allocation11_spill] sm:$0xff] }
 0x872   : > { %4263 = vrcp.f32 %v2954_v34  ;;  %v1867_v34 = vadd.f32 %v5690_v7, %v5708_v33  ;;  %v1873_v33 = vadd.f32 %v5712_v48, %v5726_v54  ;;  %v2564_v54 = vpop.f32.mrf.mxu1 }
 0x873   : > { %v2602_v28 = vadd.f32 %v2564_v54, %v1879_v60 }
 0x874   : > { %v2598_v18 = vadd.f32 %v2552_v10, %v1867_v34  ;;  %v2600_v58 = vadd.f32 %v2558_v5, %v1873_v33 }
 0x876   : > { %v6235_v40 = vpop.eup %4259 }
 0x877   : > { %v2964_v23 = vsel %vm477_vm1, %v6235_v40, 0.0  ;;  %v6239_v26 = vpop.eup %4261 }
 0x878   : > { %2965 = vadd.xlane.f32.xlu0 %v2964_v23  ;;  %v2967_v14 = vsel %vm477_vm1, %v6239_v26, 0.0  ;;  %v4264_v32 = vpop.eup %4263 }
 0x879   : > { %v3000_v13 = vmul.f32 %v4264_v32, %v6169_v35 }
 0x87a   : > { %v2567_v1 = vpop.f32.mrf.mxu1 }
 0x87b   : > { %v2603_v23 = vadd.f32 %v2567_v1, %v1882_v59  ;;  %v6507_v59 = vld [vmem:[#allocation19_spill] sm:$0xff] }
 0x880   : > { %2968 = vadd.xlane.f32.xlu0 %v2967_v14 }
 0x883   : > { %v4018_v20 = vpop.permute.xlu1 %4017 }
 0x884   : > { %v4019_v63 = vunpack.i.l.bf16 %v4018_v20  ;;  %v4020_v37 = vunpack.i.h.bf16 %v4018_v20 }
 0x886   : > { %3159 = vmatpush.msrb.mxu2 %v4019_v63 }
 0x888   : > { %3160 = vmatpush.msrb.mxu2 %v4020_v37 }
 0x889   : > { %3780 = vmatmul.msk.f32.vlgmr.msrb.gmra.mxu2 %vm477_vm1, %v3000_v13 }
 0x893   : > { %v3251_v22 = vpop.f32.mrf.mxu0 }
 0x894   : > { %v3299_v57 = vadd.f32 %v3251_v22, %v2597_v8 }
 0x896   : > { %v3319_v52 = vadd.f32 %v6250_v41, %v3299_v57 }
 0x898   : > { %v3335_v35 = vpack.c.bf16 %v3319_v52, %v3319_v52 }
 0x89a   : > { %3352 = vst.msk [vmem:[%s6257_s13] sm:$0xf] %vm3351_vm3, %v3335_v35 }
 0x89d   : > { %v3094_v42 = vpop.f32.mrf.mxu3 }
 0x89e   : > { %3795 = vmatmul.msk.f32.gmra.mxu0 %vm587_vm2, %v3094_v42 }
 0x8a3   : > { %v3254_v36 = vpop.f32.mrf.mxu0 }
 0x8a4   : > { %v3300_v27 = vadd.f32 %v3254_v36, %v2598_v18 }
 0x8a6   : > { %v3320_v15 = vadd.f32 %v6250_v41, %v3300_v27 }
 0x8a8   : > { %v3336_v21 = vpack.c.bf16 %v3320_v15, %v3320_v15 }
 0x8aa   : > { %3353 = vst.msk [vmem:[%s6257_s13 + $0x4] sm:$0xf] %vm3351_vm3, %v3336_v21  ;;  %v2570_v21 = vpop.f32.mrf.mxu1 }
 0x8b1   : > { %v3257_v19 = vpop.f32.mrf.mxu0 }
 0x8b2   : > { %v3301_v2 = vadd.f32 %v3257_v19, %v2599_v6 }
 0x8b4   : > { %v3321_v7 = vadd.f32 %v6250_v41, %v3301_v2 }
 0x8b6   : > { %v3337_v49 = vpack.c.bf16 %v3321_v7, %v3321_v7 }
 0x8b8   : > { %3354 = vst.msk [vmem:[%s6257_s13 + $0x8] sm:$0xf] %vm3351_vm3, %v3337_v49 }
 0x8b9   : > { %v3260_v39 = vpop.f32.mrf.mxu0 }
 0x8ba   : > { %v3302_v30 = vadd.f32 %v3260_v39, %v2600_v58  ;;  %v2573_v39 = vpop.f32.mrf.mxu1 }
 0x8bc   : > { %v3322_v61 = vadd.f32 %v6250_v41, %v3302_v30  ;;  %v6502_v30 = vld [vmem:[#allocation12_spill] sm:$0xff] }
 0x8be   : > { %v3338_v17 = vpack.c.bf16 %v3322_v61, %v3322_v61  ;;  %v1888_v61 = vadd.f32 %v6503_v3, %v6502_v30 }
 0x8c0   : > { %3355 = vst.msk [vmem:[%s6257_s13 + $0xc] sm:$0xf] %vm3351_vm3, %v3338_v17  ;;  %v2605_v44 = vadd.f32 %v2573_v39, %v1888_v61  ;;  %v6516_v61 = vld [vmem:[#allocation8_spill] sm:$0xff] }
 0x8c1   : > { %v3263_v16 = vpop.f32.mrf.mxu0 }
 0x8c2   : > { %v3303_v48 = vadd.f32 %v3263_v16, %v2601_v12  ;;  %v2576_v60 = vpop.f32.mrf.mxu1 }
 0x8c4   : > { %v3323_v38 = vadd.f32 %v6250_v41, %v3303_v48 }
 0x8c6   : > { %v3339_v24 = vpack.c.bf16 %v3323_v38, %v3323_v38 }
 0x8c8   : > { %3356 = vst.msk [vmem:[%s6257_s13 + $0x10] sm:$0xf] %vm3351_vm3, %v3339_v24  ;;  %v6504_v24 = vld [vmem:[#allocation10_spill] sm:$0xff] }
 0x8c9   : > { %v3266_v56 = vpop.f32.mrf.mxu0 }
 0x8ca   : > { %v3304_v0 = vadd.f32 %v3266_v56, %v2602_v28  ;;  %v6505_v28 = vld [vmem:[#allocation28_spill] sm:$0xff] }
 0x8cb   : > { %v1891_v56 = vadd.f32 %v6505_v28, %v6504_v24 }
 0x8cc   : > { %v3324_v11 = vadd.f32 %v6250_v41, %v3304_v0  ;;  %v2579_v0 = vpop.f32.mrf.mxu1 }
 0x8ce   : > { %v3340_v25 = vpack.c.bf16 %v3324_v11, %v3324_v11  ;;  %v2606_v11 = vadd.f32 %v2576_v60, %v1891_v56 }
 0x8d0   : > { %3357 = vst.msk [vmem:[%s6257_s13 + $0x14] sm:$0xf] %vm3351_vm3, %v3340_v25 }
 0x8d2   : > { %v3269_v14 = vpop.f32.mrf.mxu0 }
 0x8d3   : > { %v3305_v20 = vadd.f32 %v3269_v14, %v2603_v23  ;;  %v2957_v46 = vpop.xlane.xlu1 %2956  ;;  %v1894_v23 = vadd.f32 %v6507_v59, %v6506_v9 }
 0x8d4   : > { %4265 = vrcp.f32 %v2957_v46  ;;  %v2582_v46 = vpop.f32.mrf.mxu1 }
 0x8d5   : > { %v3325_v45 = vadd.f32 %v6250_v41, %v3305_v20  ;;  %v2607_v20 = vadd.f32 %v2579_v0, %v1894_v23 }
 0x8d7   : > { %v3341_v32 = vpack.c.bf16 %v3325_v45, %v3325_v45 }
 0x8d9   : > { %3358 = vst.msk [vmem:[%s6257_s13 + $0x18] sm:$0xf] %vm3351_vm3, %v3341_v32 }
 0x8da   : > { %v4266_v63 = vpop.eup %4265 }
 0x8db   : > { %v2960_v37 = vpop.xlane.xlu2 %2959  ;;  %v3001_v13 = vmul.f32 %v4266_v63, %v6211_v31  ;;  %v2975_v18 = vpop.xlane.xlu1 %2974 }
 0x8dc   : > { %4267 = vrcp.f32 %v2960_v37 }
 0x8dd   : > { %3781 = vmatmul.msk.f32.gmra.mxu2 %vm477_vm1, %v3001_v13  ;;  %v6508_v13 = vld [vmem:[#allocation18_spill] sm:$0xff] }
 0x8e2   : > { %v4268_v53 = vpop.eup %4267 }
 0x8e3   : > { %v2963_v62 = vpop.xlane.xlu0 %2962  ;;  %v3002_v8 = vmul.f32 %v4268_v53, %v6219_v4  ;;  %v2972_v10 = vpop.xlane.xlu2 %2971  ;;  %v6509_v53 = vld [vmem:[#allocation9_spill] sm:$0xff] }
 0x8e4   : > { %4269 = vrcp.f32 %v2963_v62  ;;  %v1897_v62 = vadd.f32 %v6509_v53, %v6508_v13 }
 0x8e5   : > { %3782 = vmatmul.msk.f32.gmra.mxu2 %vm477_vm1, %v3002_v8 }
 0x8e6   : > { %v2608_v8 = vadd.f32 %v2582_v46, %v1897_v62 }
 0x8ea   : > { %v4270_v22 = vpop.eup %4269 }
 0x8eb   : > { %v2966_v57 = vpop.xlane.xlu0 %2965  ;;  %v3003_v52 = vmul.f32 %v4270_v22, %v6228_v50  ;;  %v2585_v22 = vpop.f32.mrf.mxu1 }
 0x8ec   : > { %4271 = vrcp.f32 %v2966_v57 }
 0x8ed   : > { %3783 = vmatmul.msk.f32.gmra.mxu2 %vm477_vm1, %v3003_v52 }
 0x8f2   : > { %v4272_v35 = vpop.eup %4271 }
 0x8f3   : > { %v2969_v42 = vpop.xlane.xlu0 %2968  ;;  %v3004_v31 = vmul.f32 %v4272_v35, %v6235_v40 }
 0x8f4   : > { %4273 = vrcp.f32 %v2969_v42  ;;  %v6510_v42 = vld [vmem:[#allocation6_spill] sm:$0xff] }
 0x8f5   : > { %3784 = vmatmul.msk.f32.gmra.mxu2 %vm477_vm1, %v3004_v31  ;;  %4275 = vrcp.f32 %v2972_v10  ;;  %v6511_v31 = vld [vmem:[#allocation7_spill] sm:$0xff] }
 0x8f6   : > { %4277 = vrcp.f32 %v2975_v18  ;;  %v1900_v10 = vadd.f32 %v6511_v31, %v6510_v42  ;;  %v2588_v18 = vpop.f32.mrf.mxu1 }
 0x8fa   : > { %v4274_v34 = vpop.eup %4273 }
 0x8fb   : > { %v3005_v4 = vmul.f32 %v4274_v34, %v6239_v26  ;;  %v4276_v36 = vpop.eup %4275  ;;  %v6500_v26 = vld [vmem:[#allocation26_spill] sm:$0xff] }
 0x8fc   : > { %v3006_v50 = vmul.f32 %v4276_v36, %v6225_v51  ;;  %v4278_v27 = vpop.eup %4277  ;;  %v1885_v55 = vadd.f32 %v6501_v43, %v6500_v26 }
 0x8fd   : > { %3785 = vmatmul.msk.f32.gmra.mxu2 %vm477_vm1, %v3005_v4  ;;  %v3007_v40 = vmul.f32 %v4278_v27, %v6216_v29  ;;  %v2609_v4 = vadd.f32 %v2585_v22, %v1900_v10 }
 0x8fe   : > { %v2604_v6 = vadd.f32 %v2570_v21, %v1885_v55 }
 0x905   : > { %3786 = vmatmul.msk.f32.gmra.mxu2 %vm477_vm1, %v3006_v50 }
 0x90c   : > { %v3162_v15 = vpop.f32.mrf.mxu2 }
 0x90d   : > { %3796 = vmatmul.msk.f32.gmra.mxu0 %vm587_vm2, %v3162_v15  ;;  %3787 = vmatmul.msk.f32.gmra.mxu2 %vm477_vm1, %v3007_v40  ;;  %v6512_v40 = vld [vmem:[#allocation4_spill] sm:$0xff]  ;;  %v6513_v15 = vld [vmem:[#allocation3_spill] sm:$0xff] }
 0x90e   : > { %v1903_v21 = vadd.f32 %v6513_v15, %v6512_v40 }
 0x910   : > { %v2610_v43 = vadd.f32 %v2588_v18, %v1903_v21 }
 0x91b   : > { %v3272_v19 = vpop.f32.mrf.mxu0 }
 0x91c   : > { %v3306_v2 = vadd.f32 %v3272_v19, %v2604_v6  ;;  %v2591_v19 = vpop.f32.mrf.mxu1 }
 0x91e   : > { %v3326_v5 = vadd.f32 %v6250_v41, %v3306_v2 }
 0x920   : > { %v3342_v51 = vpack.c.bf16 %v3326_v5, %v3326_v5  ;;  %v6514_v5 = vld [vmem:[#allocation13_spill] sm:$0xff] }
 0x922   : > { %3359 = vst.msk [vmem:[%s6257_s13 + $0x1c] sm:$0xf] %vm3351_vm3, %v3342_v51  ;;  %v6515_v51 = vld [vmem:[#allocation2_spill] sm:$0xff] }
 0x924   : > { %v2594_v30 = vpop.f32.mrf.mxu1 }
 0x960   : > { %v3165_v7 = vpop.f32.mrf.mxu2 }
 0x961   : > { %3797 = vmatmul.msk.f32.gmra.mxu0 %vm587_vm2, %v3165_v7  ;;  %v1906_v7 = vadd.f32 %v6515_v51, %v6514_v5 }
 0x968   : > { %v3168_v29 = vpop.f32.mrf.mxu2 }
 0x969   : > { %3798 = vmatmul.msk.f32.gmra.mxu0 %vm587_vm2, %v3168_v29 }
 0x970   : > { %v3171_v33 = vpop.f32.mrf.mxu2 }
 0x971   : > { %3799 = vmatmul.msk.f32.gmra.mxu0 %vm587_vm2, %v3171_v33  ;;  %v2611_v33 = vadd.f32 %v2591_v19, %v1906_v7 }
 0x978   : > { %v3174_v49 = vpop.f32.mrf.mxu2 }
 0x979   : > { %3800 = vmatmul.msk.f32.gmra.mxu0 %vm587_vm2, %v3174_v49 }
 0x980   : > { %v3177_v58 = vpop.f32.mrf.mxu2 }
 0x981   : > { %3801 = vmatmul.msk.f32.gmra.mxu0 %vm587_vm2, %v3177_v58 }
 0x988   : > { %v3180_v17 = vpop.f32.mrf.mxu2 }
 0x989   : > { %3802 = vmatmul.msk.f32.gmra.mxu0 %vm587_vm2, %v3180_v17 }
 0x98a   : > { %v3275_v12 = vpop.f32.mrf.mxu0 }
 0x98b   : > { %v3307_v16 = vadd.f32 %v3275_v12, %v2605_v44  ;;  %v2612_v44 = vadd.f32 %v2594_v30, %v6516_v61 }
 0x98d   : > { %v3327_v48 = vadd.f32 %v6250_v41, %v3307_v16 }
 0x98f   : > { %v3343_v54 = vpack.c.bf16 %v3327_v48, %v3327_v48 }
 0x990   : > { %v3183_v38 = vpop.f32.mrf.mxu2 }
 0x991   : > { %3360 = vst.msk [vmem:[%s6257_s13 + $0x20] sm:$0xf] %vm3351_vm3, %v3343_v54  ;;  %3803 = vmatmul.msk.f32.gmra.mxu0 %vm587_vm2, %v3183_v38 }
 0x9de   : > { %v3278_v1 = vpop.f32.mrf.mxu0 }
 0x9df   : > { %v3308_v25 = vadd.f32 %v3278_v1, %v2606_v11 }
 0x9e1   : > { %v3328_v47 = vadd.f32 %v6250_v41, %v3308_v25 }
 0x9e3   : > { %v3344_v14 = vpack.c.bf16 %v3328_v47, %v3328_v47 }
 0x9e5   : > { %3361 = vst.msk [vmem:[%s6257_s13 + $0x24] sm:$0xf] %vm3351_vm3, %v3344_v14 }
 0x9e6   : > { %v3281_v45 = vpop.f32.mrf.mxu0 }
 0x9e7   : > { %v3309_v32 = vadd.f32 %v3281_v45, %v2607_v20 }
 0x9e9   : > { %v3329_v63 = vadd.f32 %v6250_v41, %v3309_v32 }
 0x9eb   : > { %v3345_v37 = vpack.c.bf16 %v3329_v63, %v3329_v63 }
 0x9ed   : > { %3362 = vst.msk [vmem:[%s6257_s13 + $0x28] sm:$0xf] %vm3351_vm3, %v3345_v37 }
 0x9ee   : > { %v3284_v57 = vpop.f32.mrf.mxu0 }
 0x9ef   : > { %v3310_v52 = vadd.f32 %v3284_v57, %v2608_v8 }
 0x9f1   : > { %v3330_v35 = vadd.f32 %v6250_v41, %v3310_v52 }
 0x9f3   : > { %v3346_v34 = vpack.c.bf16 %v3330_v35, %v3330_v35 }
 0x9f5   : > { %3363 = vst.msk [vmem:[%s6257_s13 + $0x2c] sm:$0xf] %vm3351_vm3, %v3346_v34 }
 0x9f6   : > { %v3287_v36 = vpop.f32.mrf.mxu0 }
 0x9f7   : > { %v3311_v50 = vadd.f32 %v3287_v36, %v2609_v4 }
 0x9f9   : > { %v3331_v27 = vadd.f32 %v6250_v41, %v3311_v50 }
 0x9fb   : > { %v3347_v26 = vpack.c.bf16 %v3331_v27, %v3331_v27 }
 0x9fd   : > { %3364 = vst.msk [vmem:[%s6257_s13 + $0x30] sm:$0xf] %vm3351_vm3, %v3347_v26 }
 0x9fe   : > { %v3290_v55 = vpop.f32.mrf.mxu0 }
 0x9ff   : > { %v3312_v6 = vadd.f32 %v3290_v55, %v2610_v43 }
 0xa01   : > { %v3332_v2 = vadd.f32 %v6250_v41, %v3312_v6 }
 0xa03   : > { %v3348_v29 = vpack.c.bf16 %v3332_v2, %v3332_v2 }
 0xa05   : > { %3365 = vst.msk [vmem:[%s6257_s13 + $0x34] sm:$0xf] %vm3351_vm3, %v3348_v29 }
 0xa06   : > { %v3293_v49 = vpop.f32.mrf.mxu0 }
 0xa07   : > { %v3313_v58 = vadd.f32 %v3293_v49, %v2611_v33 }
 0xa09   : > { %v3333_v39 = vadd.f32 %v6250_v41, %v3313_v58 }
 0xa0b   : > { %v3349_v3 = vpack.c.bf16 %v3333_v39, %v3333_v39 }
 0xa0d   : > { %3366 = vst.msk [vmem:[%s6257_s13 + $0x38] sm:$0xf] %vm3351_vm3, %v3349_v3 }
 0xa0e   : > { %v3296_v17 = vpop.f32.mrf.mxu0 }
 0xa0f   : > { %v3314_v12 = vadd.f32 %v3296_v17, %v2612_v44 }
 0xa11   : > { %v3334_v16 = vadd.f32 %v6250_v41, %v3314_v12 }
 0xa13   : > { %v3350_v48 = vpack.c.bf16 %v3334_v16, %v3334_v16 }
 0xa15   : > { %3367 = vst.msk [vmem:[%s6257_s13 + $0x3c] sm:$0xf] %vm3351_vm3, %v3350_v48 }
 0xa16 PF: > { %s17_s24 = sadd.s32 1, %s4285_s24  }
 0xa17   : > { %p14_p4 = scmp.ge.s32.totalorder %s17_s24, 6  }
 0xa19   :  { %16 = sbr.rel (!%p14_p4) target bundleno = 1 (0x1), region = 84 }

</bundles_post_ra>
